<compile_context>
chip_gen: v6e
topology: v6e:2x2x1
jax: 0.10.0
libtpu: 0.0.40
codegen_flags: <defaults>
</compile_context>

<pallas_src>
import jax
import jax.numpy as jnp
from jax.experimental import pallas as pl
from jax.experimental.pallas import tpu as pltpu


def _conv1x1_pad1_bias_sub_kernel(x_ref, w_ref, b_ref, o_ref):
    """Fused Conv2d(Cin->Cout, k=1, s=1, pad=1)(x) - 1.5 for nb batches.

    x_ref: (nb, Cin, H, W)       VMEM  (W on lanes, H on sublanes)
    w_ref: (Cout, Cin)           SMEM  (scalar weight reads)
    b_ref: (Cout,)               SMEM  (scalar bias reads)
    o_ref: (nb, Cout, H+2, W+2)  VMEM  padded NCHW output
    """
    nb, cout, hp, wp = o_ref.shape
    cin = x_ref.shape[1]
    h, w = hp - 2, wp - 2

    for n in range(nb):                      # static unroll: nb is 1 or N (tiny)
        for o in range(cout):
            border = b_ref[o] - 1.5          # zero-padded 1x1 conv border == bias
            # Fill whole (Hp, Wp) plane with the border value ...
            o_ref[n, o] = jnp.full((hp, wp), border, dtype=o_ref.dtype)
            # ... then overwrite the interior: sum_c w[o,c] * x[c] + (bias_o - 1.5)
            acc = jnp.full((h, w), border, dtype=jnp.float32)
            for c in range(cin):             # 5-term VPU FMA, SMEM scalar weights
                acc = acc + w_ref[o, c] * x_ref[n, c]
            o_ref[n, o, 1:hp - 1, 1:wp - 1] = acc.astype(o_ref.dtype)


def conv1x1_pad1_sub(x_nchw, weight_oihw, bias, *, split_batch=None):
    """Equivalent of: Conv2d(Cin, Cout, 1, stride=1, padding=1)(x) - 1.5.

    x_nchw:      (N, Cin, H, W)    float32
    weight_oihw: (Cout, Cin, 1, 1) float32
    bias:        (Cout,)           float32
    returns:     (N, Cout, H+2, W+2) float32 (NCHW, like PyTorch)
    """
    N, Cin, H, W = x_nchw.shape
    Cout = weight_oihw.shape[0]
    Hp, Wp = H + 2, W + 2

    if split_batch is None:
        # v7x has 2 TensorCores/chip -> keep a 2-wide "parallel" batch axis so each
        # core takes one batch.  Single-TC v5e/v6e -> one grid step (no overhead).
        try:
            kind = jax.devices()[0].device_kind.lower()
        except Exception:
            kind = ""
        split_batch = ("v7" in kind) or ("7x" in kind)

    nb = 1 if split_batch else N
    grid = (N // nb,)

    w2d = weight_oihw.reshape(Cout, Cin)     # free reshape (drops trailing 1x1)

    cost = pl.CostEstimate(
        flops=2 * N * Cout * Cin * H * W,
        transcendentals=0,
        bytes_accessed=4 * (x_nchw.size + w2d.size + bias.size + N * Cout * Hp * Wp),
    )

    return pl.pallas_call(
        _conv1x1_pad1_bias_sub_kernel,
        out_shape=jax.ShapeDtypeStruct((N, Cout, Hp, Wp), jnp.float32),
        grid=grid,
        in_specs=[
            pl.BlockSpec((nb, Cin, H, W), lambda i: (i, 0, 0, 0)),       # x block
            pl.BlockSpec(memory_space=pltpu.MemorySpace.SMEM),           # weights
            pl.BlockSpec(memory_space=pltpu.MemorySpace.SMEM),           # bias
        ],
        out_specs=pl.BlockSpec((nb, Cout, Hp, Wp), lambda i: (i, 0, 0, 0)),
        compiler_params=pltpu.CompilerParams(
            dimension_semantics=("parallel",)),
        cost_estimate=cost,
    )(x_nchw, w2d, bias)


if __name__ == "__main__":
    key = jax.random.PRNGKey(0)
    k_x, k_w, k_b = jax.random.split(key, 3)

    # Module defines Conv2d(5, 10, 1, padding=1) => input must have 5 channels.
    N, Cin, H, W, Cout = 2, 5, 16, 16, 10
    x = jax.random.normal(k_x, (N, Cin, H, W), dtype=jnp.float32)

    # Deterministic parameter init (PyTorch-like uniform fan-in bound).
    fan_in = Cin * 1 * 1
    bound = 1.0 / (fan_in ** 0.5)
    weight = jax.random.uniform(k_w, (Cout, Cin, 1, 1), dtype=jnp.float32,
                                minval=-bound, maxval=bound)
    bias = jax.random.uniform(k_b, (Cout,), dtype=jnp.float32,
                              minval=-bound, maxval=bound)

    fwd = jax.jit(conv1x1_pad1_sub)
    out = fwd(x, weight, bias)
    jax.block_until_ready(out)

    # sanity: shape matches PyTorch Conv2d(5,10,1,padding=1) output minus 1.5
    assert out.shape == (N, Cout, H + 2, W + 2), out.shape

    # cross-check against pure-JAX reference
    ref = (jax.lax.conv_general_dilated(
        x, weight, window_strides=(1, 1), padding=((1, 1), (1, 1)),
        dimension_numbers=("NCHW", "OIHW", "NCHW"))
        + bias.reshape(1, Cout, 1, 1) - 1.5)
    assert jnp.allclose(out, ref, atol=1e-5, rtol=1e-5), \
        float(jnp.max(jnp.abs(out - ref)))

    print("KERNEL_OK")
</pallas_src>

<mosaic_0001>
module attributes {stable_mosaic.version = 11 : i64} {
  func.func @_conv1x1_pad1_bias_sub_kernel(%arg0: i32, %arg1: memref<2x5x16x16xf32, #tpu.memory_space<vmem>>, %arg2: memref<10x5xf32, #tpu.memory_space<smem>>, %arg3: memref<10xf32, #tpu.memory_space<smem>>, %arg4: memref<2x10x18x18xf32, #tpu.memory_space<vmem>>) attributes {dimension_semantics = [#tpu.dimension_semantics<parallel>], iteration_bounds = array<i64: 1>, scalar_prefetch = 0 : i64, scratch_operands = 0 : i64, tpu.core_type = #tpu.core_type<tc>, window_params = [{transform_indices = @transform_0, window_bounds = array<i64: 2, 5, 16, 16>}, {transform_indices = @transform_1, window_bounds = array<i64: 10, 5>}, {transform_indices = @transform_2, window_bounds = array<i64: 10>}, {transform_indices = @transform_3, window_bounds = array<i64: 2, 10, 18, 18>}]} {
    %c0 = arith.constant 0 : index
    %0 = memref.load %arg3[%c0] : memref<10xf32, #tpu.memory_space<smem>>
    %cst = arith.constant 1.500000e+00 : f32
    %1 = arith.subf %0, %cst : f32
    %2 = vector.broadcast %1 : f32 to vector<18x18xf32>
    %c0_0 = arith.constant 0 : index
    %c0_1 = arith.constant 0 : index
    %c0_2 = arith.constant 0 : index
    %c0_3 = arith.constant 0 : index
    %3 = vector.load %arg4[%c0_0, %c0_1, %c0_2, %c0_3] : memref<2x10x18x18xf32, #tpu.memory_space<vmem>>, vector<1x1x18x18xf32>
    %4 = vector.shape_cast %3 : vector<1x1x18x18xf32> to vector<18x18xf32>
    %5 = vector.shape_cast %2 : vector<18x18xf32> to vector<1x1x18x18xf32>
    tpu.vector_store %arg4[%c0_0, %c0_1, %c0_2, %c0_3], %5 {strides = array<i32>} : memref<2x10x18x18xf32, #tpu.memory_space<vmem>>, vector<1x1x18x18xf32>,
    %6 = vector.broadcast %1 : f32 to vector<16x16xf32>
    %c0_4 = arith.constant 0 : index
    %c0_5 = arith.constant 0 : index
    %7 = memref.load %arg2[%c0_4, %c0_5] : memref<10x5xf32, #tpu.memory_space<smem>>
    %c0_6 = arith.constant 0 : index
    %c0_7 = arith.constant 0 : index
    %c0_8 = arith.constant 0 : index
    %c0_9 = arith.constant 0 : index
    %8 = vector.load %arg1[%c0_6, %c0_7, %c0_8, %c0_9] : memref<2x5x16x16xf32, #tpu.memory_space<vmem>>, vector<1x1x16x16xf32>
    %9 = vector.shape_cast %8 : vector<1x1x16x16xf32> to vector<16x16xf32>
    %10 = vector.broadcast %7 : f32 to vector<16x16xf32>
    %11 = arith.mulf %10, %9 : vector<16x16xf32>
    %12 = arith.addf %6, %11 : vector<16x16xf32>
    %c0_10 = arith.constant 0 : index
    %c1 = arith.constant 1 : index
    %13 = memref.load %arg2[%c0_10, %c1] : memref<10x5xf32, #tpu.memory_space<smem>>
    %c0_11 = arith.constant 0 : index
    %c1_12 = arith.constant 1 : index
    %c0_13 = arith.constant 0 : index
    %c0_14 = arith.constant 0 : index
    %14 = vector.load %arg1[%c0_11, %c1_12, %c0_13, %c0_14] : memref<2x5x16x16xf32, #tpu.memory_space<vmem>>, vector<1x1x16x16xf32>
    %15 = vector.shape_cast %14 : vector<1x1x16x16xf32> to vector<16x16xf32>
    %16 = vector.broadcast %13 : f32 to vector<16x16xf32>
    %17 = arith.mulf %16, %15 : vector<16x16xf32>
    %18 = arith.addf %12, %17 : vector<16x16xf32>
    %c0_15 = arith.constant 0 : index
    %c2 = arith.constant 2 : index
    %19 = memref.load %arg2[%c0_15, %c2] : memref<10x5xf32, #tpu.memory_space<smem>>
    %c0_16 = arith.constant 0 : index
    %c2_17 = arith.constant 2 : index
    %c0_18 = arith.constant 0 : index
    %c0_19 = arith.constant 0 : index
    %20 = vector.load %arg1[%c0_16, %c2_17, %c0_18, %c0_19] : memref<2x5x16x16xf32, #tpu.memory_space<vmem>>, vector<1x1x16x16xf32>
    %21 = vector.shape_cast %20 : vector<1x1x16x16xf32> to vector<16x16xf32>
    %22 = vector.broadcast %19 : f32 to vector<16x16xf32>
    %23 = arith.mulf %22, %21 : vector<16x16xf32>
    %24 = arith.addf %18, %23 : vector<16x16xf32>
    %c0_20 = arith.constant 0 : index
    %c3 = arith.constant 3 : index
    %25 = memref.load %arg2[%c0_20, %c3] : memref<10x5xf32, #tpu.memory_space<smem>>
    %c0_21 = arith.constant 0 : index
    %c3_22 = arith.constant 3 : index
    %c0_23 = arith.constant 0 : index
    %c0_24 = arith.constant 0 : index
    %26 = vector.load %arg1[%c0_21, %c3_22, %c0_23, %c0_24] : memref<2x5x16x16xf32, #tpu.memory_space<vmem>>, vector<1x1x16x16xf32>
    %27 = vector.shape_cast %26 : vector<1x1x16x16xf32> to vector<16x16xf32>
    %28 = vector.broadcast %25 : f32 to vector<16x16xf32>
    %29 = arith.mulf %28, %27 : vector<16x16xf32>
    %30 = arith.addf %24, %29 : vector<16x16xf32>
    %c0_25 = arith.constant 0 : index
    %c4 = arith.constant 4 : index
    %31 = memref.load %arg2[%c0_25, %c4] : memref<10x5xf32, #tpu.memory_space<smem>>
    %c0_26 = arith.constant 0 : index
    %c4_27 = arith.constant 4 : index
    %c0_28 = arith.constant 0 : index
    %c0_29 = arith.constant 0 : index
    %32 = vector.load %arg1[%c0_26, %c4_27, %c0_28, %c0_29] : memref<2x5x16x16xf32, #tpu.memory_space<vmem>>, vector<1x1x16x16xf32>
    %33 = vector.shape_cast %32 : vector<1x1x16x16xf32> to vector<16x16xf32>
    %34 = vector.broadcast %31 : f32 to vector<16x16xf32>
    %35 = arith.mulf %34, %33 : vector<16x16xf32>
    %36 = arith.addf %30, %35 : vector<16x16xf32>
    %c0_30 = arith.constant 0 : index
    %c0_31 = arith.constant 0 : index
    %c1_32 = arith.constant 1 : index
    %c1_33 = arith.constant 1 : index
    %37 = vector.load %arg4[%c0_30, %c0_31, %c1_32, %c1_33] : memref<2x10x18x18xf32, #tpu.memory_space<vmem>>, vector<1x1x16x16xf32>
    %38 = vector.shape_cast %37 : vector<1x1x16x16xf32> to vector<16x16xf32>
    %39 = vector.shape_cast %36 : vector<16x16xf32> to vector<1x1x16x16xf32>
    tpu.vector_store %arg4[%c0_30, %c0_31, %c1_32, %c1_33], %39 {strides = array<i32>} : memref<2x10x18x18xf32, #tpu.memory_space<vmem>>, vector<1x1x16x16xf32>,
    %c1_34 = arith.constant 1 : index
    %40 = memref.load %arg3[%c1_34] : memref<10xf32, #tpu.memory_space<smem>>
    %cst_35 = arith.constant 1.500000e+00 : f32
    %41 = arith.subf %40, %cst_35 : f32
    %42 = vector.broadcast %41 : f32 to vector<18x18xf32>
    %c0_36 = arith.constant 0 : index
    %c1_37 = arith.constant 1 : index
    %c0_38 = arith.constant 0 : index
    %c0_39 = arith.constant 0 : index
    %43 = vector.load %arg4[%c0_36, %c1_37, %c0_38, %c0_39] : memref<2x10x18x18xf32, #tpu.memory_space<vmem>>, vector<1x1x18x18xf32>
    %44 = vector.shape_cast %43 : vector<1x1x18x18xf32> to vector<18x18xf32>
    %45 = vector.shape_cast %42 : vector<18x18xf32> to vector<1x1x18x18xf32>
    tpu.vector_store %arg4[%c0_36, %c1_37, %c0_38, %c0_39], %45 {strides = array<i32>} : memref<2x10x18x18xf32, #tpu.memory_space<vmem>>, vector<1x1x18x18xf32>,
    %46 = vector.broadcast %41 : f32 to vector<16x16xf32>
    %c1_40 = arith.constant 1 : index
    %c0_41 = arith.constant 0 : index
    %47 = memref.load %arg2[%c1_40, %c0_41] : memref<10x5xf32, #tpu.memory_space<smem>>
    %c0_42 = arith.constant 0 : index
    %c0_43 = arith.constant 0 : index
    %c0_44 = arith.constant 0 : index
    %c0_45 = arith.constant 0 : index
    %48 = vector.load %arg1[%c0_42, %c0_43, %c0_44, %c0_45] : memref<2x5x16x16xf32, #tpu.memory_space<vmem>>, vector<1x1x16x16xf32>
    %49 = vector.shape_cast %48 : vector<1x1x16x16xf32> to vector<16x16xf32>
    %50 = vector.broadcast %47 : f32 to vector<16x16xf32>
    %51 = arith.mulf %50, %49 : vector<16x16xf32>
    %52 = arith.addf %46, %51 : vector<16x16xf32>
    %c1_46 = arith.constant 1 : index
    %c1_47 = arith.constant 1 : index
    %53 = memref.load %arg2[%c1_46, %c1_47] : memref<10x5xf32, #tpu.memory_space<smem>>
    %c0_48 = arith.constant 0 : index
    %c1_49 = arith.constant 1 : index
    %c0_50 = arith.constant 0 : index
    %c0_51 = arith.constant 0 : index
    %54 = vector.load %arg1[%c0_48, %c1_49, %c0_50, %c0_51] : memref<2x5x16x16xf32, #tpu.memory_space<vmem>>, vector<1x1x16x16xf32>
    %55 = vector.shape_cast %54 : vector<1x1x16x16xf32> to vector<16x16xf32>
    %56 = vector.broadcast %53 : f32 to vector<16x16xf32>
    %57 = arith.mulf %56, %55 : vector<16x16xf32>
    %58 = arith.addf %52, %57 : vector<16x16xf32>
    %c1_52 = arith.constant 1 : index
    %c2_53 = arith.constant 2 : index
    %59 = memref.load %arg2[%c1_52, %c2_53] : memref<10x5xf32, #tpu.memory_space<smem>>
    %c0_54 = arith.constant 0 : index
    %c2_55 = arith.constant 2 : index
    %c0_56 = arith.constant 0 : index
    %c0_57 = arith.constant 0 : index
    %60 = vector.load %arg1[%c0_54, %c2_55, %c0_56, %c0_57] : memref<2x5x16x16xf32, #tpu.memory_space<vmem>>, vector<1x1x16x16xf32>
    %61 = vector.shape_cast %60 : vector<1x1x16x16xf32> to vector<16x16xf32>
    %62 = vector.broadcast %59 : f32 to vector<16x16xf32>
    %63 = arith.mulf %62, %61 : vector<16x16xf32>
    %64 = arith.addf %58, %63 : vector<16x16xf32>
    %c1_58 = arith.constant 1 : index
    %c3_59 = arith.constant 3 : index
    %65 = memref.load %arg2[%c1_58, %c3_59] : memref<10x5xf32, #tpu.memory_space<smem>>
    %c0_60 = arith.constant 0 : index
    %c3_61 = arith.constant 3 : index
    %c0_62 = arith.constant 0 : index
    %c0_63 = arith.constant 0 : index
    %66 = vector.load %arg1[%c0_60, %c3_61, %c0_62, %c0_63] : memref<2x5x16x16xf32, #tpu.memory_space<vmem>>, vector<1x1x16x16xf32>
    %67 = vector.shape_cast %66 : vector<1x1x16x16xf32> to vector<16x16xf32>
    %68 = vector.broadcast %65 : f32 to vector<16x16xf32>
    %69 = arith.mulf %68, %67 : vector<16x16xf32>
    %70 = arith.addf %64, %69 : vector<16x16xf32>
    %c1_64 = arith.constant 1 : index
    %c4_65 = arith.constant 4 : index
    %71 = memref.load %arg2[%c1_64, %c4_65] : memref<10x5xf32, #tpu.memory_space<smem>>
    %c0_66 = arith.constant 0 : index
    %c4_67 = arith.constant 4 : index
    %c0_68 = arith.constant 0 : index
    %c0_69 = arith.constant 0 : index
    %72 = vector.load %arg1[%c0_66, %c4_67, %c0_68, %c0_69] : memref<2x5x16x16xf32, #tpu.memory_space<vmem>>, vector<1x1x16x16xf32>
    %73 = vector.shape_cast %72 : vector<1x1x16x16xf32> to vector<16x16xf32>
    %74 = vector.broadcast %71 : f32 to vector<16x16xf32>
    %75 = arith.mulf %74, %73 : vector<16x16xf32>
    %76 = arith.addf %70, %75 : vector<16x16xf32>
    %c0_70 = arith.constant 0 : index
    %c1_71 = arith.constant 1 : index
    %c1_72 = arith.constant 1 : index
    %c1_73 = arith.constant 1 : index
    %77 = vector.load %arg4[%c0_70, %c1_71, %c1_72, %c1_73] : memref<2x10x18x18xf32, #tpu.memory_space<vmem>>, vector<1x1x16x16xf32>
    %78 = vector.shape_cast %77 : vector<1x1x16x16xf32> to vector<16x16xf32>
    %79 = vector.shape_cast %76 : vector<16x16xf32> to vector<1x1x16x16xf32>
    tpu.vector_store %arg4[%c0_70, %c1_71, %c1_72, %c1_73], %79 {strides = array<i32>} : memref<2x10x18x18xf32, #tpu.memory_space<vmem>>, vector<1x1x16x16xf32>,
    %c2_74 = arith.constant 2 : index
    %80 = memref.load %arg3[%c2_74] : memref<10xf32, #tpu.memory_space<smem>>
    %cst_75 = arith.constant 1.500000e+00 : f32
    %81 = arith.subf %80, %cst_75 : f32
    %82 = vector.broadcast %81 : f32 to vector<18x18xf32>
    %c0_76 = arith.constant 0 : index
    %c2_77 = arith.constant 2 : index
    %c0_78 = arith.constant 0 : index
    %c0_79 = arith.constant 0 : index
    %83 = vector.load %arg4[%c0_76, %c2_77, %c0_78, %c0_79] : memref<2x10x18x18xf32, #tpu.memory_space<vmem>>, vector<1x1x18x18xf32>
    %84 = vector.shape_cast %83 : vector<1x1x18x18xf32> to vector<18x18xf32>
    %85 = vector.shape_cast %82 : vector<18x18xf32> to vector<1x1x18x18xf32>
    tpu.vector_store %arg4[%c0_76, %c2_77, %c0_78, %c0_79], %85 {strides = array<i32>} : memref<2x10x18x18xf32, #tpu.memory_space<vmem>>, vector<1x1x18x18xf32>,
    %86 = vector.broadcast %81 : f32 to vector<16x16xf32>
    %c2_80 = arith.constant 2 : index
    %c0_81 = arith.constant 0 : index
    %87 = memref.load %arg2[%c2_80, %c0_81] : memref<10x5xf32, #tpu.memory_space<smem>>
    %c0_82 = arith.constant 0 : index
    %c0_83 = arith.constant 0 : index
    %c0_84 = arith.constant 0 : index
    %c0_85 = arith.constant 0 : index
    %88 = vector.load %arg1[%c0_82, %c0_83, %c0_84, %c0_85] : memref<2x5x16x16xf32, #tpu.memory_space<vmem>>, vector<1x1x16x16xf32>
    %89 = vector.shape_cast %88 : vector<1x1x16x16xf32> to vector<16x16xf32>
    %90 = vector.broadcast %87 : f32 to vector<16x16xf32>
    %91 = arith.mulf %90, %89 : vector<16x16xf32>
    %92 = arith.addf %86, %91 : vector<16x16xf32>
    %c2_86 = arith.constant 2 : index
    %c1_87 = arith.constant 1 : index
    %93 = memref.load %arg2[%c2_86, %c1_87] : memref<10x5xf32, #tpu.memory_space<smem>>
    %c0_88 = arith.constant 0 : index
    %c1_89 = arith.constant 1 : index
    %c0_90 = arith.constant 0 : index
    %c0_91 = arith.constant 0 : index
    %94 = vector.load %arg1[%c0_88, %c1_89, %c0_90, %c0_91] : memref<2x5x16x16xf32, #tpu.memory_space<vmem>>, vector<1x1x16x16xf32>
    %95 = vector.shape_cast %94 : vector<1x1x16x16xf32> to vector<16x16xf32>
    %96 = vector.broadcast %93 : f32 to vector<16x16xf32>
    %97 = arith.mulf %96, %95 : vector<16x16xf32>
    %98 = arith.addf %92, %97 : vector<16x16xf32>
    %c2_92 = arith.constant 2 : index
    %c2_93 = arith.constant 2 : index
    %99 = memref.load %arg2[%c2_92, %c2_93] : memref<10x5xf32, #tpu.memory_space<smem>>
    %c0_94 = arith.constant 0 : index
    %c2_95 = arith.constant 2 : index
    %c0_96 = arith.constant 0 : index
    %c0_97 = arith.constant 0 : index
    %100 = vector.load %arg1[%c0_94, %c2_95, %c0_96, %c0_97] : memref<2x5x16x16xf32, #tpu.memory_space<vmem>>, vector<1x1x16x16xf32>
    %101 = vector.shape_cast %100 : vector<1x1x16x16xf32> to vector<16x16xf32>
    %102 = vector.broadcast %99 : f32 to vector<16x16xf32>
    %103 = arith.mulf %102, %101 : vector<16x16xf32>
    %104 = arith.addf %98, %103 : vector<16x16xf32>
    %c2_98 = arith.constant 2 : index
    %c3_99 = arith.constant 3 : index
    %105 = memref.load %arg2[%c2_98, %c3_99] : memref<10x5xf32, #tpu.memory_space<smem>>
    %c0_100 = arith.constant 0 : index
    %c3_101 = arith.constant 3 : index
    %c0_102 = arith.constant 0 : index
    %c0_103 = arith.constant 0 : index
    %106 = vector.load %arg1[%c0_100, %c3_101, %c0_102, %c0_103] : memref<2x5x16x16xf32, #tpu.memory_space<vmem>>, vector<1x1x16x16xf32>
    %107 = vector.shape_cast %106 : vector<1x1x16x16xf32> to vector<16x16xf32>
    %108 = vector.broadcast %105 : f32 to vector<16x16xf32>
    %109 = arith.mulf %108, %107 : vector<16x16xf32>
    %110 = arith.addf %104, %109 : vector<16x16xf32>
    %c2_104 = arith.constant 2 : index
    %c4_105 = arith.constant 4 : index
    %111 = memref.load %arg2[%c2_104, %c4_105] : memref<10x5xf32, #tpu.memory_space<smem>>
    %c0_106 = arith.constant 0 : index
    %c4_107 = arith.constant 4 : index
    %c0_108 = arith.constant 0 : index
    %c0_109 = arith.constant 0 : index
    %112 = vector.load %arg1[%c0_106, %c4_107, %c0_108, %c0_109] : memref<2x5x16x16xf32, #tpu.memory_space<vmem>>, vector<1x1x16x16xf32>
    %113 = vector.shape_cast %112 : vector<1x1x16x16xf32> to vector<16x16xf32>
    %114 = vector.broadcast %111 : f32 to vector<16x16xf32>
    %115 = arith.mulf %114, %113 : vector<16x16xf32>
    %116 = arith.addf %110, %115 : vector<16x16xf32>
    %c0_110 = arith.constant 0 : index
    %c2_111 = arith.constant 2 : index
    %c1_112 = arith.constant 1 : index
    %c1_113 = arith.constant 1 : index
    %117 = vector.load %arg4[%c0_110, %c2_111, %c1_112, %c1_113] : memref<2x10x18x18xf32, #tpu.memory_space<vmem>>, vector<1x1x16x16xf32>
    %118 = vector.shape_cast %117 : vector<1x1x16x16xf32> to vector<16x16xf32>
    %119 = vector.shape_cast %116 : vector<16x16xf32> to vector<1x1x16x16xf32>
    tpu.vector_store %arg4[%c0_110, %c2_111, %c1_112, %c1_113], %119 {strides = array<i32>} : memref<2x10x18x18xf32, #tpu.memory_space<vmem>>, vector<1x1x16x16xf32>,
    %c3_114 = arith.constant 3 : index
    %120 = memref.load %arg3[%c3_114] : memref<10xf32, #tpu.memory_space<smem>>
    %cst_115 = arith.constant 1.500000e+00 : f32
    %121 = arith.subf %120, %cst_115 : f32
    %122 = vector.broadcast %121 : f32 to vector<18x18xf32>
    %c0_116 = arith.constant 0 : index
    %c3_117 = arith.constant 3 : index
    %c0_118 = arith.constant 0 : index
    %c0_119 = arith.constant 0 : index
    %123 = vector.load %arg4[%c0_116, %c3_117, %c0_118, %c0_119] : memref<2x10x18x18xf32, #tpu.memory_space<vmem>>, vector<1x1x18x18xf32>
    %124 = vector.shape_cast %123 : vector<1x1x18x18xf32> to vector<18x18xf32>
    %125 = vector.shape_cast %122 : vector<18x18xf32> to vector<1x1x18x18xf32>
    tpu.vector_store %arg4[%c0_116, %c3_117, %c0_118, %c0_119], %125 {strides = array<i32>} : memref<2x10x18x18xf32, #tpu.memory_space<vmem>>, vector<1x1x18x18xf32>,
    %126 = vector.broadcast %121 : f32 to vector<16x16xf32>
    %c3_120 = arith.constant 3 : index
    %c0_121 = arith.constant 0 : index
    %127 = memref.load %arg2[%c3_120, %c0_121] : memref<10x5xf32, #tpu.memory_space<smem>>
    %c0_122 = arith.constant 0 : index
    %c0_123 = arith.constant 0 : index
    %c0_124 = arith.constant 0 : index
    %c0_125 = arith.constant 0 : index
    %128 = vector.load %arg1[%c0_122, %c0_123, %c0_124, %c0_125] : memref<2x5x16x16xf32, #tpu.memory_space<vmem>>, vector<1x1x16x16xf32>
    %129 = vector.shape_cast %128 : vector<1x1x16x16xf32> to vector<16x16xf32>
    %130 = vector.broadcast %127 : f32 to vector<16x16xf32>
    %131 = arith.mulf %130, %129 : vector<16x16xf32>
    %132 = arith.addf %126, %131 : vector<16x16xf32>
    %c3_126 = arith.constant 3 : index
    %c1_127 = arith.constant 1 : index
    %133 = memref.load %arg2[%c3_126, %c1_127] : memref<10x5xf32, #tpu.memory_space<smem>>
    %c0_128 = arith.constant 0 : index
    %c1_129 = arith.constant 1 : index
    %c0_130 = arith.constant 0 : index
    %c0_131 = arith.constant 0 : index
    %134 = vector.load %arg1[%c0_128, %c1_129, %c0_130, %c0_131] : memref<2x5x16x16xf32, #tpu.memory_space<vmem>>, vector<1x1x16x16xf32>
    %135 = vector.shape_cast %134 : vector<1x1x16x16xf32> to vector<16x16xf32>
    %136 = vector.broadcast %133 : f32 to vector<16x16xf32>
    %137 = arith.mulf %136, %135 : vector<16x16xf32>
    %138 = arith.addf %132, %137 : vector<16x16xf32>
    %c3_132 = arith.constant 3 : index
    %c2_133 = arith.constant 2 : index
    %139 = memref.load %arg2[%c3_132, %c2_133] : memref<10x5xf32, #tpu.memory_space<smem>>
    %c0_134 = arith.constant 0 : index
    %c2_135 = arith.constant 2 : index
    %c0_136 = arith.constant 0 : index
    %c0_137 = arith.constant 0 : index
    %140 = vector.load %arg1[%c0_134, %c2_135, %c0_136, %c0_137] : memref<2x5x16x16xf32, #tpu.memory_space<vmem>>, vector<1x1x16x16xf32>
    %141 = vector.shape_cast %140 : vector<1x1x16x16xf32> to vector<16x16xf32>
    %142 = vector.broadcast %139 : f32 to vector<16x16xf32>
    %143 = arith.mulf %142, %141 : vector<16x16xf32>
    %144 = arith.addf %138, %143 : vector<16x16xf32>
    %c3_138 = arith.constant 3 : index
    %c3_139 = arith.constant 3 : index
    %145 = memref.load %arg2[%c3_138, %c3_139] : memref<10x5xf32, #tpu.memory_space<smem>>
    %c0_140 = arith.constant 0 : index
    %c3_141 = arith.constant 3 : index
    %c0_142 = arith.constant 0 : index
    %c0_143 = arith.constant 0 : index
    %146 = vector.load %arg1[%c0_140, %c3_141, %c0_142, %c0_143] : memref<2x5x16x16xf32, #tpu.memory_space<vmem>>, vector<1x1x16x16xf32>
    %147 = vector.shape_cast %146 : vector<1x1x16x16xf32> to vector<16x16xf32>
    %148 = vector.broadcast %145 : f32 to vector<16x16xf32>
    %149 = arith.mulf %148, %147 : vector<16x16xf32>
    %150 = arith.addf %144, %149 : vector<16x16xf32>
    %c3_144 = arith.constant 3 : index
    %c4_145 = arith.constant 4 : index
    %151 = memref.load %arg2[%c3_144, %c4_145] : memref<10x5xf32, #tpu.memory_space<smem>>
    %c0_146 = arith.constant 0 : index
    %c4_147 = arith.constant 4 : index
    %c0_148 = arith.constant 0 : index
    %c0_149 = arith.constant 0 : index
    %152 = vector.load %arg1[%c0_146, %c4_147, %c0_148, %c0_149] : memref<2x5x16x16xf32, #tpu.memory_space<vmem>>, vector<1x1x16x16xf32>
    %153 = vector.shape_cast %152 : vector<1x1x16x16xf32> to vector<16x16xf32>
    %154 = vector.broadcast %151 : f32 to vector<16x16xf32>
    %155 = arith.mulf %154, %153 : vector<16x16xf32>
    %156 = arith.addf %150, %155 : vector<16x16xf32>
    %c0_150 = arith.constant 0 : index
    %c3_151 = arith.constant 3 : index
    %c1_152 = arith.constant 1 : index
    %c1_153 = arith.constant 1 : index
    %157 = vector.load %arg4[%c0_150, %c3_151, %c1_152, %c1_153] : memref<2x10x18x18xf32, #tpu.memory_space<vmem>>, vector<1x1x16x16xf32>
    %158 = vector.shape_cast %157 : vector<1x1x16x16xf32> to vector<16x16xf32>
    %159 = vector.shape_cast %156 : vector<16x16xf32> to vector<1x1x16x16xf32>
    tpu.vector_store %arg4[%c0_150, %c3_151, %c1_152, %c1_153], %159 {strides = array<i32>} : memref<2x10x18x18xf32, #tpu.memory_space<vmem>>, vector<1x1x16x16xf32>,
    %c4_154 = arith.constant 4 : index
    %160 = memref.load %arg3[%c4_154] : memref<10xf32, #tpu.memory_space<smem>>
    %cst_155 = arith.constant 1.500000e+00 : f32
    %161 = arith.subf %160, %cst_155 : f32
    %162 = vector.broadcast %161 : f32 to vector<18x18xf32>
    %c0_156 = arith.constant 0 : index
    %c4_157 = arith.constant 4 : index
    %c0_158 = arith.constant 0 : index
    %c0_159 = arith.constant 0 : index
    %163 = vector.load %arg4[%c0_156, %c4_157, %c0_158, %c0_159] : memref<2x10x18x18xf32, #tpu.memory_space<vmem>>, vector<1x1x18x18xf32>
    %164 = vector.shape_cast %163 : vector<1x1x18x18xf32> to vector<18x18xf32>
    %165 = vector.shape_cast %162 : vector<18x18xf32> to vector<1x1x18x18xf32>
    tpu.vector_store %arg4[%c0_156, %c4_157, %c0_158, %c0_159], %165 {strides = array<i32>} : memref<2x10x18x18xf32, #tpu.memory_space<vmem>>, vector<1x1x18x18xf32>,
    %166 = vector.broadcast %161 : f32 to vector<16x16xf32>
    %c4_160 = arith.constant 4 : index
    %c0_161 = arith.constant 0 : index
    %167 = memref.load %arg2[%c4_160, %c0_161] : memref<10x5xf32, #tpu.memory_space<smem>>
    %c0_162 = arith.constant 0 : index
    %c0_163 = arith.constant 0 : index
    %c0_164 = arith.constant 0 : index
    %c0_165 = arith.constant 0 : index
    %168 = vector.load %arg1[%c0_162, %c0_163, %c0_164, %c0_165] : memref<2x5x16x16xf32, #tpu.memory_space<vmem>>, vector<1x1x16x16xf32>
    %169 = vector.shape_cast %168 : vector<1x1x16x16xf32> to vector<16x16xf32>
    %170 = vector.broadcast %167 : f32 to vector<16x16xf32>
    %171 = arith.mulf %170, %169 : vector<16x16xf32>
    %172 = arith.addf %166, %171 : vector<16x16xf32>
    %c4_166 = arith.constant 4 : index
    %c1_167 = arith.constant 1 : index
    %173 = memref.load %arg2[%c4_166, %c1_167] : memref<10x5xf32, #tpu.memory_space<smem>>
    %c0_168 = arith.constant 0 : index
    %c1_169 = arith.constant 1 : index
    %c0_170 = arith.constant 0 : index
    %c0_171 = arith.constant 0 : index
    %174 = vector.load %arg1[%c0_168, %c1_169, %c0_170, %c0_171] : memref<2x5x16x16xf32, #tpu.memory_space<vmem>>, vector<1x1x16x16xf32>
    %175 = vector.shape_cast %174 : vector<1x1x16x16xf32> to vector<16x16xf32>
    %176 = vector.broadcast %173 : f32 to vector<16x16xf32>
    %177 = arith.mulf %176, %175 : vector<16x16xf32>
    %178 = arith.addf %172, %177 : vector<16x16xf32>
    %c4_172 = arith.constant 4 : index
    %c2_173 = arith.constant 2 : index
    %179 = memref.load %arg2[%c4_172, %c2_173] : memref<10x5xf32, #tpu.memory_space<smem>>
    %c0_174 = arith.constant 0 : index
    %c2_175 = arith.constant 2 : index
    %c0_176 = arith.constant 0 : index
    %c0_177 = arith.constant 0 : index
    %180 = vector.load %arg1[%c0_174, %c2_175, %c0_176, %c0_177] : memref<2x5x16x16xf32, #tpu.memory_space<vmem>>, vector<1x1x16x16xf32>
    %181 = vector.shape_cast %180 : vector<1x1x16x16xf32> to vector<16x16xf32>
    %182 = vector.broadcast %179 : f32 to vector<16x16xf32>
    %183 = arith.mulf %182, %181 : vector<16x16xf32>
    %184 = arith.addf %178, %183 : vector<16x16xf32>
    %c4_178 = arith.constant 4 : index
    %c3_179 = arith.constant 3 : index
    %185 = memref.load %arg2[%c4_178, %c3_179] : memref<10x5xf32, #tpu.memory_space<smem>>
    %c0_180 = arith.constant 0 : index
    %c3_181 = arith.constant 3 : index
    %c0_182 = arith.constant 0 : index
    %c0_183 = arith.constant 0 : index
    %186 = vector.load %arg1[%c0_180, %c3_181, %c0_182, %c0_183] : memref<2x5x16x16xf32, #tpu.memory_space<vmem>>, vector<1x1x16x16xf32>
    %187 = vector.shape_cast %186 : vector<1x1x16x16xf32> to vector<16x16xf32>
    %188 = vector.broadcast %185 : f32 to vector<16x16xf32>
    %189 = arith.mulf %188, %187 : vector<16x16xf32>
    %190 = arith.addf %184, %189 : vector<16x16xf32>
    %c4_184 = arith.constant 4 : index
    %c4_185 = arith.constant 4 : index
    %191 = memref.load %arg2[%c4_184, %c4_185] : memref<10x5xf32, #tpu.memory_space<smem>>
    %c0_186 = arith.constant 0 : index
    %c4_187 = arith.constant 4 : index
    %c0_188 = arith.constant 0 : index
    %c0_189 = arith.constant 0 : index
    %192 = vector.load %arg1[%c0_186, %c4_187, %c0_188, %c0_189] : memref<2x5x16x16xf32, #tpu.memory_space<vmem>>, vector<1x1x16x16xf32>
    %193 = vector.shape_cast %192 : vector<1x1x16x16xf32> to vector<16x16xf32>
    %194 = vector.broadcast %191 : f32 to vector<16x16xf32>
    %195 = arith.mulf %194, %193 : vector<16x16xf32>
    %196 = arith.addf %190, %195 : vector<16x16xf32>
    %c0_190 = arith.constant 0 : index
    %c4_191 = arith.constant 4 : index
    %c1_192 = arith.constant 1 : index
    %c1_193 = arith.constant 1 : index
    %197 = vector.load %arg4[%c0_190, %c4_191, %c1_192, %c1_193] : memref<2x10x18x18xf32, #tpu.memory_space<vmem>>, vector<1x1x16x16xf32>
    %198 = vector.shape_cast %197 : vector<1x1x16x16xf32> to vector<16x16xf32>
    %199 = vector.shape_cast %196 : vector<16x16xf32> to vector<1x1x16x16xf32>
    tpu.vector_store %arg4[%c0_190, %c4_191, %c1_192, %c1_193], %199 {strides = array<i32>} : memref<2x10x18x18xf32, #tpu.memory_space<vmem>>, vector<1x1x16x16xf32>,
    %c5 = arith.constant 5 : index
    %200 = memref.load %arg3[%c5] : memref<10xf32, #tpu.memory_space<smem>>
    %cst_194 = arith.constant 1.500000e+00 : f32
    %201 = arith.subf %200, %cst_194 : f32
    %202 = vector.broadcast %201 : f32 to vector<18x18xf32>
    %c0_195 = arith.constant 0 : index
    %c5_196 = arith.constant 5 : index
    %c0_197 = arith.constant 0 : index
    %c0_198 = arith.constant 0 : index
    %203 = vector.load %arg4[%c0_195, %c5_196, %c0_197, %c0_198] : memref<2x10x18x18xf32, #tpu.memory_space<vmem>>, vector<1x1x18x18xf32>
    %204 = vector.shape_cast %203 : vector<1x1x18x18xf32> to vector<18x18xf32>
    %205 = vector.shape_cast %202 : vector<18x18xf32> to vector<1x1x18x18xf32>
    tpu.vector_store %arg4[%c0_195, %c5_196, %c0_197, %c0_198], %205 {strides = array<i32>} : memref<2x10x18x18xf32, #tpu.memory_space<vmem>>, vector<1x1x18x18xf32>,
    %206 = vector.broadcast %201 : f32 to vector<16x16xf32>
    %c5_199 = arith.constant 5 : index
    %c0_200 = arith.constant 0 : index
    %207 = memref.load %arg2[%c5_199, %c0_200] : memref<10x5xf32, #tpu.memory_space<smem>>
    %c0_201 = arith.constant 0 : index
    %c0_202 = arith.constant 0 : index
    %c0_203 = arith.constant 0 : index
    %c0_204 = arith.constant 0 : index
    %208 = vector.load %arg1[%c0_201, %c0_202, %c0_203, %c0_204] : memref<2x5x16x16xf32, #tpu.memory_space<vmem>>, vector<1x1x16x16xf32>
    %209 = vector.shape_cast %208 : vector<1x1x16x16xf32> to vector<16x16xf32>
    %210 = vector.broadcast %207 : f32 to vector<16x16xf32>
    %211 = arith.mulf %210, %209 : vector<16x16xf32>
    %212 = arith.addf %206, %211 : vector<16x16xf32>
    %c5_205 = arith.constant 5 : index
    %c1_206 = arith.constant 1 : index
    %213 = memref.load %arg2[%c5_205, %c1_206] : memref<10x5xf32, #tpu.memory_space<smem>>
    %c0_207 = arith.constant 0 : index
    %c1_208 = arith.constant 1 : index
    %c0_209 = arith.constant 0 : index
    %c0_210 = arith.constant 0 : index
    %214 = vector.load %arg1[%c0_207, %c1_208, %c0_209, %c0_210] : memref<2x5x16x16xf32, #tpu.memory_space<vmem>>, vector<1x1x16x16xf32>
    %215 = vector.shape_cast %214 : vector<1x1x16x16xf32> to vector<16x16xf32>
    %216 = vector.broadcast %213 : f32 to vector<16x16xf32>
    %217 = arith.mulf %216, %215 : vector<16x16xf32>
    %218 = arith.addf %212, %217 : vector<16x16xf32>
    %c5_211 = arith.constant 5 : index
    %c2_212 = arith.constant 2 : index
    %219 = memref.load %arg2[%c5_211, %c2_212] : memref<10x5xf32, #tpu.memory_space<smem>>
    %c0_213 = arith.constant 0 : index
    %c2_214 = arith.constant 2 : index
    %c0_215 = arith.constant 0 : index
    %c0_216 = arith.constant 0 : index
    %220 = vector.load %arg1[%c0_213, %c2_214, %c0_215, %c0_216] : memref<2x5x16x16xf32, #tpu.memory_space<vmem>>, vector<1x1x16x16xf32>
    %221 = vector.shape_cast %220 : vector<1x1x16x16xf32> to vector<16x16xf32>
    %222 = vector.broadcast %219 : f32 to vector<16x16xf32>
    %223 = arith.mulf %222, %221 : vector<16x16xf32>
    %224 = arith.addf %218, %223 : vector<16x16xf32>
    %c5_217 = arith.constant 5 : index
    %c3_218 = arith.constant 3 : index
    %225 = memref.load %arg2[%c5_217, %c3_218] : memref<10x5xf32, #tpu.memory_space<smem>>
    %c0_219 = arith.constant 0 : index
    %c3_220 = arith.constant 3 : index
    %c0_221 = arith.constant 0 : index
    %c0_222 = arith.constant 0 : index
    %226 = vector.load %arg1[%c0_219, %c3_220, %c0_221, %c0_222] : memref<2x5x16x16xf32, #tpu.memory_space<vmem>>, vector<1x1x16x16xf32>
    %227 = vector.shape_cast %226 : vector<1x1x16x16xf32> to vector<16x16xf32>
    %228 = vector.broadcast %225 : f32 to vector<16x16xf32>
    %229 = arith.mulf %228, %227 : vector<16x16xf32>
    %230 = arith.addf %224, %229 : vector<16x16xf32>
    %c5_223 = arith.constant 5 : index
    %c4_224 = arith.constant 4 : index
    %231 = memref.load %arg2[%c5_223, %c4_224] : memref<10x5xf32, #tpu.memory_space<smem>>
    %c0_225 = arith.constant 0 : index
    %c4_226 = arith.constant 4 : index
    %c0_227 = arith.constant 0 : index
    %c0_228 = arith.constant 0 : index
    %232 = vector.load %arg1[%c0_225, %c4_226, %c0_227, %c0_228] : memref<2x5x16x16xf32, #tpu.memory_space<vmem>>, vector<1x1x16x16xf32>
    %233 = vector.shape_cast %232 : vector<1x1x16x16xf32> to vector<16x16xf32>
    %234 = vector.broadcast %231 : f32 to vector<16x16xf32>
    %235 = arith.mulf %234, %233 : vector<16x16xf32>
    %236 = arith.addf %230, %235 : vector<16x16xf32>
    %c0_229 = arith.constant 0 : index
    %c5_230 = arith.constant 5 : index
    %c1_231 = arith.constant 1 : index
    %c1_232 = arith.constant 1 : index
    %237 = vector.load %arg4[%c0_229, %c5_230, %c1_231, %c1_232] : memref<2x10x18x18xf32, #tpu.memory_space<vmem>>, vector<1x1x16x16xf32>
    %238 = vector.shape_cast %237 : vector<1x1x16x16xf32> to vector<16x16xf32>
    %239 = vector.shape_cast %236 : vector<16x16xf32> to vector<1x1x16x16xf32>
    tpu.vector_store %arg4[%c0_229, %c5_230, %c1_231, %c1_232], %239 {strides = array<i32>} : memref<2x10x18x18xf32, #tpu.memory_space<vmem>>, vector<1x1x16x16xf32>,
    %c6 = arith.constant 6 : index
    %240 = memref.load %arg3[%c6] : memref<10xf32, #tpu.memory_space<smem>>
    %cst_233 = arith.constant 1.500000e+00 : f32
    %241 = arith.subf %240, %cst_233 : f32
    %242 = vector.broadcast %241 : f32 to vector<18x18xf32>
    %c0_234 = arith.constant 0 : index
    %c6_235 = arith.constant 6 : index
    %c0_236 = arith.constant 0 : index
    %c0_237 = arith.constant 0 : index
    %243 = vector.load %arg4[%c0_234, %c6_235, %c0_236, %c0_237] : memref<2x10x18x18xf32, #tpu.memory_space<vmem>>, vector<1x1x18x18xf32>
    %244 = vector.shape_cast %243 : vector<1x1x18x18xf32> to vector<18x18xf32>
    %245 = vector.shape_cast %242 : vector<18x18xf32> to vector<1x1x18x18xf32>
    tpu.vector_store %arg4[%c0_234, %c6_235, %c0_236, %c0_237], %245 {strides = array<i32>} : memref<2x10x18x18xf32, #tpu.memory_space<vmem>>, vector<1x1x18x18xf32>,
    %246 = vector.broadcast %241 : f32 to vector<16x16xf32>
    %c6_238 = arith.constant 6 : index
    %c0_239 = arith.constant 0 : index
    %247 = memref.load %arg2[%c6_238, %c0_239] : memref<10x5xf32, #tpu.memory_space<smem>>
    %c0_240 = arith.constant 0 : index
    %c0_241 = arith.constant 0 : index
    %c0_242 = arith.constant 0 : index
    %c0_243 = arith.constant 0 : index
    %248 = vector.load %arg1[%c0_240, %c0_241, %c0_242, %c0_243] : memref<2x5x16x16xf32, #tpu.memory_space<vmem>>, vector<1x1x16x16xf32>
    %249 = vector.shape_cast %248 : vector<1x1x16x16xf32> to vector<16x16xf32>
    %250 = vector.broadcast %247 : f32 to vector<16x16xf32>
    %251 = arith.mulf %250, %249 : vector<16x16xf32>
    %252 = arith.addf %246, %251 : vector<16x16xf32>
    %c6_244 = arith.constant 6 : index
    %c1_245 = arith.constant 1 : index
    %253 = memref.load %arg2[%c6_244, %c1_245] : memref<10x5xf32, #tpu.memory_space<smem>>
    %c0_246 = arith.constant 0 : index
    %c1_247 = arith.constant 1 : index
    %c0_248 = arith.constant 0 : index
    %c0_249 = arith.constant 0 : index
    %254 = vector.load %arg1[%c0_246, %c1_247, %c0_248, %c0_249] : memref<2x5x16x16xf32, #tpu.memory_space<vmem>>, vector<1x1x16x16xf32>
    %255 = vector.shape_cast %254 : vector<1x1x16x16xf32> to vector<16x16xf32>
    %256 = vector.broadcast %253 : f32 to vector<16x16xf32>
    %257 = arith.mulf %256, %255 : vector<16x16xf32>
    %258 = arith.addf %252, %257 : vector<16x16xf32>
    %c6_250 = arith.constant 6 : index
    %c2_251 = arith.constant 2 : index
    %259 = memref.load %arg2[%c6_250, %c2_251] : memref<10x5xf32, #tpu.memory_space<smem>>
    %c0_252 = arith.constant 0 : index
    %c2_253 = arith.constant 2 : index
    %c0_254 = arith.constant 0 : index
    %c0_255 = arith.constant 0 : index
    %260 = vector.load %arg1[%c0_252, %c2_253, %c0_254, %c0_255] : memref<2x5x16x16xf32, #tpu.memory_space<vmem>>, vector<1x1x16x16xf32>
    %261 = vector.shape_cast %260 : vector<1x1x16x16xf32> to vector<16x16xf32>
    %262 = vector.broadcast %259 : f32 to vector<16x16xf32>
    %263 = arith.mulf %262, %261 : vector<16x16xf32>
    %264 = arith.addf %258, %263 : vector<16x16xf32>
    %c6_256 = arith.constant 6 : index
    %c3_257 = arith.constant 3 : index
    %265 = memref.load %arg2[%c6_256, %c3_257] : memref<10x5xf32, #tpu.memory_space<smem>>
    %c0_258 = arith.constant 0 : index
    %c3_259 = arith.constant 3 : index
    %c0_260 = arith.constant 0 : index
    %c0_261 = arith.constant 0 : index
    %266 = vector.load %arg1[%c0_258, %c3_259, %c0_260, %c0_261] : memref<2x5x16x16xf32, #tpu.memory_space<vmem>>, vector<1x1x16x16xf32>
    %267 = vector.shape_cast %266 : vector<1x1x16x16xf32> to vector<16x16xf32>
    %268 = vector.broadcast %265 : f32 to vector<16x16xf32>
    %269 = arith.mulf %268, %267 : vector<16x16xf32>
    %270 = arith.addf %264, %269 : vector<16x16xf32>
    %c6_262 = arith.constant 6 : index
    %c4_263 = arith.constant 4 : index
    %271 = memref.load %arg2[%c6_262, %c4_263] : memref<10x5xf32, #tpu.memory_space<smem>>
    %c0_264 = arith.constant 0 : index
    %c4_265 = arith.constant 4 : index
    %c0_266 = arith.constant 0 : index
    %c0_267 = arith.constant 0 : index
    %272 = vector.load %arg1[%c0_264, %c4_265, %c0_266, %c0_267] : memref<2x5x16x16xf32, #tpu.memory_space<vmem>>, vector<1x1x16x16xf32>
    %273 = vector.shape_cast %272 : vector<1x1x16x16xf32> to vector<16x16xf32>
    %274 = vector.broadcast %271 : f32 to vector<16x16xf32>
    %275 = arith.mulf %274, %273 : vector<16x16xf32>
    %276 = arith.addf %270, %275 : vector<16x16xf32>
    %c0_268 = arith.constant 0 : index
    %c6_269 = arith.constant 6 : index
    %c1_270 = arith.constant 1 : index
    %c1_271 = arith.constant 1 : index
    %277 = vector.load %arg4[%c0_268, %c6_269, %c1_270, %c1_271] : memref<2x10x18x18xf32, #tpu.memory_space<vmem>>, vector<1x1x16x16xf32>
    %278 = vector.shape_cast %277 : vector<1x1x16x16xf32> to vector<16x16xf32>
    %279 = vector.shape_cast %276 : vector<16x16xf32> to vector<1x1x16x16xf32>
    tpu.vector_store %arg4[%c0_268, %c6_269, %c1_270, %c1_271], %279 {strides = array<i32>} : memref<2x10x18x18xf32, #tpu.memory_space<vmem>>, vector<1x1x16x16xf32>,
    %c7 = arith.constant 7 : index
    %280 = memref.load %arg3[%c7] : memref<10xf32, #tpu.memory_space<smem>>
    %cst_272 = arith.constant 1.500000e+00 : f32
    %281 = arith.subf %280, %cst_272 : f32
    %282 = vector.broadcast %281 : f32 to vector<18x18xf32>
    %c0_273 = arith.constant 0 : index
    %c7_274 = arith.constant 7 : index
    %c0_275 = arith.constant 0 : index
    %c0_276 = arith.constant 0 : index
    %283 = vector.load %arg4[%c0_273, %c7_274, %c0_275, %c0_276] : memref<2x10x18x18xf32, #tpu.memory_space<vmem>>, vector<1x1x18x18xf32>
    %284 = vector.shape_cast %283 : vector<1x1x18x18xf32> to vector<18x18xf32>
    %285 = vector.shape_cast %282 : vector<18x18xf32> to vector<1x1x18x18xf32>
    tpu.vector_store %arg4[%c0_273, %c7_274, %c0_275, %c0_276], %285 {strides = array<i32>} : memref<2x10x18x18xf32, #tpu.memory_space<vmem>>, vector<1x1x18x18xf32>,
    %286 = vector.broadcast %281 : f32 to vector<16x16xf32>
    %c7_277 = arith.constant 7 : index
    %c0_278 = arith.constant 0 : index
    %287 = memref.load %arg2[%c7_277, %c0_278] : memref<10x5xf32, #tpu.memory_space<smem>>
    %c0_279 = arith.constant 0 : index
    %c0_280 = arith.constant 0 : index
    %c0_281 = arith.constant 0 : index
    %c0_282 = arith.constant 0 : index
    %288 = vector.load %arg1[%c0_279, %c0_280, %c0_281, %c0_282] : memref<2x5x16x16xf32, #tpu.memory_space<vmem>>, vector<1x1x16x16xf32>
    %289 = vector.shape_cast %288 : vector<1x1x16x16xf32> to vector<16x16xf32>
    %290 = vector.broadcast %287 : f32 to vector<16x16xf32>
    %291 = arith.mulf %290, %289 : vector<16x16xf32>
    %292 = arith.addf %286, %291 : vector<16x16xf32>
    %c7_283 = arith.constant 7 : index
    %c1_284 = arith.constant 1 : index
    %293 = memref.load %arg2[%c7_283, %c1_284] : memref<10x5xf32, #tpu.memory_space<smem>>
    %c0_285 = arith.constant 0 : index
    %c1_286 = arith.constant 1 : index
    %c0_287 = arith.constant 0 : index
    %c0_288 = arith.constant 0 : index
    %294 = vector.load %arg1[%c0_285, %c1_286, %c0_287, %c0_288] : memref<2x5x16x16xf32, #tpu.memory_space<vmem>>, vector<1x1x16x16xf32>
    %295 = vector.shape_cast %294 : vector<1x1x16x16xf32> to vector<16x16xf32>
    %296 = vector.broadcast %293 : f32 to vector<16x16xf32>
    %297 = arith.mulf %296, %295 : vector<16x16xf32>
    %298 = arith.addf %292, %297 : vector<16x16xf32>
    %c7_289 = arith.constant 7 : index
    %c2_290 = arith.constant 2 : index
    %299 = memref.load %arg2[%c7_289, %c2_290] : memref<10x5xf32, #tpu.memory_space<smem>>
    %c0_291 = arith.constant 0 : index
    %c2_292 = arith.constant 2 : index
    %c0_293 = arith.constant 0 : index
    %c0_294 = arith.constant 0 : index
    %300 = vector.load %arg1[%c0_291, %c2_292, %c0_293, %c0_294] : memref<2x5x16x16xf32, #tpu.memory_space<vmem>>, vector<1x1x16x16xf32>
    %301 = vector.shape_cast %300 : vector<1x1x16x16xf32> to vector<16x16xf32>
    %302 = vector.broadcast %299 : f32 to vector<16x16xf32>
    %303 = arith.mulf %302, %301 : vector<16x16xf32>
    %304 = arith.addf %298, %303 : vector<16x16xf32>
    %c7_295 = arith.constant 7 : index
    %c3_296 = arith.constant 3 : index
    %305 = memref.load %arg2[%c7_295, %c3_296] : memref<10x5xf32, #tpu.memory_space<smem>>
    %c0_297 = arith.constant 0 : index
    %c3_298 = arith.constant 3 : index
    %c0_299 = arith.constant 0 : index
    %c0_300 = arith.constant 0 : index
    %306 = vector.load %arg1[%c0_297, %c3_298, %c0_299, %c0_300] : memref<2x5x16x16xf32, #tpu.memory_space<vmem>>, vector<1x1x16x16xf32>
    %307 = vector.shape_cast %306 : vector<1x1x16x16xf32> to vector<16x16xf32>
    %308 = vector.broadcast %305 : f32 to vector<16x16xf32>
    %309 = arith.mulf %308, %307 : vector<16x16xf32>
    %310 = arith.addf %304, %309 : vector<16x16xf32>
    %c7_301 = arith.constant 7 : index
    %c4_302 = arith.constant 4 : index
    %311 = memref.load %arg2[%c7_301, %c4_302] : memref<10x5xf32, #tpu.memory_space<smem>>
    %c0_303 = arith.constant 0 : index
    %c4_304 = arith.constant 4 : index
    %c0_305 = arith.constant 0 : index
    %c0_306 = arith.constant 0 : index
    %312 = vector.load %arg1[%c0_303, %c4_304, %c0_305, %c0_306] : memref<2x5x16x16xf32, #tpu.memory_space<vmem>>, vector<1x1x16x16xf32>
    %313 = vector.shape_cast %312 : vector<1x1x16x16xf32> to vector<16x16xf32>
    %314 = vector.broadcast %311 : f32 to vector<16x16xf32>
    %315 = arith.mulf %314, %313 : vector<16x16xf32>
    %316 = arith.addf %310, %315 : vector<16x16xf32>
    %c0_307 = arith.constant 0 : index
    %c7_308 = arith.constant 7 : index
    %c1_309 = arith.constant 1 : index
    %c1_310 = arith.constant 1 : index
    %317 = vector.load %arg4[%c0_307, %c7_308, %c1_309, %c1_310] : memref<2x10x18x18xf32, #tpu.memory_space<vmem>>, vector<1x1x16x16xf32>
    %318 = vector.shape_cast %317 : vector<1x1x16x16xf32> to vector<16x16xf32>
    %319 = vector.shape_cast %316 : vector<16x16xf32> to vector<1x1x16x16xf32>
    tpu.vector_store %arg4[%c0_307, %c7_308, %c1_309, %c1_310], %319 {strides = array<i32>} : memref<2x10x18x18xf32, #tpu.memory_space<vmem>>, vector<1x1x16x16xf32>,
    %c8 = arith.constant 8 : index
    %320 = memref.load %arg3[%c8] : memref<10xf32, #tpu.memory_space<smem>>
    %cst_311 = arith.constant 1.500000e+00 : f32
    %321 = arith.subf %320, %cst_311 : f32
    %322 = vector.broadcast %321 : f32 to vector<18x18xf32>
    %c0_312 = arith.constant 0 : index
    %c8_313 = arith.constant 8 : index
    %c0_314 = arith.constant 0 : index
    %c0_315 = arith.constant 0 : index
    %323 = vector.load %arg4[%c0_312, %c8_313, %c0_314, %c0_315] : memref<2x10x18x18xf32, #tpu.memory_space<vmem>>, vector<1x1x18x18xf32>
    %324 = vector.shape_cast %323 : vector<1x1x18x18xf32> to vector<18x18xf32>
    %325 = vector.shape_cast %322 : vector<18x18xf32> to vector<1x1x18x18xf32>
    tpu.vector_store %arg4[%c0_312, %c8_313, %c0_314, %c0_315], %325 {strides = array<i32>} : memref<2x10x18x18xf32, #tpu.memory_space<vmem>>, vector<1x1x18x18xf32>,
    %326 = vector.broadcast %321 : f32 to vector<16x16xf32>
    %c8_316 = arith.constant 8 : index
    %c0_317 = arith.constant 0 : index
    %327 = memref.load %arg2[%c8_316, %c0_317] : memref<10x5xf32, #tpu.memory_space<smem>>
    %c0_318 = arith.constant 0 : index
    %c0_319 = arith.constant 0 : index
    %c0_320 = arith.constant 0 : index
    %c0_321 = arith.constant 0 : index
    %328 = vector.load %arg1[%c0_318, %c0_319, %c0_320, %c0_321] : memref<2x5x16x16xf32, #tpu.memory_space<vmem>>, vector<1x1x16x16xf32>
    %329 = vector.shape_cast %328 : vector<1x1x16x16xf32> to vector<16x16xf32>
    %330 = vector.broadcast %327 : f32 to vector<16x16xf32>
    %331 = arith.mulf %330, %329 : vector<16x16xf32>
    %332 = arith.addf %326, %331 : vector<16x16xf32>
    %c8_322 = arith.constant 8 : index
    %c1_323 = arith.constant 1 : index
    %333 = memref.load %arg2[%c8_322, %c1_323] : memref<10x5xf32, #tpu.memory_space<smem>>
    %c0_324 = arith.constant 0 : index
    %c1_325 = arith.constant 1 : index
    %c0_326 = arith.constant 0 : index
    %c0_327 = arith.constant 0 : index
    %334 = vector.load %arg1[%c0_324, %c1_325, %c0_326, %c0_327] : memref<2x5x16x16xf32, #tpu.memory_space<vmem>>, vector<1x1x16x16xf32>
    %335 = vector.shape_cast %334 : vector<1x1x16x16xf32> to vector<16x16xf32>
    %336 = vector.broadcast %333 : f32 to vector<16x16xf32>
    %337 = arith.mulf %336, %335 : vector<16x16xf32>
    %338 = arith.addf %332, %337 : vector<16x16xf32>
    %c8_328 = arith.constant 8 : index
    %c2_329 = arith.constant 2 : index
    %339 = memref.load %arg2[%c8_328, %c2_329] : memref<10x5xf32, #tpu.memory_space<smem>>
    %c0_330 = arith.constant 0 : index
    %c2_331 = arith.constant 2 : index
    %c0_332 = arith.constant 0 : index
    %c0_333 = arith.constant 0 : index
    %340 = vector.load %arg1[%c0_330, %c2_331, %c0_332, %c0_333] : memref<2x5x16x16xf32, #tpu.memory_space<vmem>>, vector<1x1x16x16xf32>
    %341 = vector.shape_cast %340 : vector<1x1x16x16xf32> to vector<16x16xf32>
    %342 = vector.broadcast %339 : f32 to vector<16x16xf32>
    %343 = arith.mulf %342, %341 : vector<16x16xf32>
    %344 = arith.addf %338, %343 : vector<16x16xf32>
    %c8_334 = arith.constant 8 : index
    %c3_335 = arith.constant 3 : index
    %345 = memref.load %arg2[%c8_334, %c3_335] : memref<10x5xf32, #tpu.memory_space<smem>>
    %c0_336 = arith.constant 0 : index
    %c3_337 = arith.constant 3 : index
    %c0_338 = arith.constant 0 : index
    %c0_339 = arith.constant 0 : index
    %346 = vector.load %arg1[%c0_336, %c3_337, %c0_338, %c0_339] : memref<2x5x16x16xf32, #tpu.memory_space<vmem>>, vector<1x1x16x16xf32>
    %347 = vector.shape_cast %346 : vector<1x1x16x16xf32> to vector<16x16xf32>
    %348 = vector.broadcast %345 : f32 to vector<16x16xf32>
    %349 = arith.mulf %348, %347 : vector<16x16xf32>
    %350 = arith.addf %344, %349 : vector<16x16xf32>
    %c8_340 = arith.constant 8 : index
    %c4_341 = arith.constant 4 : index
    %351 = memref.load %arg2[%c8_340, %c4_341] : memref<10x5xf32, #tpu.memory_space<smem>>
    %c0_342 = arith.constant 0 : index
    %c4_343 = arith.constant 4 : index
    %c0_344 = arith.constant 0 : index
    %c0_345 = arith.constant 0 : index
    %352 = vector.load %arg1[%c0_342, %c4_343, %c0_344, %c0_345] : memref<2x5x16x16xf32, #tpu.memory_space<vmem>>, vector<1x1x16x16xf32>
    %353 = vector.shape_cast %352 : vector<1x1x16x16xf32> to vector<16x16xf32>
    %354 = vector.broadcast %351 : f32 to vector<16x16xf32>
    %355 = arith.mulf %354, %353 : vector<16x16xf32>
    %356 = arith.addf %350, %355 : vector<16x16xf32>
    %c0_346 = arith.constant 0 : index
    %c8_347 = arith.constant 8 : index
    %c1_348 = arith.constant 1 : index
    %c1_349 = arith.constant 1 : index
    %357 = vector.load %arg4[%c0_346, %c8_347, %c1_348, %c1_349] : memref<2x10x18x18xf32, #tpu.memory_space<vmem>>, vector<1x1x16x16xf32>
    %358 = vector.shape_cast %357 : vector<1x1x16x16xf32> to vector<16x16xf32>
    %359 = vector.shape_cast %356 : vector<16x16xf32> to vector<1x1x16x16xf32>
    tpu.vector_store %arg4[%c0_346, %c8_347, %c1_348, %c1_349], %359 {strides = array<i32>} : memref<2x10x18x18xf32, #tpu.memory_space<vmem>>, vector<1x1x16x16xf32>,
    %c9 = arith.constant 9 : index
    %360 = memref.load %arg3[%c9] : memref<10xf32, #tpu.memory_space<smem>>
    %cst_350 = arith.constant 1.500000e+00 : f32
    %361 = arith.subf %360, %cst_350 : f32
    %362 = vector.broadcast %361 : f32 to vector<18x18xf32>
    %c0_351 = arith.constant 0 : index
    %c9_352 = arith.constant 9 : index
    %c0_353 = arith.constant 0 : index
    %c0_354 = arith.constant 0 : index
    %363 = vector.load %arg4[%c0_351, %c9_352, %c0_353, %c0_354] : memref<2x10x18x18xf32, #tpu.memory_space<vmem>>, vector<1x1x18x18xf32>
    %364 = vector.shape_cast %363 : vector<1x1x18x18xf32> to vector<18x18xf32>
    %365 = vector.shape_cast %362 : vector<18x18xf32> to vector<1x1x18x18xf32>
    tpu.vector_store %arg4[%c0_351, %c9_352, %c0_353, %c0_354], %365 {strides = array<i32>} : memref<2x10x18x18xf32, #tpu.memory_space<vmem>>, vector<1x1x18x18xf32>,
    %366 = vector.broadcast %361 : f32 to vector<16x16xf32>
    %c9_355 = arith.constant 9 : index
    %c0_356 = arith.constant 0 : index
    %367 = memref.load %arg2[%c9_355, %c0_356] : memref<10x5xf32, #tpu.memory_space<smem>>
    %c0_357 = arith.constant 0 : index
    %c0_358 = arith.constant 0 : index
    %c0_359 = arith.constant 0 : index
    %c0_360 = arith.constant 0 : index
    %368 = vector.load %arg1[%c0_357, %c0_358, %c0_359, %c0_360] : memref<2x5x16x16xf32, #tpu.memory_space<vmem>>, vector<1x1x16x16xf32>
    %369 = vector.shape_cast %368 : vector<1x1x16x16xf32> to vector<16x16xf32>
    %370 = vector.broadcast %367 : f32 to vector<16x16xf32>
    %371 = arith.mulf %370, %369 : vector<16x16xf32>
    %372 = arith.addf %366, %371 : vector<16x16xf32>
    %c9_361 = arith.constant 9 : index
    %c1_362 = arith.constant 1 : index
    %373 = memref.load %arg2[%c9_361, %c1_362] : memref<10x5xf32, #tpu.memory_space<smem>>
    %c0_363 = arith.constant 0 : index
    %c1_364 = arith.constant 1 : index
    %c0_365 = arith.constant 0 : index
    %c0_366 = arith.constant 0 : index
    %374 = vector.load %arg1[%c0_363, %c1_364, %c0_365, %c0_366] : memref<2x5x16x16xf32, #tpu.memory_space<vmem>>, vector<1x1x16x16xf32>
    %375 = vector.shape_cast %374 : vector<1x1x16x16xf32> to vector<16x16xf32>
    %376 = vector.broadcast %373 : f32 to vector<16x16xf32>
    %377 = arith.mulf %376, %375 : vector<16x16xf32>
    %378 = arith.addf %372, %377 : vector<16x16xf32>
    %c9_367 = arith.constant 9 : index
    %c2_368 = arith.constant 2 : index
    %379 = memref.load %arg2[%c9_367, %c2_368] : memref<10x5xf32, #tpu.memory_space<smem>>
    %c0_369 = arith.constant 0 : index
    %c2_370 = arith.constant 2 : index
    %c0_371 = arith.constant 0 : index
    %c0_372 = arith.constant 0 : index
    %380 = vector.load %arg1[%c0_369, %c2_370, %c0_371, %c0_372] : memref<2x5x16x16xf32, #tpu.memory_space<vmem>>, vector<1x1x16x16xf32>
    %381 = vector.shape_cast %380 : vector<1x1x16x16xf32> to vector<16x16xf32>
    %382 = vector.broadcast %379 : f32 to vector<16x16xf32>
    %383 = arith.mulf %382, %381 : vector<16x16xf32>
    %384 = arith.addf %378, %383 : vector<16x16xf32>
    %c9_373 = arith.constant 9 : index
    %c3_374 = arith.constant 3 : index
    %385 = memref.load %arg2[%c9_373, %c3_374] : memref<10x5xf32, #tpu.memory_space<smem>>
    %c0_375 = arith.constant 0 : index
    %c3_376 = arith.constant 3 : index
    %c0_377 = arith.constant 0 : index
    %c0_378 = arith.constant 0 : index
    %386 = vector.load %arg1[%c0_375, %c3_376, %c0_377, %c0_378] : memref<2x5x16x16xf32, #tpu.memory_space<vmem>>, vector<1x1x16x16xf32>
    %387 = vector.shape_cast %386 : vector<1x1x16x16xf32> to vector<16x16xf32>
    %388 = vector.broadcast %385 : f32 to vector<16x16xf32>
    %389 = arith.mulf %388, %387 : vector<16x16xf32>
    %390 = arith.addf %384, %389 : vector<16x16xf32>
    %c9_379 = arith.constant 9 : index
    %c4_380 = arith.constant 4 : index
    %391 = memref.load %arg2[%c9_379, %c4_380] : memref<10x5xf32, #tpu.memory_space<smem>>
    %c0_381 = arith.constant 0 : index
    %c4_382 = arith.constant 4 : index
    %c0_383 = arith.constant 0 : index
    %c0_384 = arith.constant 0 : index
    %392 = vector.load %arg1[%c0_381, %c4_382, %c0_383, %c0_384] : memref<2x5x16x16xf32, #tpu.memory_space<vmem>>, vector<1x1x16x16xf32>
    %393 = vector.shape_cast %392 : vector<1x1x16x16xf32> to vector<16x16xf32>
    %394 = vector.broadcast %391 : f32 to vector<16x16xf32>
    %395 = arith.mulf %394, %393 : vector<16x16xf32>
    %396 = arith.addf %390, %395 : vector<16x16xf32>
    %c0_385 = arith.constant 0 : index
    %c9_386 = arith.constant 9 : index
    %c1_387 = arith.constant 1 : index
    %c1_388 = arith.constant 1 : index
    %397 = vector.load %arg4[%c0_385, %c9_386, %c1_387, %c1_388] : memref<2x10x18x18xf32, #tpu.memory_space<vmem>>, vector<1x1x16x16xf32>
    %398 = vector.shape_cast %397 : vector<1x1x16x16xf32> to vector<16x16xf32>
    %399 = vector.shape_cast %396 : vector<16x16xf32> to vector<1x1x16x16xf32>
    tpu.vector_store %arg4[%c0_385, %c9_386, %c1_387, %c1_388], %399 {strides = array<i32>} : memref<2x10x18x18xf32, #tpu.memory_space<vmem>>, vector<1x1x16x16xf32>,
    %c0_389 = arith.constant 0 : index
    %400 = memref.load %arg3[%c0_389] : memref<10xf32, #tpu.memory_space<smem>>
    %cst_390 = arith.constant 1.500000e+00 : f32
    %401 = arith.subf %400, %cst_390 : f32
    %402 = vector.broadcast %401 : f32 to vector<18x18xf32>
    %c1_391 = arith.constant 1 : index
    %c0_392 = arith.constant 0 : index
    %c0_393 = arith.constant 0 : index
    %c0_394 = arith.constant 0 : index
    %403 = vector.load %arg4[%c1_391, %c0_392, %c0_393, %c0_394] : memref<2x10x18x18xf32, #tpu.memory_space<vmem>>, vector<1x1x18x18xf32>
    %404 = vector.shape_cast %403 : vector<1x1x18x18xf32> to vector<18x18xf32>
    %405 = vector.shape_cast %402 : vector<18x18xf32> to vector<1x1x18x18xf32>
    tpu.vector_store %arg4[%c1_391, %c0_392, %c0_393, %c0_394], %405 {strides = array<i32>} : memref<2x10x18x18xf32, #tpu.memory_space<vmem>>, vector<1x1x18x18xf32>,
    %406 = vector.broadcast %401 : f32 to vector<16x16xf32>
    %c0_395 = arith.constant 0 : index
    %c0_396 = arith.constant 0 : index
    %407 = memref.load %arg2[%c0_395, %c0_396] : memref<10x5xf32, #tpu.memory_space<smem>>
    %c1_397 = arith.constant 1 : index
    %c0_398 = arith.constant 0 : index
    %c0_399 = arith.constant 0 : index
    %c0_400 = arith.constant 0 : index
    %408 = vector.load %arg1[%c1_397, %c0_398, %c0_399, %c0_400] : memref<2x5x16x16xf32, #tpu.memory_space<vmem>>, vector<1x1x16x16xf32>
    %409 = vector.shape_cast %408 : vector<1x1x16x16xf32> to vector<16x16xf32>
    %410 = vector.broadcast %407 : f32 to vector<16x16xf32>
    %411 = arith.mulf %410, %409 : vector<16x16xf32>
    %412 = arith.addf %406, %411 : vector<16x16xf32>
    %c0_401 = arith.constant 0 : index
    %c1_402 = arith.constant 1 : index
    %413 = memref.load %arg2[%c0_401, %c1_402] : memref<10x5xf32, #tpu.memory_space<smem>>
    %c1_403 = arith.constant 1 : index
    %c1_404 = arith.constant 1 : index
    %c0_405 = arith.constant 0 : index
    %c0_406 = arith.constant 0 : index
    %414 = vector.load %arg1[%c1_403, %c1_404, %c0_405, %c0_406] : memref<2x5x16x16xf32, #tpu.memory_space<vmem>>, vector<1x1x16x16xf32>
    %415 = vector.shape_cast %414 : vector<1x1x16x16xf32> to vector<16x16xf32>
    %416 = vector.broadcast %413 : f32 to vector<16x16xf32>
    %417 = arith.mulf %416, %415 : vector<16x16xf32>
    %418 = arith.addf %412, %417 : vector<16x16xf32>
    %c0_407 = arith.constant 0 : index
    %c2_408 = arith.constant 2 : index
    %419 = memref.load %arg2[%c0_407, %c2_408] : memref<10x5xf32, #tpu.memory_space<smem>>
    %c1_409 = arith.constant 1 : index
    %c2_410 = arith.constant 2 : index
    %c0_411 = arith.constant 0 : index
    %c0_412 = arith.constant 0 : index
    %420 = vector.load %arg1[%c1_409, %c2_410, %c0_411, %c0_412] : memref<2x5x16x16xf32, #tpu.memory_space<vmem>>, vector<1x1x16x16xf32>
    %421 = vector.shape_cast %420 : vector<1x1x16x16xf32> to vector<16x16xf32>
    %422 = vector.broadcast %419 : f32 to vector<16x16xf32>
    %423 = arith.mulf %422, %421 : vector<16x16xf32>
    %424 = arith.addf %418, %423 : vector<16x16xf32>
    %c0_413 = arith.constant 0 : index
    %c3_414 = arith.constant 3 : index
    %425 = memref.load %arg2[%c0_413, %c3_414] : memref<10x5xf32, #tpu.memory_space<smem>>
    %c1_415 = arith.constant 1 : index
    %c3_416 = arith.constant 3 : index
    %c0_417 = arith.constant 0 : index
    %c0_418 = arith.constant 0 : index
    %426 = vector.load %arg1[%c1_415, %c3_416, %c0_417, %c0_418] : memref<2x5x16x16xf32, #tpu.memory_space<vmem>>, vector<1x1x16x16xf32>
    %427 = vector.shape_cast %426 : vector<1x1x16x16xf32> to vector<16x16xf32>
    %428 = vector.broadcast %425 : f32 to vector<16x16xf32>
    %429 = arith.mulf %428, %427 : vector<16x16xf32>
    %430 = arith.addf %424, %429 : vector<16x16xf32>
    %c0_419 = arith.constant 0 : index
    %c4_420 = arith.constant 4 : index
    %431 = memref.load %arg2[%c0_419, %c4_420] : memref<10x5xf32, #tpu.memory_space<smem>>
    %c1_421 = arith.constant 1 : index
    %c4_422 = arith.constant 4 : index
    %c0_423 = arith.constant 0 : index
    %c0_424 = arith.constant 0 : index
    %432 = vector.load %arg1[%c1_421, %c4_422, %c0_423, %c0_424] : memref<2x5x16x16xf32, #tpu.memory_space<vmem>>, vector<1x1x16x16xf32>
    %433 = vector.shape_cast %432 : vector<1x1x16x16xf32> to vector<16x16xf32>
    %434 = vector.broadcast %431 : f32 to vector<16x16xf32>
    %435 = arith.mulf %434, %433 : vector<16x16xf32>
    %436 = arith.addf %430, %435 : vector<16x16xf32>
    %c1_425 = arith.constant 1 : index
    %c0_426 = arith.constant 0 : index
    %c1_427 = arith.constant 1 : index
    %c1_428 = arith.constant 1 : index
    %437 = vector.load %arg4[%c1_425, %c0_426, %c1_427, %c1_428] : memref<2x10x18x18xf32, #tpu.memory_space<vmem>>, vector<1x1x16x16xf32>
    %438 = vector.shape_cast %437 : vector<1x1x16x16xf32> to vector<16x16xf32>
    %439 = vector.shape_cast %436 : vector<16x16xf32> to vector<1x1x16x16xf32>
    tpu.vector_store %arg4[%c1_425, %c0_426, %c1_427, %c1_428], %439 {strides = array<i32>} : memref<2x10x18x18xf32, #tpu.memory_space<vmem>>, vector<1x1x16x16xf32>,
    %c1_429 = arith.constant 1 : index
    %440 = memref.load %arg3[%c1_429] : memref<10xf32, #tpu.memory_space<smem>>
    %cst_430 = arith.constant 1.500000e+00 : f32
    %441 = arith.subf %440, %cst_430 : f32
    %442 = vector.broadcast %441 : f32 to vector<18x18xf32>
    %c1_431 = arith.constant 1 : index
    %c1_432 = arith.constant 1 : index
    %c0_433 = arith.constant 0 : index
    %c0_434 = arith.constant 0 : index
    %443 = vector.load %arg4[%c1_431, %c1_432, %c0_433, %c0_434] : memref<2x10x18x18xf32, #tpu.memory_space<vmem>>, vector<1x1x18x18xf32>
    %444 = vector.shape_cast %443 : vector<1x1x18x18xf32> to vector<18x18xf32>
    %445 = vector.shape_cast %442 : vector<18x18xf32> to vector<1x1x18x18xf32>
    tpu.vector_store %arg4[%c1_431, %c1_432, %c0_433, %c0_434], %445 {strides = array<i32>} : memref<2x10x18x18xf32, #tpu.memory_space<vmem>>, vector<1x1x18x18xf32>,
    %446 = vector.broadcast %441 : f32 to vector<16x16xf32>
    %c1_435 = arith.constant 1 : index
    %c0_436 = arith.constant 0 : index
    %447 = memref.load %arg2[%c1_435, %c0_436] : memref<10x5xf32, #tpu.memory_space<smem>>
    %c1_437 = arith.constant 1 : index
    %c0_438 = arith.constant 0 : index
    %c0_439 = arith.constant 0 : index
    %c0_440 = arith.constant 0 : index
    %448 = vector.load %arg1[%c1_437, %c0_438, %c0_439, %c0_440] : memref<2x5x16x16xf32, #tpu.memory_space<vmem>>, vector<1x1x16x16xf32>
    %449 = vector.shape_cast %448 : vector<1x1x16x16xf32> to vector<16x16xf32>
    %450 = vector.broadcast %447 : f32 to vector<16x16xf32>
    %451 = arith.mulf %450, %449 : vector<16x16xf32>
    %452 = arith.addf %446, %451 : vector<16x16xf32>
    %c1_441 = arith.constant 1 : index
    %c1_442 = arith.constant 1 : index
    %453 = memref.load %arg2[%c1_441, %c1_442] : memref<10x5xf32, #tpu.memory_space<smem>>
    %c1_443 = arith.constant 1 : index
    %c1_444 = arith.constant 1 : index
    %c0_445 = arith.constant 0 : index
    %c0_446 = arith.constant 0 : index
    %454 = vector.load %arg1[%c1_443, %c1_444, %c0_445, %c0_446] : memref<2x5x16x16xf32, #tpu.memory_space<vmem>>, vector<1x1x16x16xf32>
    %455 = vector.shape_cast %454 : vector<1x1x16x16xf32> to vector<16x16xf32>
    %456 = vector.broadcast %453 : f32 to vector<16x16xf32>
    %457 = arith.mulf %456, %455 : vector<16x16xf32>
    %458 = arith.addf %452, %457 : vector<16x16xf32>
    %c1_447 = arith.constant 1 : index
    %c2_448 = arith.constant 2 : index
    %459 = memref.load %arg2[%c1_447, %c2_448] : memref<10x5xf32, #tpu.memory_space<smem>>
    %c1_449 = arith.constant 1 : index
    %c2_450 = arith.constant 2 : index
    %c0_451 = arith.constant 0 : index
    %c0_452 = arith.constant 0 : index
    %460 = vector.load %arg1[%c1_449, %c2_450, %c0_451, %c0_452] : memref<2x5x16x16xf32, #tpu.memory_space<vmem>>, vector<1x1x16x16xf32>
    %461 = vector.shape_cast %460 : vector<1x1x16x16xf32> to vector<16x16xf32>
    %462 = vector.broadcast %459 : f32 to vector<16x16xf32>
    %463 = arith.mulf %462, %461 : vector<16x16xf32>
    %464 = arith.addf %458, %463 : vector<16x16xf32>
    %c1_453 = arith.constant 1 : index
    %c3_454 = arith.constant 3 : index
    %465 = memref.load %arg2[%c1_453, %c3_454] : memref<10x5xf32, #tpu.memory_space<smem>>
    %c1_455 = arith.constant 1 : index
    %c3_456 = arith.constant 3 : index
    %c0_457 = arith.constant 0 : index
    %c0_458 = arith.constant 0 : index
    %466 = vector.load %arg1[%c1_455, %c3_456, %c0_457, %c0_458] : memref<2x5x16x16xf32, #tpu.memory_space<vmem>>, vector<1x1x16x16xf32>
    %467 = vector.shape_cast %466 : vector<1x1x16x16xf32> to vector<16x16xf32>
    %468 = vector.broadcast %465 : f32 to vector<16x16xf32>
    %469 = arith.mulf %468, %467 : vector<16x16xf32>
    %470 = arith.addf %464, %469 : vector<16x16xf32>
    %c1_459 = arith.constant 1 : index
    %c4_460 = arith.constant 4 : index
    %471 = memref.load %arg2[%c1_459, %c4_460] : memref<10x5xf32, #tpu.memory_space<smem>>
    %c1_461 = arith.constant 1 : index
    %c4_462 = arith.constant 4 : index
    %c0_463 = arith.constant 0 : index
    %c0_464 = arith.constant 0 : index
    %472 = vector.load %arg1[%c1_461, %c4_462, %c0_463, %c0_464] : memref<2x5x16x16xf32, #tpu.memory_space<vmem>>, vector<1x1x16x16xf32>
    %473 = vector.shape_cast %472 : vector<1x1x16x16xf32> to vector<16x16xf32>
    %474 = vector.broadcast %471 : f32 to vector<16x16xf32>
    %475 = arith.mulf %474, %473 : vector<16x16xf32>
    %476 = arith.addf %470, %475 : vector<16x16xf32>
    %c1_465 = arith.constant 1 : index
    %c1_466 = arith.constant 1 : index
    %c1_467 = arith.constant 1 : index
    %c1_468 = arith.constant 1 : index
    %477 = vector.load %arg4[%c1_465, %c1_466, %c1_467, %c1_468] : memref<2x10x18x18xf32, #tpu.memory_space<vmem>>, vector<1x1x16x16xf32>
    %478 = vector.shape_cast %477 : vector<1x1x16x16xf32> to vector<16x16xf32>
    %479 = vector.shape_cast %476 : vector<16x16xf32> to vector<1x1x16x16xf32>
    tpu.vector_store %arg4[%c1_465, %c1_466, %c1_467, %c1_468], %479 {strides = array<i32>} : memref<2x10x18x18xf32, #tpu.memory_space<vmem>>, vector<1x1x16x16xf32>,
    %c2_469 = arith.constant 2 : index
    %480 = memref.load %arg3[%c2_469] : memref<10xf32, #tpu.memory_space<smem>>
    %cst_470 = arith.constant 1.500000e+00 : f32
    %481 = arith.subf %480, %cst_470 : f32
    %482 = vector.broadcast %481 : f32 to vector<18x18xf32>
    %c1_471 = arith.constant 1 : index
    %c2_472 = arith.constant 2 : index
    %c0_473 = arith.constant 0 : index
    %c0_474 = arith.constant 0 : index
    %483 = vector.load %arg4[%c1_471, %c2_472, %c0_473, %c0_474] : memref<2x10x18x18xf32, #tpu.memory_space<vmem>>, vector<1x1x18x18xf32>
    %484 = vector.shape_cast %483 : vector<1x1x18x18xf32> to vector<18x18xf32>
    %485 = vector.shape_cast %482 : vector<18x18xf32> to vector<1x1x18x18xf32>
    tpu.vector_store %arg4[%c1_471, %c2_472, %c0_473, %c0_474], %485 {strides = array<i32>} : memref<2x10x18x18xf32, #tpu.memory_space<vmem>>, vector<1x1x18x18xf32>,
    %486 = vector.broadcast %481 : f32 to vector<16x16xf32>
    %c2_475 = arith.constant 2 : index
    %c0_476 = arith.constant 0 : index
    %487 = memref.load %arg2[%c2_475, %c0_476] : memref<10x5xf32, #tpu.memory_space<smem>>
    %c1_477 = arith.constant 1 : index
    %c0_478 = arith.constant 0 : index
    %c0_479 = arith.constant 0 : index
    %c0_480 = arith.constant 0 : index
    %488 = vector.load %arg1[%c1_477, %c0_478, %c0_479, %c0_480] : memref<2x5x16x16xf32, #tpu.memory_space<vmem>>, vector<1x1x16x16xf32>
    %489 = vector.shape_cast %488 : vector<1x1x16x16xf32> to vector<16x16xf32>
    %490 = vector.broadcast %487 : f32 to vector<16x16xf32>
    %491 = arith.mulf %490, %489 : vector<16x16xf32>
    %492 = arith.addf %486, %491 : vector<16x16xf32>
    %c2_481 = arith.constant 2 : index
    %c1_482 = arith.constant 1 : index
    %493 = memref.load %arg2[%c2_481, %c1_482] : memref<10x5xf32, #tpu.memory_space<smem>>
    %c1_483 = arith.constant 1 : index
    %c1_484 = arith.constant 1 : index
    %c0_485 = arith.constant 0 : index
    %c0_486 = arith.constant 0 : index
    %494 = vector.load %arg1[%c1_483, %c1_484, %c0_485, %c0_486] : memref<2x5x16x16xf32, #tpu.memory_space<vmem>>, vector<1x1x16x16xf32>
    %495 = vector.shape_cast %494 : vector<1x1x16x16xf32> to vector<16x16xf32>
    %496 = vector.broadcast %493 : f32 to vector<16x16xf32>
    %497 = arith.mulf %496, %495 : vector<16x16xf32>
    %498 = arith.addf %492, %497 : vector<16x16xf32>
    %c2_487 = arith.constant 2 : index
    %c2_488 = arith.constant 2 : index
    %499 = memref.load %arg2[%c2_487, %c2_488] : memref<10x5xf32, #tpu.memory_space<smem>>
    %c1_489 = arith.constant 1 : index
    %c2_490 = arith.constant 2 : index
    %c0_491 = arith.constant 0 : index
    %c0_492 = arith.constant 0 : index
    %500 = vector.load %arg1[%c1_489, %c2_490, %c0_491, %c0_492] : memref<2x5x16x16xf32, #tpu.memory_space<vmem>>, vector<1x1x16x16xf32>
    %501 = vector.shape_cast %500 : vector<1x1x16x16xf32> to vector<16x16xf32>
    %502 = vector.broadcast %499 : f32 to vector<16x16xf32>
    %503 = arith.mulf %502, %501 : vector<16x16xf32>
    %504 = arith.addf %498, %503 : vector<16x16xf32>
    %c2_493 = arith.constant 2 : index
    %c3_494 = arith.constant 3 : index
    %505 = memref.load %arg2[%c2_493, %c3_494] : memref<10x5xf32, #tpu.memory_space<smem>>
    %c1_495 = arith.constant 1 : index
    %c3_496 = arith.constant 3 : index
    %c0_497 = arith.constant 0 : index
    %c0_498 = arith.constant 0 : index
    %506 = vector.load %arg1[%c1_495, %c3_496, %c0_497, %c0_498] : memref<2x5x16x16xf32, #tpu.memory_space<vmem>>, vector<1x1x16x16xf32>
    %507 = vector.shape_cast %506 : vector<1x1x16x16xf32> to vector<16x16xf32>
    %508 = vector.broadcast %505 : f32 to vector<16x16xf32>
    %509 = arith.mulf %508, %507 : vector<16x16xf32>
    %510 = arith.addf %504, %509 : vector<16x16xf32>
    %c2_499 = arith.constant 2 : index
    %c4_500 = arith.constant 4 : index
    %511 = memref.load %arg2[%c2_499, %c4_500] : memref<10x5xf32, #tpu.memory_space<smem>>
    %c1_501 = arith.constant 1 : index
    %c4_502 = arith.constant 4 : index
    %c0_503 = arith.constant 0 : index
    %c0_504 = arith.constant 0 : index
    %512 = vector.load %arg1[%c1_501, %c4_502, %c0_503, %c0_504] : memref<2x5x16x16xf32, #tpu.memory_space<vmem>>, vector<1x1x16x16xf32>
    %513 = vector.shape_cast %512 : vector<1x1x16x16xf32> to vector<16x16xf32>
    %514 = vector.broadcast %511 : f32 to vector<16x16xf32>
    %515 = arith.mulf %514, %513 : vector<16x16xf32>
    %516 = arith.addf %510, %515 : vector<16x16xf32>
    %c1_505 = arith.constant 1 : index
    %c2_506 = arith.constant 2 : index
    %c1_507 = arith.constant 1 : index
    %c1_508 = arith.constant 1 : index
    %517 = vector.load %arg4[%c1_505, %c2_506, %c1_507, %c1_508] : memref<2x10x18x18xf32, #tpu.memory_space<vmem>>, vector<1x1x16x16xf32>
    %518 = vector.shape_cast %517 : vector<1x1x16x16xf32> to vector<16x16xf32>
    %519 = vector.shape_cast %516 : vector<16x16xf32> to vector<1x1x16x16xf32>
    tpu.vector_store %arg4[%c1_505, %c2_506, %c1_507, %c1_508], %519 {strides = array<i32>} : memref<2x10x18x18xf32, #tpu.memory_space<vmem>>, vector<1x1x16x16xf32>,
    %c3_509 = arith.constant 3 : index
    %520 = memref.load %arg3[%c3_509] : memref<10xf32, #tpu.memory_space<smem>>
    %cst_510 = arith.constant 1.500000e+00 : f32
    %521 = arith.subf %520, %cst_510 : f32
    %522 = vector.broadcast %521 : f32 to vector<18x18xf32>
    %c1_511 = arith.constant 1 : index
    %c3_512 = arith.constant 3 : index
    %c0_513 = arith.constant 0 : index
    %c0_514 = arith.constant 0 : index
    %523 = vector.load %arg4[%c1_511, %c3_512, %c0_513, %c0_514] : memref<2x10x18x18xf32, #tpu.memory_space<vmem>>, vector<1x1x18x18xf32>
    %524 = vector.shape_cast %523 : vector<1x1x18x18xf32> to vector<18x18xf32>
    %525 = vector.shape_cast %522 : vector<18x18xf32> to vector<1x1x18x18xf32>
    tpu.vector_store %arg4[%c1_511, %c3_512, %c0_513, %c0_514], %525 {strides = array<i32>} : memref<2x10x18x18xf32, #tpu.memory_space<vmem>>, vector<1x1x18x18xf32>,
    %526 = vector.broadcast %521 : f32 to vector<16x16xf32>
    %c3_515 = arith.constant 3 : index
    %c0_516 = arith.constant 0 : index
    %527 = memref.load %arg2[%c3_515, %c0_516] : memref<10x5xf32, #tpu.memory_space<smem>>
    %c1_517 = arith.constant 1 : index
    %c0_518 = arith.constant 0 : index
    %c0_519 = arith.constant 0 : index
    %c0_520 = arith.constant 0 : index
    %528 = vector.load %arg1[%c1_517, %c0_518, %c0_519, %c0_520] : memref<2x5x16x16xf32, #tpu.memory_space<vmem>>, vector<1x1x16x16xf32>
    %529 = vector.shape_cast %528 : vector<1x1x16x16xf32> to vector<16x16xf32>
    %530 = vector.broadcast %527 : f32 to vector<16x16xf32>
    %531 = arith.mulf %530, %529 : vector<16x16xf32>
    %532 = arith.addf %526, %531 : vector<16x16xf32>
    %c3_521 = arith.constant 3 : index
    %c1_522 = arith.constant 1 : index
    %533 = memref.load %arg2[%c3_521, %c1_522] : memref<10x5xf32, #tpu.memory_space<smem>>
    %c1_523 = arith.constant 1 : index
    %c1_524 = arith.constant 1 : index
    %c0_525 = arith.constant 0 : index
    %c0_526 = arith.constant 0 : index
    %534 = vector.load %arg1[%c1_523, %c1_524, %c0_525, %c0_526] : memref<2x5x16x16xf32, #tpu.memory_space<vmem>>, vector<1x1x16x16xf32>
    %535 = vector.shape_cast %534 : vector<1x1x16x16xf32> to vector<16x16xf32>
    %536 = vector.broadcast %533 : f32 to vector<16x16xf32>
    %537 = arith.mulf %536, %535 : vector<16x16xf32>
    %538 = arith.addf %532, %537 : vector<16x16xf32>
    %c3_527 = arith.constant 3 : index
    %c2_528 = arith.constant 2 : index
    %539 = memref.load %arg2[%c3_527, %c2_528] : memref<10x5xf32, #tpu.memory_space<smem>>
    %c1_529 = arith.constant 1 : index
    %c2_530 = arith.constant 2 : index
    %c0_531 = arith.constant 0 : index
    %c0_532 = arith.constant 0 : index
    %540 = vector.load %arg1[%c1_529, %c2_530, %c0_531, %c0_532] : memref<2x5x16x16xf32, #tpu.memory_space<vmem>>, vector<1x1x16x16xf32>
    %541 = vector.shape_cast %540 : vector<1x1x16x16xf32> to vector<16x16xf32>
    %542 = vector.broadcast %539 : f32 to vector<16x16xf32>
    %543 = arith.mulf %542, %541 : vector<16x16xf32>
    %544 = arith.addf %538, %543 : vector<16x16xf32>
    %c3_533 = arith.constant 3 : index
    %c3_534 = arith.constant 3 : index
    %545 = memref.load %arg2[%c3_533, %c3_534] : memref<10x5xf32, #tpu.memory_space<smem>>
    %c1_535 = arith.constant 1 : index
    %c3_536 = arith.constant 3 : index
    %c0_537 = arith.constant 0 : index
    %c0_538 = arith.constant 0 : index
    %546 = vector.load %arg1[%c1_535, %c3_536, %c0_537, %c0_538] : memref<2x5x16x16xf32, #tpu.memory_space<vmem>>, vector<1x1x16x16xf32>
    %547 = vector.shape_cast %546 : vector<1x1x16x16xf32> to vector<16x16xf32>
    %548 = vector.broadcast %545 : f32 to vector<16x16xf32>
    %549 = arith.mulf %548, %547 : vector<16x16xf32>
    %550 = arith.addf %544, %549 : vector<16x16xf32>
    %c3_539 = arith.constant 3 : index
    %c4_540 = arith.constant 4 : index
    %551 = memref.load %arg2[%c3_539, %c4_540] : memref<10x5xf32, #tpu.memory_space<smem>>
    %c1_541 = arith.constant 1 : index
    %c4_542 = arith.constant 4 : index
    %c0_543 = arith.constant 0 : index
    %c0_544 = arith.constant 0 : index
    %552 = vector.load %arg1[%c1_541, %c4_542, %c0_543, %c0_544] : memref<2x5x16x16xf32, #tpu.memory_space<vmem>>, vector<1x1x16x16xf32>
    %553 = vector.shape_cast %552 : vector<1x1x16x16xf32> to vector<16x16xf32>
    %554 = vector.broadcast %551 : f32 to vector<16x16xf32>
    %555 = arith.mulf %554, %553 : vector<16x16xf32>
    %556 = arith.addf %550, %555 : vector<16x16xf32>
    %c1_545 = arith.constant 1 : index
    %c3_546 = arith.constant 3 : index
    %c1_547 = arith.constant 1 : index
    %c1_548 = arith.constant 1 : index
    %557 = vector.load %arg4[%c1_545, %c3_546, %c1_547, %c1_548] : memref<2x10x18x18xf32, #tpu.memory_space<vmem>>, vector<1x1x16x16xf32>
    %558 = vector.shape_cast %557 : vector<1x1x16x16xf32> to vector<16x16xf32>
    %559 = vector.shape_cast %556 : vector<16x16xf32> to vector<1x1x16x16xf32>
    tpu.vector_store %arg4[%c1_545, %c3_546, %c1_547, %c1_548], %559 {strides = array<i32>} : memref<2x10x18x18xf32, #tpu.memory_space<vmem>>, vector<1x1x16x16xf32>,
    %c4_549 = arith.constant 4 : index
    %560 = memref.load %arg3[%c4_549] : memref<10xf32, #tpu.memory_space<smem>>
    %cst_550 = arith.constant 1.500000e+00 : f32
    %561 = arith.subf %560, %cst_550 : f32
    %562 = vector.broadcast %561 : f32 to vector<18x18xf32>
    %c1_551 = arith.constant 1 : index
    %c4_552 = arith.constant 4 : index
    %c0_553 = arith.constant 0 : index
    %c0_554 = arith.constant 0 : index
    %563 = vector.load %arg4[%c1_551, %c4_552, %c0_553, %c0_554] : memref<2x10x18x18xf32, #tpu.memory_space<vmem>>, vector<1x1x18x18xf32>
    %564 = vector.shape_cast %563 : vector<1x1x18x18xf32> to vector<18x18xf32>
    %565 = vector.shape_cast %562 : vector<18x18xf32> to vector<1x1x18x18xf32>
    tpu.vector_store %arg4[%c1_551, %c4_552, %c0_553, %c0_554], %565 {strides = array<i32>} : memref<2x10x18x18xf32, #tpu.memory_space<vmem>>, vector<1x1x18x18xf32>,
    %566 = vector.broadcast %561 : f32 to vector<16x16xf32>
    %c4_555 = arith.constant 4 : index
    %c0_556 = arith.constant 0 : index
    %567 = memref.load %arg2[%c4_555, %c0_556] : memref<10x5xf32, #tpu.memory_space<smem>>
    %c1_557 = arith.constant 1 : index
    %c0_558 = arith.constant 0 : index
    %c0_559 = arith.constant 0 : index
    %c0_560 = arith.constant 0 : index
    %568 = vector.load %arg1[%c1_557, %c0_558, %c0_559, %c0_560] : memref<2x5x16x16xf32, #tpu.memory_space<vmem>>, vector<1x1x16x16xf32>
    %569 = vector.shape_cast %568 : vector<1x1x16x16xf32> to vector<16x16xf32>
    %570 = vector.broadcast %567 : f32 to vector<16x16xf32>
    %571 = arith.mulf %570, %569 : vector<16x16xf32>
    %572 = arith.addf %566, %571 : vector<16x16xf32>
    %c4_561 = arith.constant 4 : index
    %c1_562 = arith.constant 1 : index
    %573 = memref.load %arg2[%c4_561, %c1_562] : memref<10x5xf32, #tpu.memory_space<smem>>
    %c1_563 = arith.constant 1 : index
    %c1_564 = arith.constant 1 : index
    %c0_565 = arith.constant 0 : index
    %c0_566 = arith.constant 0 : index
    %574 = vector.load %arg1[%c1_563, %c1_564, %c0_565, %c0_566] : memref<2x5x16x16xf32, #tpu.memory_space<vmem>>, vector<1x1x16x16xf32>
    %575 = vector.shape_cast %574 : vector<1x1x16x16xf32> to vector<16x16xf32>
    %576 = vector.broadcast %573 : f32 to vector<16x16xf32>
    %577 = arith.mulf %576, %575 : vector<16x16xf32>
    %578 = arith.addf %572, %577 : vector<16x16xf32>
    %c4_567 = arith.constant 4 : index
    %c2_568 = arith.constant 2 : index
    %579 = memref.load %arg2[%c4_567, %c2_568] : memref<10x5xf32, #tpu.memory_space<smem>>
    %c1_569 = arith.constant 1 : index
    %c2_570 = arith.constant 2 : index
    %c0_571 = arith.constant 0 : index
    %c0_572 = arith.constant 0 : index
    %580 = vector.load %arg1[%c1_569, %c2_570, %c0_571, %c0_572] : memref<2x5x16x16xf32, #tpu.memory_space<vmem>>, vector<1x1x16x16xf32>
    %581 = vector.shape_cast %580 : vector<1x1x16x16xf32> to vector<16x16xf32>
    %582 = vector.broadcast %579 : f32 to vector<16x16xf32>
    %583 = arith.mulf %582, %581 : vector<16x16xf32>
    %584 = arith.addf %578, %583 : vector<16x16xf32>
    %c4_573 = arith.constant 4 : index
    %c3_574 = arith.constant 3 : index
    %585 = memref.load %arg2[%c4_573, %c3_574] : memref<10x5xf32, #tpu.memory_space<smem>>
    %c1_575 = arith.constant 1 : index
    %c3_576 = arith.constant 3 : index
    %c0_577 = arith.constant 0 : index
    %c0_578 = arith.constant 0 : index
    %586 = vector.load %arg1[%c1_575, %c3_576, %c0_577, %c0_578] : memref<2x5x16x16xf32, #tpu.memory_space<vmem>>, vector<1x1x16x16xf32>
    %587 = vector.shape_cast %586 : vector<1x1x16x16xf32> to vector<16x16xf32>
    %588 = vector.broadcast %585 : f32 to vector<16x16xf32>
    %589 = arith.mulf %588, %587 : vector<16x16xf32>
    %590 = arith.addf %584, %589 : vector<16x16xf32>
    %c4_579 = arith.constant 4 : index
    %c4_580 = arith.constant 4 : index
    %591 = memref.load %arg2[%c4_579, %c4_580] : memref<10x5xf32, #tpu.memory_space<smem>>
    %c1_581 = arith.constant 1 : index
    %c4_582 = arith.constant 4 : index
    %c0_583 = arith.constant 0 : index
    %c0_584 = arith.constant 0 : index
    %592 = vector.load %arg1[%c1_581, %c4_582, %c0_583, %c0_584] : memref<2x5x16x16xf32, #tpu.memory_space<vmem>>, vector<1x1x16x16xf32>
    %593 = vector.shape_cast %592 : vector<1x1x16x16xf32> to vector<16x16xf32>
    %594 = vector.broadcast %591 : f32 to vector<16x16xf32>
    %595 = arith.mulf %594, %593 : vector<16x16xf32>
    %596 = arith.addf %590, %595 : vector<16x16xf32>
    %c1_585 = arith.constant 1 : index
    %c4_586 = arith.constant 4 : index
    %c1_587 = arith.constant 1 : index
    %c1_588 = arith.constant 1 : index
    %597 = vector.load %arg4[%c1_585, %c4_586, %c1_587, %c1_588] : memref<2x10x18x18xf32, #tpu.memory_space<vmem>>, vector<1x1x16x16xf32>
    %598 = vector.shape_cast %597 : vector<1x1x16x16xf32> to vector<16x16xf32>
    %599 = vector.shape_cast %596 : vector<16x16xf32> to vector<1x1x16x16xf32>
    tpu.vector_store %arg4[%c1_585, %c4_586, %c1_587, %c1_588], %599 {strides = array<i32>} : memref<2x10x18x18xf32, #tpu.memory_space<vmem>>, vector<1x1x16x16xf32>,
    %c5_589 = arith.constant 5 : index
    %600 = memref.load %arg3[%c5_589] : memref<10xf32, #tpu.memory_space<smem>>
    %cst_590 = arith.constant 1.500000e+00 : f32
    %601 = arith.subf %600, %cst_590 : f32
    %602 = vector.broadcast %601 : f32 to vector<18x18xf32>
    %c1_591 = arith.constant 1 : index
    %c5_592 = arith.constant 5 : index
    %c0_593 = arith.constant 0 : index
    %c0_594 = arith.constant 0 : index
    %603 = vector.load %arg4[%c1_591, %c5_592, %c0_593, %c0_594] : memref<2x10x18x18xf32, #tpu.memory_space<vmem>>, vector<1x1x18x18xf32>
    %604 = vector.shape_cast %603 : vector<1x1x18x18xf32> to vector<18x18xf32>
    %605 = vector.shape_cast %602 : vector<18x18xf32> to vector<1x1x18x18xf32>
    tpu.vector_store %arg4[%c1_591, %c5_592, %c0_593, %c0_594], %605 {strides = array<i32>} : memref<2x10x18x18xf32, #tpu.memory_space<vmem>>, vector<1x1x18x18xf32>,
    %606 = vector.broadcast %601 : f32 to vector<16x16xf32>
    %c5_595 = arith.constant 5 : index
    %c0_596 = arith.constant 0 : index
    %607 = memref.load %arg2[%c5_595, %c0_596] : memref<10x5xf32, #tpu.memory_space<smem>>
    %c1_597 = arith.constant 1 : index
    %c0_598 = arith.constant 0 : index
    %c0_599 = arith.constant 0 : index
    %c0_600 = arith.constant 0 : index
    %608 = vector.load %arg1[%c1_597, %c0_598, %c0_599, %c0_600] : memref<2x5x16x16xf32, #tpu.memory_space<vmem>>, vector<1x1x16x16xf32>
    %609 = vector.shape_cast %608 : vector<1x1x16x16xf32> to vector<16x16xf32>
    %610 = vector.broadcast %607 : f32 to vector<16x16xf32>
    %611 = arith.mulf %610, %609 : vector<16x16xf32>
    %612 = arith.addf %606, %611 : vector<16x16xf32>
    %c5_601 = arith.constant 5 : index
    %c1_602 = arith.constant 1 : index
    %613 = memref.load %arg2[%c5_601, %c1_602] : memref<10x5xf32, #tpu.memory_space<smem>>
    %c1_603 = arith.constant 1 : index
    %c1_604 = arith.constant 1 : index
    %c0_605 = arith.constant 0 : index
    %c0_606 = arith.constant 0 : index
    %614 = vector.load %arg1[%c1_603, %c1_604, %c0_605, %c0_606] : memref<2x5x16x16xf32, #tpu.memory_space<vmem>>, vector<1x1x16x16xf32>
    %615 = vector.shape_cast %614 : vector<1x1x16x16xf32> to vector<16x16xf32>
    %616 = vector.broadcast %613 : f32 to vector<16x16xf32>
    %617 = arith.mulf %616, %615 : vector<16x16xf32>
    %618 = arith.addf %612, %617 : vector<16x16xf32>
    %c5_607 = arith.constant 5 : index
    %c2_608 = arith.constant 2 : index
    %619 = memref.load %arg2[%c5_607, %c2_608] : memref<10x5xf32, #tpu.memory_space<smem>>
    %c1_609 = arith.constant 1 : index
    %c2_610 = arith.constant 2 : index
    %c0_611 = arith.constant 0 : index
    %c0_612 = arith.constant 0 : index
    %620 = vector.load %arg1[%c1_609, %c2_610, %c0_611, %c0_612] : memref<2x5x16x16xf32, #tpu.memory_space<vmem>>, vector<1x1x16x16xf32>
    %621 = vector.shape_cast %620 : vector<1x1x16x16xf32> to vector<16x16xf32>
    %622 = vector.broadcast %619 : f32 to vector<16x16xf32>
    %623 = arith.mulf %622, %621 : vector<16x16xf32>
    %624 = arith.addf %618, %623 : vector<16x16xf32>
    %c5_613 = arith.constant 5 : index
    %c3_614 = arith.constant 3 : index
    %625 = memref.load %arg2[%c5_613, %c3_614] : memref<10x5xf32, #tpu.memory_space<smem>>
    %c1_615 = arith.constant 1 : index
    %c3_616 = arith.constant 3 : index
    %c0_617 = arith.constant 0 : index
    %c0_618 = arith.constant 0 : index
    %626 = vector.load %arg1[%c1_615, %c3_616, %c0_617, %c0_618] : memref<2x5x16x16xf32, #tpu.memory_space<vmem>>, vector<1x1x16x16xf32>
    %627 = vector.shape_cast %626 : vector<1x1x16x16xf32> to vector<16x16xf32>
    %628 = vector.broadcast %625 : f32 to vector<16x16xf32>
    %629 = arith.mulf %628, %627 : vector<16x16xf32>
    %630 = arith.addf %624, %629 : vector<16x16xf32>
    %c5_619 = arith.constant 5 : index
    %c4_620 = arith.constant 4 : index
    %631 = memref.load %arg2[%c5_619, %c4_620] : memref<10x5xf32, #tpu.memory_space<smem>>
    %c1_621 = arith.constant 1 : index
    %c4_622 = arith.constant 4 : index
    %c0_623 = arith.constant 0 : index
    %c0_624 = arith.constant 0 : index
    %632 = vector.load %arg1[%c1_621, %c4_622, %c0_623, %c0_624] : memref<2x5x16x16xf32, #tpu.memory_space<vmem>>, vector<1x1x16x16xf32>
    %633 = vector.shape_cast %632 : vector<1x1x16x16xf32> to vector<16x16xf32>
    %634 = vector.broadcast %631 : f32 to vector<16x16xf32>
    %635 = arith.mulf %634, %633 : vector<16x16xf32>
    %636 = arith.addf %630, %635 : vector<16x16xf32>
    %c1_625 = arith.constant 1 : index
    %c5_626 = arith.constant 5 : index
    %c1_627 = arith.constant 1 : index
    %c1_628 = arith.constant 1 : index
    %637 = vector.load %arg4[%c1_625, %c5_626, %c1_627, %c1_628] : memref<2x10x18x18xf32, #tpu.memory_space<vmem>>, vector<1x1x16x16xf32>
    %638 = vector.shape_cast %637 : vector<1x1x16x16xf32> to vector<16x16xf32>
    %639 = vector.shape_cast %636 : vector<16x16xf32> to vector<1x1x16x16xf32>
    tpu.vector_store %arg4[%c1_625, %c5_626, %c1_627, %c1_628], %639 {strides = array<i32>} : memref<2x10x18x18xf32, #tpu.memory_space<vmem>>, vector<1x1x16x16xf32>,
    %c6_629 = arith.constant 6 : index
    %640 = memref.load %arg3[%c6_629] : memref<10xf32, #tpu.memory_space<smem>>
    %cst_630 = arith.constant 1.500000e+00 : f32
    %641 = arith.subf %640, %cst_630 : f32
    %642 = vector.broadcast %641 : f32 to vector<18x18xf32>
    %c1_631 = arith.constant 1 : index
    %c6_632 = arith.constant 6 : index
    %c0_633 = arith.constant 0 : index
    %c0_634 = arith.constant 0 : index
    %643 = vector.load %arg4[%c1_631, %c6_632, %c0_633, %c0_634] : memref<2x10x18x18xf32, #tpu.memory_space<vmem>>, vector<1x1x18x18xf32>
    %644 = vector.shape_cast %643 : vector<1x1x18x18xf32> to vector<18x18xf32>
    %645 = vector.shape_cast %642 : vector<18x18xf32> to vector<1x1x18x18xf32>
    tpu.vector_store %arg4[%c1_631, %c6_632, %c0_633, %c0_634], %645 {strides = array<i32>} : memref<2x10x18x18xf32, #tpu.memory_space<vmem>>, vector<1x1x18x18xf32>,
    %646 = vector.broadcast %641 : f32 to vector<16x16xf32>
    %c6_635 = arith.constant 6 : index
    %c0_636 = arith.constant 0 : index
    %647 = memref.load %arg2[%c6_635, %c0_636] : memref<10x5xf32, #tpu.memory_space<smem>>
    %c1_637 = arith.constant 1 : index
    %c0_638 = arith.constant 0 : index
    %c0_639 = arith.constant 0 : index
    %c0_640 = arith.constant 0 : index
    %648 = vector.load %arg1[%c1_637, %c0_638, %c0_639, %c0_640] : memref<2x5x16x16xf32, #tpu.memory_space<vmem>>, vector<1x1x16x16xf32>
    %649 = vector.shape_cast %648 : vector<1x1x16x16xf32> to vector<16x16xf32>
    %650 = vector.broadcast %647 : f32 to vector<16x16xf32>
    %651 = arith.mulf %650, %649 : vector<16x16xf32>
    %652 = arith.addf %646, %651 : vector<16x16xf32>
    %c6_641 = arith.constant 6 : index
    %c1_642 = arith.constant 1 : index
    %653 = memref.load %arg2[%c6_641, %c1_642] : memref<10x5xf32, #tpu.memory_space<smem>>
    %c1_643 = arith.constant 1 : index
    %c1_644 = arith.constant 1 : index
    %c0_645 = arith.constant 0 : index
    %c0_646 = arith.constant 0 : index
    %654 = vector.load %arg1[%c1_643, %c1_644, %c0_645, %c0_646] : memref<2x5x16x16xf32, #tpu.memory_space<vmem>>, vector<1x1x16x16xf32>
    %655 = vector.shape_cast %654 : vector<1x1x16x16xf32> to vector<16x16xf32>
    %656 = vector.broadcast %653 : f32 to vector<16x16xf32>
    %657 = arith.mulf %656, %655 : vector<16x16xf32>
    %658 = arith.addf %652, %657 : vector<16x16xf32>
    %c6_647 = arith.constant 6 : index
    %c2_648 = arith.constant 2 : index
    %659 = memref.load %arg2[%c6_647, %c2_648] : memref<10x5xf32, #tpu.memory_space<smem>>
    %c1_649 = arith.constant 1 : index
    %c2_650 = arith.constant 2 : index
    %c0_651 = arith.constant 0 : index
    %c0_652 = arith.constant 0 : index
    %660 = vector.load %arg1[%c1_649, %c2_650, %c0_651, %c0_652] : memref<2x5x16x16xf32, #tpu.memory_space<vmem>>, vector<1x1x16x16xf32>
    %661 = vector.shape_cast %660 : vector<1x1x16x16xf32> to vector<16x16xf32>
    %662 = vector.broadcast %659 : f32 to vector<16x16xf32>
    %663 = arith.mulf %662, %661 : vector<16x16xf32>
    %664 = arith.addf %658, %663 : vector<16x16xf32>
    %c6_653 = arith.constant 6 : index
    %c3_654 = arith.constant 3 : index
    %665 = memref.load %arg2[%c6_653, %c3_654] : memref<10x5xf32, #tpu.memory_space<smem>>
    %c1_655 = arith.constant 1 : index
    %c3_656 = arith.constant 3 : index
    %c0_657 = arith.constant 0 : index
    %c0_658 = arith.constant 0 : index
    %666 = vector.load %arg1[%c1_655, %c3_656, %c0_657, %c0_658] : memref<2x5x16x16xf32, #tpu.memory_space<vmem>>, vector<1x1x16x16xf32>
    %667 = vector.shape_cast %666 : vector<1x1x16x16xf32> to vector<16x16xf32>
    %668 = vector.broadcast %665 : f32 to vector<16x16xf32>
    %669 = arith.mulf %668, %667 : vector<16x16xf32>
    %670 = arith.addf %664, %669 : vector<16x16xf32>
    %c6_659 = arith.constant 6 : index
    %c4_660 = arith.constant 4 : index
    %671 = memref.load %arg2[%c6_659, %c4_660] : memref<10x5xf32, #tpu.memory_space<smem>>
    %c1_661 = arith.constant 1 : index
    %c4_662 = arith.constant 4 : index
    %c0_663 = arith.constant 0 : index
    %c0_664 = arith.constant 0 : index
    %672 = vector.load %arg1[%c1_661, %c4_662, %c0_663, %c0_664] : memref<2x5x16x16xf32, #tpu.memory_space<vmem>>, vector<1x1x16x16xf32>
    %673 = vector.shape_cast %672 : vector<1x1x16x16xf32> to vector<16x16xf32>
    %674 = vector.broadcast %671 : f32 to vector<16x16xf32>
    %675 = arith.mulf %674, %673 : vector<16x16xf32>
    %676 = arith.addf %670, %675 : vector<16x16xf32>
    %c1_665 = arith.constant 1 : index
    %c6_666 = arith.constant 6 : index
    %c1_667 = arith.constant 1 : index
    %c1_668 = arith.constant 1 : index
    %677 = vector.load %arg4[%c1_665, %c6_666, %c1_667, %c1_668] : memref<2x10x18x18xf32, #tpu.memory_space<vmem>>, vector<1x1x16x16xf32>
    %678 = vector.shape_cast %677 : vector<1x1x16x16xf32> to vector<16x16xf32>
    %679 = vector.shape_cast %676 : vector<16x16xf32> to vector<1x1x16x16xf32>
    tpu.vector_store %arg4[%c1_665, %c6_666, %c1_667, %c1_668], %679 {strides = array<i32>} : memref<2x10x18x18xf32, #tpu.memory_space<vmem>>, vector<1x1x16x16xf32>,
    %c7_669 = arith.constant 7 : index
    %680 = memref.load %arg3[%c7_669] : memref<10xf32, #tpu.memory_space<smem>>
    %cst_670 = arith.constant 1.500000e+00 : f32
    %681 = arith.subf %680, %cst_670 : f32
    %682 = vector.broadcast %681 : f32 to vector<18x18xf32>
    %c1_671 = arith.constant 1 : index
    %c7_672 = arith.constant 7 : index
    %c0_673 = arith.constant 0 : index
    %c0_674 = arith.constant 0 : index
    %683 = vector.load %arg4[%c1_671, %c7_672, %c0_673, %c0_674] : memref<2x10x18x18xf32, #tpu.memory_space<vmem>>, vector<1x1x18x18xf32>
    %684 = vector.shape_cast %683 : vector<1x1x18x18xf32> to vector<18x18xf32>
    %685 = vector.shape_cast %682 : vector<18x18xf32> to vector<1x1x18x18xf32>
    tpu.vector_store %arg4[%c1_671, %c7_672, %c0_673, %c0_674], %685 {strides = array<i32>} : memref<2x10x18x18xf32, #tpu.memory_space<vmem>>, vector<1x1x18x18xf32>,
    %686 = vector.broadcast %681 : f32 to vector<16x16xf32>
    %c7_675 = arith.constant 7 : index
    %c0_676 = arith.constant 0 : index
    %687 = memref.load %arg2[%c7_675, %c0_676] : memref<10x5xf32, #tpu.memory_space<smem>>
    %c1_677 = arith.constant 1 : index
    %c0_678 = arith.constant 0 : index
    %c0_679 = arith.constant 0 : index
    %c0_680 = arith.constant 0 : index
    %688 = vector.load %arg1[%c1_677, %c0_678, %c0_679, %c0_680] : memref<2x5x16x16xf32, #tpu.memory_space<vmem>>, vector<1x1x16x16xf32>
    %689 = vector.shape_cast %688 : vector<1x1x16x16xf32> to vector<16x16xf32>
    %690 = vector.broadcast %687 : f32 to vector<16x16xf32>
    %691 = arith.mulf %690, %689 : vector<16x16xf32>
    %692 = arith.addf %686, %691 : vector<16x16xf32>
    %c7_681 = arith.constant 7 : index
    %c1_682 = arith.constant 1 : index
    %693 = memref.load %arg2[%c7_681, %c1_682] : memref<10x5xf32, #tpu.memory_space<smem>>
    %c1_683 = arith.constant 1 : index
    %c1_684 = arith.constant 1 : index
    %c0_685 = arith.constant 0 : index
    %c0_686 = arith.constant 0 : index
    %694 = vector.load %arg1[%c1_683, %c1_684, %c0_685, %c0_686] : memref<2x5x16x16xf32, #tpu.memory_space<vmem>>, vector<1x1x16x16xf32>
    %695 = vector.shape_cast %694 : vector<1x1x16x16xf32> to vector<16x16xf32>
    %696 = vector.broadcast %693 : f32 to vector<16x16xf32>
    %697 = arith.mulf %696, %695 : vector<16x16xf32>
    %698 = arith.addf %692, %697 : vector<16x16xf32>
    %c7_687 = arith.constant 7 : index
    %c2_688 = arith.constant 2 : index
    %699 = memref.load %arg2[%c7_687, %c2_688] : memref<10x5xf32, #tpu.memory_space<smem>>
    %c1_689 = arith.constant 1 : index
    %c2_690 = arith.constant 2 : index
    %c0_691 = arith.constant 0 : index
    %c0_692 = arith.constant 0 : index
    %700 = vector.load %arg1[%c1_689, %c2_690, %c0_691, %c0_692] : memref<2x5x16x16xf32, #tpu.memory_space<vmem>>, vector<1x1x16x16xf32>
    %701 = vector.shape_cast %700 : vector<1x1x16x16xf32> to vector<16x16xf32>
    %702 = vector.broadcast %699 : f32 to vector<16x16xf32>
    %703 = arith.mulf %702, %701 : vector<16x16xf32>
    %704 = arith.addf %698, %703 : vector<16x16xf32>
    %c7_693 = arith.constant 7 : index
    %c3_694 = arith.constant 3 : index
    %705 = memref.load %arg2[%c7_693, %c3_694] : memref<10x5xf32, #tpu.memory_space<smem>>
    %c1_695 = arith.constant 1 : index
    %c3_696 = arith.constant 3 : index
    %c0_697 = arith.constant 0 : index
    %c0_698 = arith.constant 0 : index
    %706 = vector.load %arg1[%c1_695, %c3_696, %c0_697, %c0_698] : memref<2x5x16x16xf32, #tpu.memory_space<vmem>>, vector<1x1x16x16xf32>
    %707 = vector.shape_cast %706 : vector<1x1x16x16xf32> to vector<16x16xf32>
    %708 = vector.broadcast %705 : f32 to vector<16x16xf32>
    %709 = arith.mulf %708, %707 : vector<16x16xf32>
    %710 = arith.addf %704, %709 : vector<16x16xf32>
    %c7_699 = arith.constant 7 : index
    %c4_700 = arith.constant 4 : index
    %711 = memref.load %arg2[%c7_699, %c4_700] : memref<10x5xf32, #tpu.memory_space<smem>>
    %c1_701 = arith.constant 1 : index
    %c4_702 = arith.constant 4 : index
    %c0_703 = arith.constant 0 : index
    %c0_704 = arith.constant 0 : index
    %712 = vector.load %arg1[%c1_701, %c4_702, %c0_703, %c0_704] : memref<2x5x16x16xf32, #tpu.memory_space<vmem>>, vector<1x1x16x16xf32>
    %713 = vector.shape_cast %712 : vector<1x1x16x16xf32> to vector<16x16xf32>
    %714 = vector.broadcast %711 : f32 to vector<16x16xf32>
    %715 = arith.mulf %714, %713 : vector<16x16xf32>
    %716 = arith.addf %710, %715 : vector<16x16xf32>
    %c1_705 = arith.constant 1 : index
    %c7_706 = arith.constant 7 : index
    %c1_707 = arith.constant 1 : index
    %c1_708 = arith.constant 1 : index
    %717 = vector.load %arg4[%c1_705, %c7_706, %c1_707, %c1_708] : memref<2x10x18x18xf32, #tpu.memory_space<vmem>>, vector<1x1x16x16xf32>
    %718 = vector.shape_cast %717 : vector<1x1x16x16xf32> to vector<16x16xf32>
    %719 = vector.shape_cast %716 : vector<16x16xf32> to vector<1x1x16x16xf32>
    tpu.vector_store %arg4[%c1_705, %c7_706, %c1_707, %c1_708], %719 {strides = array<i32>} : memref<2x10x18x18xf32, #tpu.memory_space<vmem>>, vector<1x1x16x16xf32>,
    %c8_709 = arith.constant 8 : index
    %720 = memref.load %arg3[%c8_709] : memref<10xf32, #tpu.memory_space<smem>>
    %cst_710 = arith.constant 1.500000e+00 : f32
    %721 = arith.subf %720, %cst_710 : f32
    %722 = vector.broadcast %721 : f32 to vector<18x18xf32>
    %c1_711 = arith.constant 1 : index
    %c8_712 = arith.constant 8 : index
    %c0_713 = arith.constant 0 : index
    %c0_714 = arith.constant 0 : index
    %723 = vector.load %arg4[%c1_711, %c8_712, %c0_713, %c0_714] : memref<2x10x18x18xf32, #tpu.memory_space<vmem>>, vector<1x1x18x18xf32>
    %724 = vector.shape_cast %723 : vector<1x1x18x18xf32> to vector<18x18xf32>
    %725 = vector.shape_cast %722 : vector<18x18xf32> to vector<1x1x18x18xf32>
    tpu.vector_store %arg4[%c1_711, %c8_712, %c0_713, %c0_714], %725 {strides = array<i32>} : memref<2x10x18x18xf32, #tpu.memory_space<vmem>>, vector<1x1x18x18xf32>,
    %726 = vector.broadcast %721 : f32 to vector<16x16xf32>
    %c8_715 = arith.constant 8 : index
    %c0_716 = arith.constant 0 : index
    %727 = memref.load %arg2[%c8_715, %c0_716] : memref<10x5xf32, #tpu.memory_space<smem>>
    %c1_717 = arith.constant 1 : index
    %c0_718 = arith.constant 0 : index
    %c0_719 = arith.constant 0 : index
    %c0_720 = arith.constant 0 : index
    %728 = vector.load %arg1[%c1_717, %c0_718, %c0_719, %c0_720] : memref<2x5x16x16xf32, #tpu.memory_space<vmem>>, vector<1x1x16x16xf32>
    %729 = vector.shape_cast %728 : vector<1x1x16x16xf32> to vector<16x16xf32>
    %730 = vector.broadcast %727 : f32 to vector<16x16xf32>
    %731 = arith.mulf %730, %729 : vector<16x16xf32>
    %732 = arith.addf %726, %731 : vector<16x16xf32>
    %c8_721 = arith.constant 8 : index
    %c1_722 = arith.constant 1 : index
    %733 = memref.load %arg2[%c8_721, %c1_722] : memref<10x5xf32, #tpu.memory_space<smem>>
    %c1_723 = arith.constant 1 : index
    %c1_724 = arith.constant 1 : index
    %c0_725 = arith.constant 0 : index
    %c0_726 = arith.constant 0 : index
    %734 = vector.load %arg1[%c1_723, %c1_724, %c0_725, %c0_726] : memref<2x5x16x16xf32, #tpu.memory_space<vmem>>, vector<1x1x16x16xf32>
    %735 = vector.shape_cast %734 : vector<1x1x16x16xf32> to vector<16x16xf32>
    %736 = vector.broadcast %733 : f32 to vector<16x16xf32>
    %737 = arith.mulf %736, %735 : vector<16x16xf32>
    %738 = arith.addf %732, %737 : vector<16x16xf32>
    %c8_727 = arith.constant 8 : index
    %c2_728 = arith.constant 2 : index
    %739 = memref.load %arg2[%c8_727, %c2_728] : memref<10x5xf32, #tpu.memory_space<smem>>
    %c1_729 = arith.constant 1 : index
    %c2_730 = arith.constant 2 : index
    %c0_731 = arith.constant 0 : index
    %c0_732 = arith.constant 0 : index
    %740 = vector.load %arg1[%c1_729, %c2_730, %c0_731, %c0_732] : memref<2x5x16x16xf32, #tpu.memory_space<vmem>>, vector<1x1x16x16xf32>
    %741 = vector.shape_cast %740 : vector<1x1x16x16xf32> to vector<16x16xf32>
    %742 = vector.broadcast %739 : f32 to vector<16x16xf32>
    %743 = arith.mulf %742, %741 : vector<16x16xf32>
    %744 = arith.addf %738, %743 : vector<16x16xf32>
    %c8_733 = arith.constant 8 : index
    %c3_734 = arith.constant 3 : index
    %745 = memref.load %arg2[%c8_733, %c3_734] : memref<10x5xf32, #tpu.memory_space<smem>>
    %c1_735 = arith.constant 1 : index
    %c3_736 = arith.constant 3 : index
    %c0_737 = arith.constant 0 : index
    %c0_738 = arith.constant 0 : index
    %746 = vector.load %arg1[%c1_735, %c3_736, %c0_737, %c0_738] : memref<2x5x16x16xf32, #tpu.memory_space<vmem>>, vector<1x1x16x16xf32>
    %747 = vector.shape_cast %746 : vector<1x1x16x16xf32> to vector<16x16xf32>
    %748 = vector.broadcast %745 : f32 to vector<16x16xf32>
    %749 = arith.mulf %748, %747 : vector<16x16xf32>
    %750 = arith.addf %744, %749 : vector<16x16xf32>
    %c8_739 = arith.constant 8 : index
    %c4_740 = arith.constant 4 : index
    %751 = memref.load %arg2[%c8_739, %c4_740] : memref<10x5xf32, #tpu.memory_space<smem>>
    %c1_741 = arith.constant 1 : index
    %c4_742 = arith.constant 4 : index
    %c0_743 = arith.constant 0 : index
    %c0_744 = arith.constant 0 : index
    %752 = vector.load %arg1[%c1_741, %c4_742, %c0_743, %c0_744] : memref<2x5x16x16xf32, #tpu.memory_space<vmem>>, vector<1x1x16x16xf32>
    %753 = vector.shape_cast %752 : vector<1x1x16x16xf32> to vector<16x16xf32>
    %754 = vector.broadcast %751 : f32 to vector<16x16xf32>
    %755 = arith.mulf %754, %753 : vector<16x16xf32>
    %756 = arith.addf %750, %755 : vector<16x16xf32>
    %c1_745 = arith.constant 1 : index
    %c8_746 = arith.constant 8 : index
    %c1_747 = arith.constant 1 : index
    %c1_748 = arith.constant 1 : index
    %757 = vector.load %arg4[%c1_745, %c8_746, %c1_747, %c1_748] : memref<2x10x18x18xf32, #tpu.memory_space<vmem>>, vector<1x1x16x16xf32>
    %758 = vector.shape_cast %757 : vector<1x1x16x16xf32> to vector<16x16xf32>
    %759 = vector.shape_cast %756 : vector<16x16xf32> to vector<1x1x16x16xf32>
    tpu.vector_store %arg4[%c1_745, %c8_746, %c1_747, %c1_748], %759 {strides = array<i32>} : memref<2x10x18x18xf32, #tpu.memory_space<vmem>>, vector<1x1x16x16xf32>,
    %c9_749 = arith.constant 9 : index
    %760 = memref.load %arg3[%c9_749] : memref<10xf32, #tpu.memory_space<smem>>
    %cst_750 = arith.constant 1.500000e+00 : f32
    %761 = arith.subf %760, %cst_750 : f32
    %762 = vector.broadcast %761 : f32 to vector<18x18xf32>
    %c1_751 = arith.constant 1 : index
    %c9_752 = arith.constant 9 : index
    %c0_753 = arith.constant 0 : index
    %c0_754 = arith.constant 0 : index
    %763 = vector.load %arg4[%c1_751, %c9_752, %c0_753, %c0_754] : memref<2x10x18x18xf32, #tpu.memory_space<vmem>>, vector<1x1x18x18xf32>
    %764 = vector.shape_cast %763 : vector<1x1x18x18xf32> to vector<18x18xf32>
    %765 = vector.shape_cast %762 : vector<18x18xf32> to vector<1x1x18x18xf32>
    tpu.vector_store %arg4[%c1_751, %c9_752, %c0_753, %c0_754], %765 {strides = array<i32>} : memref<2x10x18x18xf32, #tpu.memory_space<vmem>>, vector<1x1x18x18xf32>,
    %766 = vector.broadcast %761 : f32 to vector<16x16xf32>
    %c9_755 = arith.constant 9 : index
    %c0_756 = arith.constant 0 : index
    %767 = memref.load %arg2[%c9_755, %c0_756] : memref<10x5xf32, #tpu.memory_space<smem>>
    %c1_757 = arith.constant 1 : index
    %c0_758 = arith.constant 0 : index
    %c0_759 = arith.constant 0 : index
    %c0_760 = arith.constant 0 : index
    %768 = vector.load %arg1[%c1_757, %c0_758, %c0_759, %c0_760] : memref<2x5x16x16xf32, #tpu.memory_space<vmem>>, vector<1x1x16x16xf32>
    %769 = vector.shape_cast %768 : vector<1x1x16x16xf32> to vector<16x16xf32>
    %770 = vector.broadcast %767 : f32 to vector<16x16xf32>
    %771 = arith.mulf %770, %769 : vector<16x16xf32>
    %772 = arith.addf %766, %771 : vector<16x16xf32>
    %c9_761 = arith.constant 9 : index
    %c1_762 = arith.constant 1 : index
    %773 = memref.load %arg2[%c9_761, %c1_762] : memref<10x5xf32, #tpu.memory_space<smem>>
    %c1_763 = arith.constant 1 : index
    %c1_764 = arith.constant 1 : index
    %c0_765 = arith.constant 0 : index
    %c0_766 = arith.constant 0 : index
    %774 = vector.load %arg1[%c1_763, %c1_764, %c0_765, %c0_766] : memref<2x5x16x16xf32, #tpu.memory_space<vmem>>, vector<1x1x16x16xf32>
    %775 = vector.shape_cast %774 : vector<1x1x16x16xf32> to vector<16x16xf32>
    %776 = vector.broadcast %773 : f32 to vector<16x16xf32>
    %777 = arith.mulf %776, %775 : vector<16x16xf32>
    %778 = arith.addf %772, %777 : vector<16x16xf32>
    %c9_767 = arith.constant 9 : index
    %c2_768 = arith.constant 2 : index
    %779 = memref.load %arg2[%c9_767, %c2_768] : memref<10x5xf32, #tpu.memory_space<smem>>
    %c1_769 = arith.constant 1 : index
    %c2_770 = arith.constant 2 : index
    %c0_771 = arith.constant 0 : index
    %c0_772 = arith.constant 0 : index
    %780 = vector.load %arg1[%c1_769, %c2_770, %c0_771, %c0_772] : memref<2x5x16x16xf32, #tpu.memory_space<vmem>>, vector<1x1x16x16xf32>
    %781 = vector.shape_cast %780 : vector<1x1x16x16xf32> to vector<16x16xf32>
    %782 = vector.broadcast %779 : f32 to vector<16x16xf32>
    %783 = arith.mulf %782, %781 : vector<16x16xf32>
    %784 = arith.addf %778, %783 : vector<16x16xf32>
    %c9_773 = arith.constant 9 : index
    %c3_774 = arith.constant 3 : index
    %785 = memref.load %arg2[%c9_773, %c3_774] : memref<10x5xf32, #tpu.memory_space<smem>>
    %c1_775 = arith.constant 1 : index
    %c3_776 = arith.constant 3 : index
    %c0_777 = arith.constant 0 : index
    %c0_778 = arith.constant 0 : index
    %786 = vector.load %arg1[%c1_775, %c3_776, %c0_777, %c0_778] : memref<2x5x16x16xf32, #tpu.memory_space<vmem>>, vector<1x1x16x16xf32>
    %787 = vector.shape_cast %786 : vector<1x1x16x16xf32> to vector<16x16xf32>
    %788 = vector.broadcast %785 : f32 to vector<16x16xf32>
    %789 = arith.mulf %788, %787 : vector<16x16xf32>
    %790 = arith.addf %784, %789 : vector<16x16xf32>
    %c9_779 = arith.constant 9 : index
    %c4_780 = arith.constant 4 : index
    %791 = memref.load %arg2[%c9_779, %c4_780] : memref<10x5xf32, #tpu.memory_space<smem>>
    %c1_781 = arith.constant 1 : index
    %c4_782 = arith.constant 4 : index
    %c0_783 = arith.constant 0 : index
    %c0_784 = arith.constant 0 : index
    %792 = vector.load %arg1[%c1_781, %c4_782, %c0_783, %c0_784] : memref<2x5x16x16xf32, #tpu.memory_space<vmem>>, vector<1x1x16x16xf32>
    %793 = vector.shape_cast %792 : vector<1x1x16x16xf32> to vector<16x16xf32>
    %794 = vector.broadcast %791 : f32 to vector<16x16xf32>
    %795 = arith.mulf %794, %793 : vector<16x16xf32>
    %796 = arith.addf %790, %795 : vector<16x16xf32>
    %c1_785 = arith.constant 1 : index
    %c9_786 = arith.constant 9 : index
    %c1_787 = arith.constant 1 : index
    %c1_788 = arith.constant 1 : index
    %797 = vector.load %arg4[%c1_785, %c9_786, %c1_787, %c1_788] : memref<2x10x18x18xf32, #tpu.memory_space<vmem>>, vector<1x1x16x16xf32>
    %798 = vector.shape_cast %797 : vector<1x1x16x16xf32> to vector<16x16xf32>
    %799 = vector.shape_cast %796 : vector<16x16xf32> to vector<1x1x16x16xf32>
    tpu.vector_store %arg4[%c1_785, %c9_786, %c1_787, %c1_788], %799 {strides = array<i32>} : memref<2x10x18x18xf32, #tpu.memory_space<vmem>>, vector<1x1x16x16xf32>,
    return
  }
  func.func @transform_0(%arg0: i32) -> (i32, i32, i32, i32) {
    %c0_i32 = arith.constant 0 : i32
    %c0_i32_0 = arith.constant 0 : i32
    %c0_i32_1 = arith.constant 0 : i32
    %c0_i32_2 = arith.constant 0 : i32
    return %arg0, %c0_i32, %c0_i32_0, %c0_i32_1 : i32, i32, i32, i32
  }
  func.func @transform_1(%arg0: i32) -> (i32, i32) {
    %c0_i32 = arith.constant 0 : i32
    %c0_i32_0 = arith.constant 0 : i32
    %c0_i32_1 = arith.constant 0 : i32
    return %c0_i32, %c0_i32_0 : i32, i32
  }
  func.func @transform_2(%arg0: i32) -> i32 {
    %c0_i32 = arith.constant 0 : i32
    %c0_i32_0 = arith.constant 0 : i32
    return %c0_i32 : i32
  }
  func.func @transform_3(%arg0: i32) -> (i32, i32, i32, i32) {
    %c0_i32 = arith.constant 0 : i32
    %c0_i32_0 = arith.constant 0 : i32
    %c0_i32_1 = arith.constant 0 : i32
    %c0_i32_2 = arith.constant 0 : i32
    return %arg0, %c0_i32, %c0_i32_0, %c0_i32_1 : i32, i32, i32, i32
  }
}

</mosaic_0001>

<bundles_post_ra>
// kernel: conv1x1_pad1_sub.1
= control target key start
LH: loop header
LB: loop body
LE: loop exit
PB: predicated region body
PF: predicated region fallthrough
CT: control target
= control target key end

     0   :  { %8 = vsyncpa [#allocation3], 0  ;;  %s2827_s0 = inlined_call_operand.hbm [shape: f32[2,5,16,16], index: 0, kind: input, shape index: {}]   ;;  %s2828_s1 = inlined_call_operand.vmem [shape: f32[10,5], index: 1, kind: input, shape index: {}]   ;;  %s2829_s2 = inlined_call_operand.vmem [shape: f32[10], index: 2, kind: input, shape index: {}]   ;;  %s2830_s3 = inlined_call_operand.vmem [shape: f32[2,10,18,18], index: 3, kind: output, shape index: {}]  }
   0x1   :  { %9 = vsyncpa [#allocation4], 0 }
   0x2   :  { %10 = vsyncpa [#allocation7], 0  ;;  %s1506_s12 = smov [#allocation2]   ;;  %s28_s16 = sshll.u32 %s2828_s1, 4  ;;  %s29_s16 = int_to_ptr.vmem [resolvable:$true] %s28_s16 }
   0x3   :  { %s16_s13 = sshll.u32 %s1506_s12, 4  ;;  %s17_s13 = int_to_ptr.vmem [resolvable:$true] %s16_s13 }
   0x4   :  { %s1464_s17 = scalar_lea.vmem %s17_s13, 2560  ;;  %p1469_p1 = scmp.lt.s32.totalorder %s17_s13, %s17_s13 }
   0x5   :  { %p1465_p0 = scmp.ne.s32.totalorder %s17_s13, %s1464_s17  ;;  %p1470_p2 = scmp.lt.s32.totalorder %s1464_s17, %s1464_s17 }
   0x7   :  { %p1471_p3 = por %p1470_p2, %p1469_p1 }
   0x9   :  { %p1472_p4 = pnand %p1471_p3, %p1465_p0 }
   0xb   :  { %1475 = shalt.err (!%p1472_p4)
}
   0xc   :  { %s1507_s18 = smov 128   ;;  %s1508_s19 = smov 8  }
   0xd   :  { %22 = dma.hbm_to_vmem [thread:$0]  %s2827_s0, 2560, %s17_s13, [#allocation3], %s1507_s18, %s1507_s18, %s1508_s19  }
   0xe   :  { %s1476_s22 = scalar_lea.vmem %s29_s16, 256  ;;  %p1481_p6 = scmp.lt.s32.totalorder %s29_s16, %s29_s16 }
   0xf   :  { %p1477_p5 = scmp.ne.s32.totalorder %s29_s16, %s1476_s22  ;;  %p1482_p7 = scmp.lt.s32.totalorder %s1476_s22, %s1476_s22 }
  0x11   :  { %p1483_p8 = por %p1482_p7, %p1481_p6 }
  0x13   :  { %p1484_p9 = pnand %p1483_p8, %p1477_p5 }
  0x15   :  { %1487 = shalt.err (!%p1484_p9)
}
  0x16   :  { %s1509_s1 = smov [#allocation5]   ;;  %s41_s25 = sshll.u32 %s2829_s2, 4  ;;  %s42_s25 = int_to_ptr.vmem [resolvable:$true] %s41_s25 }
  0x17   :  { %34 = dma.vmem_to_smem %s29_s16, 256, %s1509_s1, [#allocation4], %s1507_s18, %s1507_s18, %s1508_s19  }
  0x18   :  { %s1488_s26 = scalar_lea.vmem %s42_s25, 16  ;;  %p1493_p11 = scmp.lt.s32.totalorder %s42_s25, %s42_s25 }
  0x19   :  { %p1489_p10 = scmp.ne.s32.totalorder %s42_s25, %s1488_s26  ;;  %p1494_p12 = scmp.lt.s32.totalorder %s1488_s26, %s1488_s26 }
  0x1b   :  { %p1495_p13 = por %p1494_p12, %p1493_p11 }
  0x1d   :  { %p1496_p0 = pnand %p1495_p13, %p1489_p10 }
  0x1f   :  { %1499 = shalt.err (!%p1496_p0)
}
  0x20   :  { %s1510_s0 = smov [#allocation6]  }
  0x21   :  { %44 = dma.vmem_to_smem %s42_s25, 16, %s1510_s0, [#allocation7]  }
  0x22   :  { %1500 = dma.done.wait [#allocation3], 2560  }
  0x23   :  { %1501 = vsyncadd [#allocation3], 4294964736 }
  0x24   :  { %1502 = dma.done.wait [#allocation4], 256  }
  0x25   :  { %1503 = vsyncadd [#allocation4], 4294967040 }
  0x26   :  { %1504 = dma.done.wait [#allocation7], 16  }
  0x27   :  { %1505 = vsyncadd [#allocation7], 4294967280 }
  0x28   :  { %54 = sfence }
  0x29   :  { %s1218_s27 = sld [smem:[#allocation6 + $0x1]]  ;;  %v1543_v0 = vld [vmem:[#allocation2] sm:$0xff]  ;;  %v1545_v1 = vld [vmem:[#allocation2 + $0x8] sm:$0xff]  ;;  %v1549_v2 = vld [vmem:[#allocation2 + $0x10] sm:$0xff]  ;;  %vm58_vm0 = vcmask 146432   ;;  %vm61_vm1 = vcmask 140288  }
  0x2a   :  { %s1223_s28 = sld [smem:[#allocation5 + $0x80]]  ;;  %v1551_v3 = vld [vmem:[#allocation2 + $0x18] sm:$0xff]  ;;  %v1555_v5 = vld [vmem:[#allocation2 + $0x20] sm:$0xff]  ;;  %v1567_v10 = vld [vmem:[#allocation2 + $0x28] sm:$0xff]  ;;  %vm115_vm2 = vcmask 138248  }
  0x2b   :  { %s1224_s2 = sld [smem:[#allocation5 + $0x81]]  ;;  %v1571_v11 = vld [vmem:[#allocation2 + $0x58] sm:$0xff]  ;;  %v1579_v15 = vld [vmem:[#allocation2 + $0x30] sm:$0xff]  ;;  %v1583_v17 = vld [vmem:[#allocation2 + $0x40] sm:$0xff] }
  0x2c   :  { %s1225_s29 = sld [smem:[#allocation5 + $0x82]]  ;;  %v1581_v16 = vld [vmem:[#allocation2 + $0x38] sm:$0xff]  ;;  %v1615_v22 = vld [vmem:[#allocation2 + $0x48] sm:$0xff]  ;;  %v1688_v50 = vld [vmem:[#allocation2 + $0x50] sm:$0xff] }
  0x2d   :  { %s1541_s30 = sld [smem:[#allocation5 + $0x83]]  ;;  %v1635_v30 = vld [vmem:[#allocation2 + $0x68] sm:$0xff]  ;;  %v1640_v33 = vld [vmem:[#allocation2 + $0x78] sm:$0xff] }
  0x2e   :  { %s1547_s4 = sld [smem:[#allocation5 + $0x84]]  ;;  %v1642_v34 = vld [vmem:[#allocation2 + $0x88] sm:$0xff]  ;;  %v1656_v39 = vld [vmem:[#allocation2 + $0x98] sm:$0xff] }
  0x2f   :  { %s1219_s5 = sadd.f32 -1.5, %s1218_s27 }
  0x30   :  { %v1553_v4 = vstv %s1223_s28  ;;  %s1557_s6 = sld [smem:[#allocation6]] }
  0x31   :  { %v1559_v6 = vstv %s1219_s5  ;;  %v129_v7 = vmul.f32 %v1553_v4, %v1543_v0  ;;  %v130_v8 = vmul.f32 %v1553_v4, %v1545_v1  ;;  %v1565_v9 = vstv %s1224_s2  ;;  %s1569_s7 = sld [smem:[#allocation5]]  ;;  %s1511_s5 = smov 1  }
  0x32   :  { %v137_v12 = vmul.f32 %v1565_v9, %v1549_v2  ;;  %v138_v13 = vmul.f32 %v1565_v9, %v1551_v3  ;;  %v1577_v14 = vstv %s1225_s29  ;;  %s1585_s8 = sld [smem:[#allocation5 + $0x1]]  ;;  %v705_v18 = vmul.f32 %v1571_v11, %v1553_v4  ;;  %1220 = vst.msk [vmem:[%s2830_s3 + $0x18] sm:$0xff] %vm58_vm0, %v1559_v6  ;;  %1221 = vst.msk [vmem:[%s2830_s3 + $0x20] sm:$0xff] %vm58_vm0, %v1559_v6 }
  0x33   :  { %1338 = vst.msk [vmem:[%s2830_s3 + $0x108] sm:$0xff] %vm58_vm0, %v1559_v6  ;;  %1339 = vst.msk [vmem:[%s2830_s3 + $0x110] sm:$0xff] %vm58_vm0, %v1559_v6  ;;  %v131_v19 = vadd.f32 %v129_v7, %v1559_v6  ;;  %v145_v20 = vmul.f32 %v1577_v14, %v1555_v5  ;;  %v1613_v21 = vstv %s1541_s30  ;;  %s1617_s17 = sld [smem:[#allocation5 + $0x2]]  ;;  %v146_v23 = vmul.f32 %v1577_v14, %v1567_v10 }
  0x34   :  { %v1622_v24 = vstv %s1547_s4  ;;  %s1624_s18 = sld [smem:[#allocation5 + $0x3]]  ;;  %v132_v25 = vadd.f32 %v130_v8, %v1559_v6  ;;  %v153_v27 = vmul.f32 %v1613_v21, %v1579_v15  ;;  %v154_v28 = vmul.f32 %v1613_v21, %v1581_v16  ;;  %1222 = vst.msk [vmem:[%s2830_s3 + $0x28] sm:$0x3] %vm61_vm1, %v1559_v6  ;;  %1340 = vst.msk [vmem:[%s2830_s3 + $0x118] sm:$0x3] %vm61_vm1, %v1559_v6 }
  0x35   :  { %v139_v26 = vadd.f32 %v137_v12, %v131_v19  ;;  %v161_v29 = vmul.f32 %v1622_v24, %v1583_v17  ;;  %s1633_s19 = sld [smem:[#allocation5 + $0x4]]  ;;  %v162_v31 = vmul.f32 %v1622_v24, %v1615_v22  ;;  %v1645_v35 = vadd.f32 %v705_v18, %v1559_v6 }
  0x36   :  { %s1213_s20 = sadd.f32 -1.5, %s1557_s6  ;;  %v140_v32 = vadd.f32 %v138_v13, %v132_v25  ;;  %v1649_v36 = vmul.f32 %v1635_v30, %v1565_v9  ;;  %v1660_v40 = vmul.f32 %v1640_v33, %v1577_v14  ;;  %v1664_v41 = vmul.f32 %v1642_v34, %v1613_v21 }
  0x37   :  { %v147_v37 = vadd.f32 %v145_v20, %v139_v26  ;;  %v1652_v38 = vstv %s1569_s7  ;;  %s1654_s21 = sld [smem:[#allocation6 + $0x2]]  ;;  %v1677_v45 = vmul.f32 %v1656_v39, %v1622_v24  ;;  %v1720_v54 = vmul.f32 %v1688_v50, %v1553_v4 }
  0x38   :  { %v1666_v42 = vstv %s1213_s20  ;;  %v67_v43 = vmul.f32 %v1543_v0, %v1652_v38  ;;  %v1671_v44 = vstv %s1585_s8  ;;  %s1673_s22 = sld [smem:[#allocation5 + $0x100]]  ;;  %v68_v47 = vmul.f32 %v1545_v1, %v1652_v38 }
  0x39   :  { %2901 = vst [vmem:[#allocation11_spill] sm:$0xff] %v1666_v42  ;;  %v155_v46 = vadd.f32 %v153_v27, %v147_v37  ;;  %v76_v48 = vmul.f32 %v1549_v2, %v1671_v44  ;;  %v1684_v49 = vstv %s1617_s17  ;;  %s1686_s1 = sld [smem:[#allocation5 + $0x101]]  ;;  %59 = vst.msk [vmem:[%s2830_s3] sm:$0xff] %vm58_vm0, %v1666_v42  ;;  %v77_v56 = vmul.f32 %v1551_v3, %v1671_v44 }
  0x3a   :  { %60 = vst.msk [vmem:[%s2830_s3 + $0x8] sm:$0xff] %vm58_vm0, %v1666_v42  ;;  %1327 = vst.msk [vmem:[%s2830_s3 + $0xf0] sm:$0xff] %vm58_vm0, %v1666_v42  ;;  %v69_v51 = vadd.f32 %v67_v43, %v1666_v42  ;;  %v85_v52 = vmul.f32 %v1555_v5, %v1684_v49  ;;  %v1714_v53 = vstv %s1624_s18  ;;  %s1716_s29 = sld [smem:[#allocation5 + $0x102]]  ;;  %v86_v57 = vmul.f32 %v1567_v10, %v1684_v49 }
  0x3b   :  { %1328 = vst.msk [vmem:[%s2830_s3 + $0xf8] sm:$0xff] %vm58_vm0, %v1666_v42  ;;  %v163_v55 = vadd.f32 %v161_v29, %v155_v46  ;;  %v1727_v58 = vstv %s1633_s19  ;;  %s1729_s30 = sld [smem:[#allocation5 + $0x103]]  ;;  %v94_v60 = vmul.f32 %v1579_v15, %v1714_v53  ;;  %v95_v61 = vmul.f32 %v1581_v16, %v1714_v53 }
  0x3c   :  { %v78_v59 = vadd.f32 %v76_v48, %v69_v51  ;;  %v148_v62 = vadd.f32 %v146_v23, %v140_v32  ;;  %s1735_s4 = sld [smem:[#allocation5 + $0x104]]  ;;  %v103_v63 = vmul.f32 %v1583_v17, %v1727_v58  ;;  %v104_v4 = vmul.f32 %v1615_v22, %v1727_v58 }
  0x3d   :  { %167 = vrot.lane.b32.xlu1 %v163_v55, %s1511_s5  ;;  %v70_v7 = vadd.f32 %v68_v47, %v1666_v42  ;;  %s1231_s6 = sadd.f32 -1.5, %s1654_s21  ;;  %v1746_v8 = vmul.f32 %v1571_v11, %v1652_v38  ;;  %v1755_v19 = vmul.f32 %v1635_v30, %v1671_v44 }
  0x3e   :  { %v87_v12 = vadd.f32 %v85_v52, %v78_v59  ;;  %v156_v13 = vadd.f32 %v154_v28, %v148_v62  ;;  %v1749_v18 = vstv %s1673_s22  ;;  %s1751_s7 = sld [smem:[#allocation6 + $0x3]]  ;;  %v1809_v52 = vmul.f32 %v1640_v33, %v1684_v49 }
  0x3f   :  { %v79_v20 = vadd.f32 %v77_v56, %v70_v7  ;;  %v1757_v23 = vstv %s1231_s6  ;;  %v187_v25 = vmul.f32 %v1749_v18, %v1545_v1  ;;  %v1762_v26 = vstv %s1686_s1  ;;  %s1764_s8 = sld [smem:[#allocation5 + $0x180]] }
  0x40   :  { %v96_v27 = vadd.f32 %v94_v60, %v87_v12  ;;  %v164_v28 = vadd.f32 %v162_v31, %v156_v13  ;;  %v195_v29 = vmul.f32 %v1762_v26, %v1551_v3  ;;  %v1769_v32 = vstv %s1716_s29  ;;  %s1771_s9 = sld [smem:[#allocation5 + $0x181]]  ;;  %1232 = vst.msk [vmem:[%s2830_s3 + $0x30] sm:$0xff] %vm58_vm0, %v1757_v23  ;;  %1233 = vst.msk [vmem:[%s2830_s3 + $0x38] sm:$0xff] %vm58_vm0, %v1757_v23 }
  0x41   :  { %1350 = vst.msk [vmem:[%s2830_s3 + $0x120] sm:$0xff] %vm58_vm0, %v1757_v23  ;;  %1351 = vst.msk [vmem:[%s2830_s3 + $0x128] sm:$0xff] %vm58_vm0, %v1757_v23  ;;  %v88_v31 = vadd.f32 %v86_v57, %v79_v20  ;;  %v189_v37 = vadd.f32 %v187_v25, %v1757_v23  ;;  %v203_v43 = vmul.f32 %v1769_v32, %v1567_v10  ;;  %v1797_v46 = vstv %s1729_s30  ;;  %s1249_s18 = sld [smem:[#allocation5 + $0x182]] }
  0x42   :  { %v105_v47 = vadd.f32 %v103_v63, %v96_v27  ;;  %169 = vrot.lane.b32.xlu1 %v164_v28, %s1511_s5  ;;  %v1801_v48 = vstv %s1735_s4  ;;  %v186_v51 = vmul.f32 %v1749_v18, %v1543_v0  ;;  %s1805_s19 = sld [smem:[#allocation5 + $0x183]]  ;;  %v211_v57 = vmul.f32 %v1797_v46, %v1581_v16  ;;  %1234 = vst.msk [vmem:[%s2830_s3 + $0x40] sm:$0x3] %vm61_vm1, %v1757_v23 }
  0x43   :  { %v97_v55 = vadd.f32 %v95_v61, %v88_v31  ;;  %v197_v56 = vadd.f32 %v195_v29, %v189_v37  ;;  %v194_v59 = vmul.f32 %v1762_v26, %v1549_v2  ;;  %s1815_s20 = sld [smem:[#allocation5 + $0x184]]  ;;  %v219_v60 = vmul.f32 %v1801_v48, %v1615_v22  ;;  %1352 = vst.msk [vmem:[%s2830_s3 + $0x130] sm:$0x3] %vm61_vm1, %v1757_v23 }
  0x44   :  { %109 = vrot.lane.b32.xlu0 %v105_v47, %s1511_s5  ;;  %v188_v62 = vadd.f32 %v186_v51, %v1757_v23  ;;  %v202_v61 = vmul.f32 %v1769_v32, %v1555_v5  ;;  %v210_v63 = vmul.f32 %v1797_v46, %v1579_v15  ;;  %s1243_s21 = sadd.f32 -1.5, %s1751_s7  ;;  %v218_v13 = vmul.f32 %v1801_v48, %v1583_v17 }
  0x45   :  { %v106_v7 = vadd.f32 %v104_v4, %v97_v55  ;;  %v205_v12 = vadd.f32 %v203_v43, %v197_v56  ;;  %v1829_v20 = vstv %s1764_s8  ;;  %s1831_s22 = sld [smem:[#allocation6 + $0x4]] }
  0x46   :  { %v196_v25 = vadd.f32 %v194_v59, %v188_v62  ;;  %v1833_v27 = vstv %s1243_s21  ;;  %v244_v28 = vmul.f32 %v1829_v20, %v1545_v1  ;;  %v1838_v29 = vstv %s1771_s9  ;;  %s1840_s1 = sld [smem:[#allocation5 + $0x200]] }
  0x47   :  { %2902 = vst [vmem:[#allocation12_spill] sm:$0xff] %v1833_v27  ;;  %2903 = vst [vmem:[#allocation13_spill] sm:$0xff] %v1838_v29  ;;  %v213_v4 = vadd.f32 %v211_v57, %v205_v12  ;;  %v252_v31 = vmul.f32 %v1838_v29, %v1551_v3  ;;  %v1844_v37 = vstv %s1249_s18  ;;  %v243_v43 = vmul.f32 %v1829_v20, %v1543_v0  ;;  %s1848_s23 = sld [smem:[#allocation5 + $0x201]] }
  0x48   :  { %2904 = vst [vmem:[#allocation14_spill] sm:$0xff] %v1844_v37  ;;  %1244 = vst.msk [vmem:[%s2830_s3 + $0x48] sm:$0xff] %vm58_vm0, %v1833_v27  ;;  %111 = vrot.lane.b32.xlu0 %v106_v7, %s1511_s5  ;;  %v204_v47 = vadd.f32 %v202_v61, %v196_v25  ;;  %v246_v51 = vadd.f32 %v244_v28, %v1833_v27  ;;  %v260_v55 = vmul.f32 %v1844_v37, %v1567_v10  ;;  %s1877_s30 = sld [smem:[#allocation5 + $0x202]] }
  0x49   :  { %1245 = vst.msk [vmem:[%s2830_s3 + $0x50] sm:$0xff] %vm58_vm0, %v1833_v27  ;;  %1362 = vst.msk [vmem:[%s2830_s3 + $0x138] sm:$0xff] %vm58_vm0, %v1833_v27  ;;  %v1875_v56 = vstv %s1805_s19  ;;  %v221_v57 = vadd.f32 %v219_v60, %v213_v4  ;;  %v1880_v59 = vstv %s1815_s20  ;;  %v245_v62 = vadd.f32 %v243_v43, %v1833_v27  ;;  %s1883_s4 = sld [smem:[#allocation5 + $0x203]] }
  0x4a   :  { %1363 = vst.msk [vmem:[%s2830_s3 + $0x140] sm:$0xff] %vm58_vm0, %v1833_v27  ;;  %2905 = vst [vmem:[#allocation15_spill] sm:$0xff] %v1875_v56  ;;  %v646_v61 = vadd.f32 %v1746_v8, %v1666_v42  ;;  %v212_v7 = vadd.f32 %v210_v63, %v204_v47  ;;  %v254_v12 = vadd.f32 %v252_v31, %v246_v51  ;;  %s1891_s6 = sld [smem:[#allocation5 + $0x204]] }
  0x4b   :  { %2906 = vst [vmem:[#allocation16_spill] sm:$0xff] %v1880_v59  ;;  %v268_v25 = vmul.f32 %v1875_v56, %v1581_v16  ;;  %v251_v28 = vmul.f32 %v1838_v29, %v1549_v2  ;;  %226 = vrot.lane.b32.xlu1 %v221_v57, %s1511_s5  ;;  %v276_v60 = vmul.f32 %v1880_v59, %v1615_v22  ;;  %s1255_s7 = sadd.f32 -1.5, %s1831_s22 }
  0x4c   :  { %v259_v4 = vmul.f32 %v1844_v37, %v1555_v5  ;;  %v267_v8 = vmul.f32 %v1875_v56, %v1579_v15  ;;  %v275_v63 = vmul.f32 %v1880_v59, %v1583_v17  ;;  %v220_v31 = vadd.f32 %v218_v13, %v212_v7  ;;  %s1906_s8 = sld [smem:[#allocation6 + $0x5]] }
  0x4d   :  { %v262_v43 = vadd.f32 %v260_v55, %v254_v12  ;;  %v253_v47 = vadd.f32 %v251_v28, %v245_v62  ;;  %v1904_v51 = vstv %s1840_s1  ;;  %v1908_v57 = vstv %s1255_s7  ;;  %s1917_s9 = sld [smem:[#allocation5 + $0x280]] }
  0x4e   :  { %2907 = vst [vmem:[#allocation17_spill] sm:$0xff] %v1904_v51  ;;  %2908 = vst [vmem:[#allocation18_spill] sm:$0xff] %v1908_v57  ;;  %v301_v37 = vmul.f32 %v1904_v51, %v1545_v1  ;;  %v1913_v27 = vstv %s1848_s23  ;;  %v300_v59 = vmul.f32 %v1904_v51, %v1543_v0  ;;  %224 = vrot.lane.b32.xlu0 %v220_v31, %s1511_s5  ;;  %v1923_v7 = vstv %s1877_s30  ;;  %s1925_s10 = sld [smem:[#allocation5 + $0x281]] }
  0x4f   :  { %2909 = vst [vmem:[#allocation19_spill] sm:$0xff] %v1913_v27  ;;  %v270_v13 = vadd.f32 %v268_v25, %v262_v43  ;;  %v261_v55 = vadd.f32 %v259_v4, %v253_v47  ;;  %v309_v62 = vmul.f32 %v1913_v27, %v1551_v3  ;;  %2910 = vst [vmem:[#allocation20_spill] sm:$0xff] %v1923_v7  ;;  %v1951_v28 = vstv %s1883_s4  ;;  %s1954_s19 = sld [smem:[#allocation5 + $0x282]] }
  0x50   :  { %1256 = vst.msk [vmem:[%s2830_s3 + $0x60] sm:$0xff] %vm58_vm0, %v1908_v57  ;;  %1257 = vst.msk [vmem:[%s2830_s3 + $0x68] sm:$0xff] %vm58_vm0, %v1908_v57  ;;  %v303_v12 = vadd.f32 %v301_v37, %v1908_v57  ;;  %v317_v25 = vmul.f32 %v1923_v7, %v1567_v10  ;;  %v302_v4 = vadd.f32 %v300_v59, %v1908_v57  ;;  %v1957_v47 = vstv %s1891_s6  ;;  %s1959_s20 = sld [smem:[#allocation5 + $0x283]] }
  0x51   :  { %1374 = vst.msk [vmem:[%s2830_s3 + $0x150] sm:$0xff] %vm58_vm0, %v1908_v57  ;;  %1375 = vst.msk [vmem:[%s2830_s3 + $0x158] sm:$0xff] %vm58_vm0, %v1908_v57  ;;  %v278_v31 = vadd.f32 %v276_v60, %v270_v13  ;;  %v269_v43 = vadd.f32 %v267_v8, %v261_v55  ;;  %v1963_v37 = vmul.f32 %v1642_v34, %v1714_v53  ;;  %s1971_s21 = sld [smem:[#allocation5 + $0x284]] }
  0x52   :  { %2911 = vst [vmem:[#allocation21_spill] sm:$0xff] %v1951_v28  ;;  %2912 = vst [vmem:[#allocation22_spill] sm:$0xff] %v1957_v47  ;;  %v311_v51 = vadd.f32 %v309_v62, %v303_v12  ;;  %v325_v56 = vmul.f32 %v1951_v28, %v1581_v16  ;;  %v308_v59 = vmul.f32 %v1913_v27, %v1549_v2  ;;  %s1267_s22 = sadd.f32 -1.5, %s1906_s8 }
  0x53   :  { %v316_v60 = vmul.f32 %v1923_v7, %v1555_v5  ;;  %283 = vrot.lane.b32.xlu1 %v278_v31, %s1511_s5  ;;  %v277_v8 = vadd.f32 %v275_v63, %v269_v43  ;;  %v333_v13 = vmul.f32 %v1957_v47, %v1615_v22  ;;  %v324_v55 = vmul.f32 %v1951_v28, %v1579_v15  ;;  %s1985_s1 = sld [smem:[#allocation6 + $0x6]] }
  0x54   :  { %v655_v62 = vadd.f32 %v1755_v19, %v646_v61  ;;  %v319_v12 = vadd.f32 %v317_v25, %v311_v51  ;;  %v310_v57 = vadd.f32 %v308_v59, %v302_v4  ;;  %v332_v7 = vmul.f32 %v1957_v47, %v1583_v17  ;;  %s1997_s23 = sld [smem:[#allocation5 + $0x300]] }
  0x55   :  { %v1983_v27 = vstv %s1917_s9  ;;  %281 = vrot.lane.b32.xlu0 %v277_v8, %s1511_s5  ;;  %v1988_v63 = vstv %s1267_s22  ;;  %v1993_v43 = vstv %s1925_s10  ;;  %s2004_s24 = sld [smem:[#allocation5 + $0x301]] }
  0x56   :  { %2913 = vst [vmem:[#allocation23_spill] sm:$0xff] %v1983_v27  ;;  %2914 = vst [vmem:[#allocation24_spill] sm:$0xff] %v1988_v63  ;;  %v358_v31 = vmul.f32 %v1983_v27, %v1545_v1  ;;  %v357_v19 = vmul.f32 %v1983_v27, %v1543_v0  ;;  %v327_v61 = vadd.f32 %v325_v56, %v319_v12  ;;  %v2002_v4 = vstv %s1954_s19  ;;  %s2033_s4 = sld [smem:[#allocation5 + $0x302]] }
  0x57   :  { %2915 = vst [vmem:[#allocation25_spill] sm:$0xff] %v1993_v43  ;;  %v318_v51 = vadd.f32 %v316_v60, %v310_v57  ;;  %v366_v25 = vmul.f32 %v1993_v43, %v1551_v3  ;;  %2916 = vst [vmem:[#allocation26_spill] sm:$0xff] %v2002_v4  ;;  %v374_v57 = vmul.f32 %v2002_v4, %v1567_v10  ;;  %v2030_v59 = vstv %s1959_s20  ;;  %s2038_s6 = sld [smem:[#allocation5 + $0x303]] }
  0x58   :  { %1268 = vst.msk [vmem:[%s2830_s3 + $0x78] sm:$0xff] %vm58_vm0, %v1988_v63  ;;  %1269 = vst.msk [vmem:[%s2830_s3 + $0x80] sm:$0xff] %vm58_vm0, %v1988_v63  ;;  %v360_v56 = vadd.f32 %v358_v31, %v1988_v63  ;;  %v359_v60 = vadd.f32 %v357_v19, %v1988_v63  ;;  %v335_v8 = vadd.f32 %v333_v13, %v327_v61  ;;  %v2036_v27 = vstv %s1971_s21  ;;  %s2047_s7 = sld [smem:[#allocation5 + $0x304]] }
  0x59   :  { %1386 = vst.msk [vmem:[%s2830_s3 + $0x168] sm:$0xff] %vm58_vm0, %v1988_v63  ;;  %1387 = vst.msk [vmem:[%s2830_s3 + $0x170] sm:$0xff] %vm58_vm0, %v1988_v63  ;;  %v326_v12 = vadd.f32 %v324_v55, %v318_v51  ;;  %v664_v47 = vadd.f32 %v1809_v52, %v655_v62  ;;  %v382_v28 = vmul.f32 %v2030_v59, %v1581_v16  ;;  %s1279_s8 = sadd.f32 -1.5, %s1985_s1 }
  0x5a   :  { %2917 = vst [vmem:[#allocation27_spill] sm:$0xff] %v2030_v59  ;;  %2918 = vst [vmem:[#allocation28_spill] sm:$0xff] %v2036_v27  ;;  %v368_v31 = vadd.f32 %v366_v25, %v360_v56  ;;  %v365_v29 = vmul.f32 %v1993_v43, %v1549_v2  ;;  %v373_v19 = vmul.f32 %v2002_v4, %v1555_v5  ;;  %340 = vrot.lane.b32.xlu1 %v335_v8, %s1511_s5  ;;  %s2064_s9 = sld [smem:[#allocation6 + $0x7]] }
  0x5b   :  { %v334_v13 = vadd.f32 %v332_v7, %v326_v12  ;;  %v390_v55 = vmul.f32 %v2036_v27, %v1615_v22  ;;  %v381_v52 = vmul.f32 %v2030_v59, %v1579_v15  ;;  %v2057_v62 = vmul.f32 %v1656_v39, %v1727_v58  ;;  %s2076_s10 = sld [smem:[#allocation5 + $0x380]] }
  0x5c   :  { %v376_v61 = vadd.f32 %v374_v57, %v368_v31  ;;  %v367_v51 = vadd.f32 %v365_v29, %v359_v60  ;;  %v389_v25 = vmul.f32 %v2036_v27, %v1583_v17  ;;  %v2062_v56 = vstv %s1997_s23  ;;  %s2083_s11 = sld [smem:[#allocation5 + $0x381]] }
  0x5d   :  { %2919 = vst [vmem:[#allocation29_spill] sm:$0xff] %v2062_v56  ;;  %338 = vrot.lane.b32.xlu0 %v334_v13, %s1511_s5  ;;  %v2067_v7 = vstv %s1279_s8  ;;  %v415_v8 = vmul.f32 %v2062_v56, %v1545_v1  ;;  %v2072_v12 = vstv %s2004_s24  ;;  %v414_v29 = vmul.f32 %v2062_v56, %v1543_v0  ;;  %s2112_s20 = sld [smem:[#allocation5 + $0x382]] }
  0x5e   :  { %2920 = vst [vmem:[#allocation30_spill] sm:$0xff] %v2067_v7  ;;  %2921 = vst [vmem:[#allocation31_spill] sm:$0xff] %v2072_v12  ;;  %v384_v57 = vadd.f32 %v382_v28, %v376_v61  ;;  %v375_v60 = vadd.f32 %v373_v19, %v367_v51  ;;  %v423_v31 = vmul.f32 %v2072_v12, %v1551_v3  ;;  %v2081_v13 = vstv %s2033_s4  ;;  %s2117_s21 = sld [smem:[#allocation5 + $0x383]] }
  0x5f   :  { %2922 = vst [vmem:[#allocation32_spill] sm:$0xff] %v2081_v13  ;;  %1280 = vst.msk [vmem:[%s2830_s3 + $0x90] sm:$0xff] %vm58_vm0, %v2067_v7  ;;  %v417_v28 = vadd.f32 %v415_v8, %v2067_v7  ;;  %v431_v19 = vmul.f32 %v2081_v13, %v1567_v10  ;;  %v2109_v61 = vstv %s2038_s6  ;;  %v416_v51 = vadd.f32 %v414_v29, %v2067_v7  ;;  %s2128_s22 = sld [smem:[#allocation5 + $0x384]] }
  0x60   :  { %1281 = vst.msk [vmem:[%s2830_s3 + $0x98] sm:$0xff] %vm58_vm0, %v2067_v7  ;;  %1398 = vst.msk [vmem:[%s2830_s3 + $0x180] sm:$0xff] %vm58_vm0, %v2067_v7  ;;  %v392_v56 = vadd.f32 %v390_v55, %v384_v57  ;;  %v383_v27 = vadd.f32 %v381_v52, %v375_v60  ;;  %v2115_v59 = vstv %s2047_s7  ;;  %v2120_v4 = vadd.f32 %v1963_v37, %v664_v47  ;;  %s1291_s1 = sadd.f32 -1.5, %s2064_s9 }
  0x61   :  { %1399 = vst.msk [vmem:[%s2830_s3 + $0x188] sm:$0xff] %vm58_vm0, %v2067_v7  ;;  %2923 = vst [vmem:[#allocation33_spill] sm:$0xff] %v2109_v61  ;;  %v425_v8 = vadd.f32 %v423_v31, %v417_v28  ;;  %v439_v63 = vmul.f32 %v2109_v61, %v1581_v16  ;;  %v422_v29 = vmul.f32 %v2072_v12, %v1549_v2  ;;  %v2141_v28 = vstv %s2076_s10  ;;  %s2143_s23 = sld [smem:[#allocation6 + $0x8]] }
  0x62   :  { %2924 = vst [vmem:[#allocation34_spill] sm:$0xff] %v2115_v59  ;;  %v430_v7 = vmul.f32 %v2081_v13, %v1555_v5  ;;  %397 = vrot.lane.b32.xlu1 %v392_v56, %s1511_s5  ;;  %v391_v55 = vadd.f32 %v389_v25, %v383_v27  ;;  %v447_v47 = vmul.f32 %v2115_v59, %v1615_v22  ;;  %2925 = vst [vmem:[#allocation35_spill] sm:$0xff] %v2141_v28  ;;  %s2155_s24 = sld [smem:[#allocation5 + $0x400]] }
  0x63   :  { %v438_v37 = vmul.f32 %v2109_v61, %v1579_v15  ;;  %v643_v52 = vmul.f32 %v1688_v50, %v1652_v38  ;;  %v433_v57 = vadd.f32 %v431_v19, %v425_v8  ;;  %v424_v60 = vadd.f32 %v422_v29, %v416_v51  ;;  %s2162_s25 = sld [smem:[#allocation5 + $0x401]] }
  0x64   :  { %v446_v31 = vmul.f32 %v2115_v59, %v1583_v17  ;;  %395 = vrot.lane.b32.xlu0 %v391_v55, %s1511_s5  ;;  %v2146_v27 = vstv %s1291_s1  ;;  %v472_v25 = vmul.f32 %v2141_v28, %v1545_v1  ;;  %v2151_v56 = vstv %s2083_s11  ;;  %s2191_s6 = sld [smem:[#allocation5 + $0x402]] }
  0x65   :  { %2926 = vst [vmem:[#allocation36_spill] sm:$0xff] %v2146_v27  ;;  %2927 = vst [vmem:[#allocation37_spill] sm:$0xff] %v2151_v56  ;;  %v471_v38 = vmul.f32 %v2141_v28, %v1543_v0  ;;  %v441_v19 = vadd.f32 %v439_v63, %v433_v57  ;;  %v432_v51 = vadd.f32 %v430_v7, %v424_v60  ;;  %v2160_v29 = vstv %s2112_s20  ;;  %s2196_s7 = sld [smem:[#allocation5 + $0x403]] }
  0x66   :  { %v480_v8 = vmul.f32 %v2151_v56, %v1551_v3  ;;  %2928 = vst [vmem:[#allocation38_spill] sm:$0xff] %v2160_v29  ;;  %1292 = vst.msk [vmem:[%s2830_s3 + $0xa8] sm:$0xff] %vm58_vm0, %v2146_v27  ;;  %v474_v63 = vadd.f32 %v472_v25, %v2146_v27  ;;  %v488_v7 = vmul.f32 %v2160_v29, %v1567_v10  ;;  %v2188_v55 = vstv %s2117_s21  ;;  %v2199_v25 = vld [vmem:[#allocation2 + $0x60] sm:$0xff]  ;;  %s2207_s8 = sld [smem:[#allocation5 + $0x404]] }
  0x67   :  { %1293 = vst.msk [vmem:[%s2830_s3 + $0xb0] sm:$0xff] %vm58_vm0, %v2146_v27  ;;  %1410 = vst.msk [vmem:[%s2830_s3 + $0x198] sm:$0xff] %vm58_vm0, %v2146_v27  ;;  %v473_v57 = vadd.f32 %v471_v38, %v2146_v27  ;;  %v449_v60 = vadd.f32 %v447_v47, %v441_v19  ;;  %v440_v28 = vadd.f32 %v438_v37, %v432_v51  ;;  %v2194_v59 = vstv %s2128_s22  ;;  %s1303_s9 = sadd.f32 -1.5, %s2143_s23 }
  0x68   :  { %1411 = vst.msk [vmem:[%s2830_s3 + $0x1a0] sm:$0xff] %vm58_vm0, %v2146_v27  ;;  %2929 = vst [vmem:[#allocation39_spill] sm:$0xff] %v2188_v55  ;;  %v645_v61 = vadd.f32 %v643_v52, %v1666_v42  ;;  %v482_v13 = vadd.f32 %v480_v8, %v474_v63  ;;  %v496_v12 = vmul.f32 %v2188_v55, %v1581_v16  ;;  %v2218_v42 = vstv %s2155_s24  ;;  %s2220_s10 = sld [smem:[#allocation6 + $0x9]] }
  0x69   :  { %2930 = vst [vmem:[#allocation40_spill] sm:$0xff] %v2194_v59  ;;  %v479_v38 = vmul.f32 %v2151_v56, %v1549_v2  ;;  %v487_v47 = vmul.f32 %v2160_v29, %v1555_v5  ;;  %454 = vrot.lane.b32.xlu1 %v449_v60, %s1511_s5  ;;  %v448_v37 = vadd.f32 %v446_v31, %v440_v28  ;;  %2931 = vst [vmem:[#allocation41_spill] sm:$0xff] %v2218_v42  ;;  %s2234_s11 = sld [smem:[#allocation5 + $0x480]] }
  0x6a   :  { %v504_v52 = vmul.f32 %v2194_v59, %v1615_v22  ;;  %v495_v19 = vmul.f32 %v2188_v55, %v1579_v15  ;;  %v503_v51 = vmul.f32 %v2194_v59, %v1583_v17  ;;  %v490_v8 = vadd.f32 %v488_v7, %v482_v13  ;;  %v2236_v7 = vld [vmem:[#allocation2 + $0x70] sm:$0xff]  ;;  %s2243_s12 = sld [smem:[#allocation5 + $0x481]] }
  0x6b   :  { %v481_v63 = vadd.f32 %v479_v38, %v473_v57  ;;  %v652_v31 = vmul.f32 %v2199_v25, %v1671_v44  ;;  %452 = vrot.lane.b32.xlu0 %v448_v37, %s1511_s5  ;;  %v2225_v28 = vstv %s1303_s9  ;;  %v529_v60 = vmul.f32 %v2218_v42, %v1545_v1  ;;  %s1321_s21 = sld [smem:[#allocation5 + $0x482]] }
  0x6c   :  { %v2230_v59 = vstv %s2162_s25  ;;  %v528_v13 = vmul.f32 %v2218_v42, %v1543_v0  ;;  %v498_v57 = vadd.f32 %v496_v12, %v490_v8  ;;  %v2241_v37 = vstv %s2191_s6  ;;  %1304 = vst.msk [vmem:[%s2830_s3 + $0xc0] sm:$0xff] %vm58_vm0, %v2225_v28  ;;  %1305 = vst.msk [vmem:[%s2830_s3 + $0xc8] sm:$0xff] %vm58_vm0, %v2225_v28  ;;  %s2275_s22 = sld [smem:[#allocation5 + $0x483]] }
  0x6d   :  { %v489_v44 = vadd.f32 %v487_v47, %v481_v63  ;;  %v537_v38 = vmul.f32 %v2230_v59, %v1551_v3  ;;  %2932 = vst [vmem:[#allocation42_spill] sm:$0xff] %v2241_v37  ;;  %1422 = vst.msk [vmem:[%s2830_s3 + $0x1b0] sm:$0xff] %vm58_vm0, %v2225_v28  ;;  %v531_v12 = vadd.f32 %v529_v60, %v2225_v28  ;;  %v2269_v8 = vstv %s2196_s7  ;;  %s2285_s1 = sld [smem:[#allocation5 + $0x484]] }
  0x6e   :  { %1423 = vst.msk [vmem:[%s2830_s3 + $0x1b8] sm:$0xff] %vm58_vm0, %v2225_v28  ;;  %v545_v47 = vmul.f32 %v2241_v37, %v1567_v10  ;;  %2933 = vst [vmem:[#allocation43_spill] sm:$0xff] %v2269_v8  ;;  %v530_v63 = vadd.f32 %v528_v13, %v2225_v28  ;;  %v506_v42 = vadd.f32 %v504_v52, %v498_v57  ;;  %v2273_v29 = vstv %s2207_s8  ;;  %s1315_s23 = sadd.f32 -1.5, %s2220_s10 }
  0x6f   :  { %v497_v55 = vadd.f32 %v495_v19, %v489_v44  ;;  %2934 = vst [vmem:[#allocation44_spill] sm:$0xff] %v2273_v29  ;;  %v661_v27 = vmul.f32 %v2236_v7, %v1684_v49  ;;  %v539_v60 = vadd.f32 %v537_v38, %v531_v12  ;;  %v553_v56 = vmul.f32 %v2269_v8, %v1581_v16 }
  0x70   :  { %v536_v43 = vmul.f32 %v2230_v59, %v1549_v2  ;;  %v544_v52 = vmul.f32 %v2241_v37, %v1555_v5  ;;  %511 = vrot.lane.b32.xlu1 %v506_v42, %s1511_s5  ;;  %v561_v13 = vmul.f32 %v2273_v29, %v1615_v22  ;;  %v552_v49 = vmul.f32 %v2269_v8, %v1579_v15 }
  0x71   :  { %v505_v19 = vadd.f32 %v503_v51, %v497_v55  ;;  %v560_v57 = vmul.f32 %v2273_v29, %v1583_v17  ;;  %v547_v44 = vadd.f32 %v545_v47, %v539_v60  ;;  %v2296_v12 = vstv %s2234_s11  ;;  %v2308_v29 = vld [vmem:[#allocation2 + $0x80] sm:$0xff]  ;;  %1306 = vst.msk [vmem:[%s2830_s3 + $0xd0] sm:$0x3] %vm61_vm1, %v2225_v28  ;;  %1424 = vst.msk [vmem:[%s2830_s3 + $0x1c0] sm:$0x3] %vm61_vm1, %v2225_v28 }
  0x72   :  { %v538_v38 = vadd.f32 %v536_v43, %v530_v63  ;;  %2935 = vst [vmem:[#allocation45_spill] sm:$0xff] %v2296_v12  ;;  %v654_v37 = vadd.f32 %v652_v31, %v645_v61  ;;  %v2299_v42 = vstv %s1315_s23  ;;  %v586_v55 = vmul.f32 %v2296_v12, %v1545_v1 }
  0x73   :  { %509 = vrot.lane.b32.xlu0 %v505_v19, %s1511_s5  ;;  %v2304_v51 = vstv %s2243_s12  ;;  %v585_v8 = vmul.f32 %v2296_v12, %v1543_v0  ;;  %v555_v43 = vadd.f32 %v553_v56, %v547_v44  ;;  %v2312_v31 = vstv %s1321_s21  ;;  %1316 = vst.msk [vmem:[%s2830_s3 + $0xd8] sm:$0xff] %vm58_vm0, %v2299_v42  ;;  %v2346_v44 = vld [vmem:[#allocation2 + $0x90] sm:$0xff] }
  0x74   :  { %v546_v47 = vadd.f32 %v544_v52, %v538_v38  ;;  %v594_v61 = vmul.f32 %v2304_v51, %v1551_v3  ;;  %1317 = vst.msk [vmem:[%s2830_s3 + $0xe0] sm:$0xff] %vm58_vm0, %v2299_v42  ;;  %1434 = vst.msk [vmem:[%s2830_s3 + $0x1c8] sm:$0xff] %vm58_vm0, %v2299_v42  ;;  %v588_v0 = vadd.f32 %v586_v55, %v2299_v42  ;;  %v2338_v3 = vstv %s2275_s22 }
  0x75   :  { %1435 = vst.msk [vmem:[%s2830_s3 + $0x1d0] sm:$0xff] %vm58_vm0, %v2299_v42  ;;  %v602_v1 = vmul.f32 %v2312_v31, %v1567_v10  ;;  %v587_v56 = vadd.f32 %v585_v8, %v2299_v42  ;;  %v563_v63 = vadd.f32 %v561_v13, %v555_v43  ;;  %v2342_v52 = vstv %s2285_s1 }
  0x76   :  { %v554_v60 = vadd.f32 %v552_v49, %v546_v47  ;;  %v670_v19 = vmul.f32 %v2308_v29, %v1714_v53  ;;  %v596_v38 = vadd.f32 %v594_v61, %v588_v0  ;;  %v610_v55 = vmul.f32 %v2338_v3, %v1581_v16  ;;  %1318 = vst.msk [vmem:[%s2830_s3 + $0xe8] sm:$0x3] %vm61_vm1, %v2299_v42 }
  0x77   :  { %v593_v10 = vmul.f32 %v2304_v51, %v1549_v2  ;;  %v601_v12 = vmul.f32 %v2312_v31, %v1555_v5  ;;  %568 = vrot.lane.b32.xlu1 %v563_v63, %s1511_s5  ;;  %v618_v13 = vmul.f32 %v2342_v52, %v1615_v22  ;;  %v609_v53 = vmul.f32 %v2338_v3, %v1579_v15 }
  0x78   :  { %v562_v8 = vadd.f32 %v560_v57, %v554_v60  ;;  %v663_v49 = vadd.f32 %v661_v27, %v654_v37  ;;  %v604_v43 = vadd.f32 %v602_v1, %v596_v38  ;;  %v679_v16 = vmul.f32 %v2346_v44, %v1727_v58  ;;  %1436 = vst.msk [vmem:[%s2830_s3 + $0x1d8] sm:$0x3] %vm61_vm1, %v2299_v42 }
  0x79   :  { %v595_v47 = vadd.f32 %v593_v10, %v587_v56  ;;  %v715_v2 = vadd.f32 %v1649_v36, %v1645_v35  ;;  %v706_v57 = vadd.f32 %v1720_v54, %v1559_v6  ;;  %v712_v22 = vmul.f32 %v2199_v25, %v1565_v9 }
  0x7a   :  { %566 = vrot.lane.b32.xlu0 %v562_v8, %s1511_s5  ;;  %v672_v5 = vadd.f32 %v670_v19, %v663_v49  ;;  %v720_v15 = vmul.f32 %v2236_v7, %v1577_v14  ;;  %v612_v27 = vadd.f32 %v610_v55, %v604_v43  ;;  %v617_v58 = vmul.f32 %v2342_v52, %v1583_v17 }
  0x7b   :  { %v603_v37 = vadd.f32 %v601_v12, %v595_v47  ;;  %v723_v61 = vadd.f32 %v1660_v40, %v715_v2  ;;  %v682_v35 = vadd.f32 %v2057_v62, %v2120_v4  ;;  %v714_v36 = vadd.f32 %v712_v22, %v706_v57  ;;  %v2939_v22 = vld [vmem:[#allocation15_spill] sm:$0xff] }
  0x7c   :  { %v728_v54 = vmul.f32 %v2308_v29, %v1613_v21  ;;  %v762_v9 = vmul.f32 %v1571_v11, %v1749_v18  ;;  %v620_v0 = vadd.f32 %v618_v13, %v612_v27  ;;  %v770_v12 = vmul.f32 %v1635_v30, %v1762_v26 }
  0x7d   :  { %v611_v1 = vadd.f32 %v609_v53, %v603_v37  ;;  %v731_v14 = vadd.f32 %v1664_v41, %v723_v61  ;;  %v681_v17 = vadd.f32 %v679_v16, %v672_v5  ;;  %v722_v56 = vadd.f32 %v720_v15, %v714_v36  ;;  %v2936_v53 = vld [vmem:[#allocation13_spill] sm:$0xff]  ;;  %v2937_v16 = vld [vmem:[#allocation12_spill] sm:$0xff] }
  0x7e   :  { %v764_v40 = vadd.f32 %v762_v9, %v1757_v23  ;;  %v778_v4 = vmul.f32 %v1640_v33, %v1769_v32  ;;  %625 = vrot.lane.b32.xlu1 %v620_v0, %s1511_s5  ;;  %v736_v62 = vmul.f32 %v2346_v44, %v1622_v24  ;;  %v786_v63 = vmul.f32 %v1642_v34, %v1797_v46  ;;  %v2941_v9 = vld [vmem:[#allocation17_spill] sm:$0xff]  ;;  %v2942_v0 = vld [vmem:[#allocation19_spill] sm:$0xff] }
  0x7f   :  { %v619_v21 = vadd.f32 %v617_v58, %v611_v1  ;;  %v761_v41 = vmul.f32 %v1688_v50, %v1749_v18  ;;  %v739_v60 = vadd.f32 %v1677_v45, %v731_v14  ;;  %v730_v19 = vadd.f32 %v728_v54, %v722_v56  ;;  %v2940_v58 = vld [vmem:[#allocation16_spill] sm:$0xff]  ;;  %1246 = vst.msk [vmem:[%s2830_s3 + $0x58] sm:$0x3] %vm61_vm1, %v2937_v16 }
  0x80   :  { %v772_v38 = vadd.f32 %v770_v12, %v764_v40  ;;  %v769_v55 = vmul.f32 %v2199_v25, %v1762_v26  ;;  %v794_v10 = vmul.f32 %v1656_v39, %v1801_v48  ;;  %v777_v8 = vmul.f32 %v2236_v7, %v1769_v32  ;;  %v2938_v32 = vld [vmem:[#allocation14_spill] sm:$0xff]  ;;  %1364 = vst.msk [vmem:[%s2830_s3 + $0x148] sm:$0x3] %vm61_vm1, %v2937_v16 }
  0x81   :  { %623 = vrot.lane.b32.xlu0 %v619_v21, %s1511_s5  ;;  %v763_v24 = vadd.f32 %v761_v41, %v1757_v23  ;;  %v819_v18 = vmul.f32 %v1571_v11, %v1829_v20  ;;  %v785_v45 = vmul.f32 %v2308_v29, %v1797_v46  ;;  %v793_v26 = vmul.f32 %v2346_v44, %v1801_v48 }
  0x82   :  { %v780_v13 = vadd.f32 %v778_v4, %v772_v38  ;;  %v827_v49 = vmul.f32 %v1635_v30, %v2936_v53  ;;  %687 = vrot.lane.b32.xlu1 %v682_v35, %s1511_s5  ;;  %v738_v43 = vadd.f32 %v736_v62, %v730_v19  ;;  %v835_v5 = vmul.f32 %v1640_v33, %v2938_v32  ;;  %v2943_v4 = vld [vmem:[#allocation18_spill] sm:$0xff]  ;;  %v2944_v62 = vld [vmem:[#allocation20_spill] sm:$0xff] }
  0x83   :  { %v771_v47 = vadd.f32 %v769_v55, %v763_v24  ;;  %v821_v2 = vadd.f32 %v819_v18, %v2937_v16  ;;  %v843_v15 = vmul.f32 %v1642_v34, %v2939_v22  ;;  %v818_v46 = vmul.f32 %v1688_v50, %v1829_v20  ;;  %1258 = vst.msk [vmem:[%s2830_s3 + $0x70] sm:$0x3] %vm61_vm1, %v2943_v4 }
  0x84   :  { %v788_v57 = vadd.f32 %v786_v63, %v780_v13  ;;  %v826_v48 = vmul.f32 %v2199_v25, %v2936_v53  ;;  %v851_v61 = vmul.f32 %v1656_v39, %v2940_v58  ;;  %v834_v35 = vmul.f32 %v2236_v7, %v2938_v32  ;;  %v2946_v53 = vld [vmem:[#allocation22_spill] sm:$0xff]  ;;  %1376 = vst.msk [vmem:[%s2830_s3 + $0x160] sm:$0x3] %vm61_vm1, %v2943_v4 }
  0x85   :  { %685 = vrot.lane.b32.xlu0 %v681_v17, %s1511_s5  ;;  %v779_v27 = vadd.f32 %v777_v8, %v771_v47  ;;  %v829_v37 = vadd.f32 %v827_v49, %v821_v2  ;;  %v820_v36 = vadd.f32 %v818_v46, %v2937_v16  ;;  %v842_v54 = vmul.f32 %v2308_v29, %v2939_v22  ;;  %v2947_v49 = vld [vmem:[#allocation23_spill] sm:$0xff]  ;;  %v2948_v47 = vld [vmem:[#allocation25_spill] sm:$0xff]  ;;  %v2949_v46 = vld [vmem:[#allocation24_spill] sm:$0xff] }
  0x86   :  { %v876_v20 = vmul.f32 %v1571_v11, %v2941_v9  ;;  %v884_v1 = vmul.f32 %v1635_v30, %v2942_v0  ;;  %744 = vrot.lane.b32.xlu1 %v739_v60, %s1511_s5  ;;  %v796_v14 = vadd.f32 %v794_v10, %v788_v57  ;;  %v850_v56 = vmul.f32 %v2346_v44, %v2940_v58  ;;  %v2945_v60 = vld [vmem:[#allocation21_spill] sm:$0xff] }
  0x87   :  { %v787_v12 = vadd.f32 %v785_v45, %v779_v27  ;;  %v837_v17 = vadd.f32 %v835_v5, %v829_v37  ;;  %v828_v40 = vadd.f32 %v826_v48, %v820_v36  ;;  %v892_v63 = vmul.f32 %v1640_v33, %v2944_v62  ;;  %v2950_v27 = vld [vmem:[#allocation26_spill] sm:$0xff]  ;;  %1270 = vst.msk [vmem:[%s2830_s3 + $0x88] sm:$0x3] %vm61_vm1, %v2949_v46 }
  0x88   :  { %v878_v21 = vadd.f32 %v876_v20, %v2943_v4  ;;  %v875_v41 = vmul.f32 %v1688_v50, %v2941_v9  ;;  %v900_v55 = vmul.f32 %v1642_v34, %v2945_v60  ;;  %v883_v10 = vmul.f32 %v2199_v25, %v2942_v0  ;;  %v2951_v20 = vld [vmem:[#allocation27_spill] sm:$0xff]  ;;  %1388 = vst.msk [vmem:[%s2830_s3 + $0x178] sm:$0x3] %vm61_vm1, %v2949_v46 }
  0x89   :  { %742 = vrot.lane.b32.xlu0 %v738_v43, %s1511_s5  ;;  %v795_v19 = vadd.f32 %v793_v26, %v787_v12  ;;  %v845_v38 = vadd.f32 %v843_v15, %v837_v17  ;;  %v836_v24 = vadd.f32 %v834_v35, %v828_v40  ;;  %v891_v13 = vmul.f32 %v2236_v7, %v2944_v62  ;;  %v2952_v40 = vld [vmem:[#allocation28_spill] sm:$0xff] }
  0x8a   :  { %v886_v8 = vadd.f32 %v884_v1, %v878_v21  ;;  %v877_v18 = vadd.f32 %v875_v41, %v2943_v4  ;;  %801 = vrot.lane.b32.xlu1 %v796_v14, %s1511_s5  ;;  %v908_v26 = vmul.f32 %v1656_v39, %v2946_v53  ;;  %v933_v43 = vmul.f32 %v1571_v11, %v2947_v49  ;;  %v2953_v21 = vld [vmem:[#allocation29_spill] sm:$0xff] }
  0x8b   :  { %v853_v45 = vadd.f32 %v851_v61, %v845_v38  ;;  %v941_v2 = vmul.f32 %v1635_v30, %v2948_v47  ;;  %v844_v32 = vadd.f32 %v842_v54, %v836_v24  ;;  %v899_v22 = vmul.f32 %v2308_v29, %v2945_v60  ;;  %v2954_v38 = vld [vmem:[#allocation31_spill] sm:$0xff]  ;;  %v2955_v24 = vld [vmem:[#allocation30_spill] sm:$0xff] }
  0x8c   :  { %v894_v5 = vadd.f32 %v892_v63, %v886_v8  ;;  %v885_v57 = vadd.f32 %v883_v10, %v877_v18  ;;  %v907_v15 = vmul.f32 %v2346_v44, %v2946_v53  ;;  %v935_v48 = vadd.f32 %v933_v43, %v2949_v46  ;;  %v2956_v18 = vld [vmem:[#allocation32_spill] sm:$0xff]  ;;  %v2957_v43 = vld [vmem:[#allocation33_spill] sm:$0xff]  ;;  %1282 = vst.msk [vmem:[%s2830_s3 + $0xa0] sm:$0x3] %vm61_vm1, %v2955_v24 }
  0x8d   :  { %799 = vrot.lane.b32.xlu0 %v795_v19, %s1511_s5  ;;  %v949_v37 = vmul.f32 %v1640_v33, %v2950_v27  ;;  %v932_v58 = vmul.f32 %v1688_v50, %v2947_v49  ;;  %v852_v61 = vadd.f32 %v850_v56, %v844_v32  ;;  %v940_v54 = vmul.f32 %v2199_v25, %v2948_v47 }
  0x8e   :  { %v902_v35 = vadd.f32 %v900_v55, %v894_v5  ;;  %v893_v36 = vadd.f32 %v891_v13, %v885_v57  ;;  %858 = vrot.lane.b32.xlu1 %v853_v45, %s1511_s5  ;;  %v943_v9 = vadd.f32 %v941_v2, %v935_v48  ;;  %v957_v0 = vmul.f32 %v1642_v34, %v2951_v20  ;;  %v2958_v2 = vld [vmem:[#allocation34_spill] sm:$0xff] }
  0x8f   :  { %v934_v1 = vadd.f32 %v932_v58, %v2949_v46  ;;  %v948_v14 = vmul.f32 %v2236_v7, %v2950_v27  ;;  %v965_v56 = vmul.f32 %v1656_v39, %v2952_v40  ;;  %v990_v62 = vmul.f32 %v1571_v11, %v2953_v21  ;;  %v1450_v48 = vld [vmem:[#allocation2 + $0x58] sm:$0xff]  ;;  %v2959_v27 = vld [vmem:[#allocation35_spill] sm:$0xff]  ;;  %1400 = vst.msk [vmem:[%s2830_s3 + $0x190] sm:$0x3] %vm61_vm1, %v2955_v24 }
  0x90   :  { %v910_v12 = vadd.f32 %v908_v26, %v902_v35  ;;  %v901_v17 = vadd.f32 %v899_v22, %v893_v36  ;;  %v951_v63 = vadd.f32 %v949_v37, %v943_v9  ;;  %v956_v19 = vmul.f32 %v2308_v29, %v2951_v20  ;;  %v2960_v36 = vld [vmem:[#allocation37_spill] sm:$0xff] }
  0x91   :  { %856 = vrot.lane.b32.xlu0 %v852_v61, %s1511_s5  ;;  %v942_v41 = vadd.f32 %v940_v54, %v934_v1  ;;  %v998_v60 = vmul.f32 %v1635_v30, %v2954_v38  ;;  %v964_v10 = vmul.f32 %v2346_v44, %v2952_v40  ;;  %v992_v8 = vadd.f32 %v990_v62, %v2955_v24  ;;  %v2963_v40 = vld [vmem:[#allocation39_spill] sm:$0xff] }
  0x92   :  { %v909_v55 = vadd.f32 %v907_v15, %v901_v17  ;;  %v1006_v13 = vmul.f32 %v1640_v33, %v2956_v18  ;;  %915 = vrot.lane.b32.xlu1 %v910_v12, %s1511_s5  ;;  %v959_v11 = vadd.f32 %v957_v0, %v951_v63  ;;  %v989_v53 = vmul.f32 %v1688_v50, %v2953_v21  ;;  %v2961_v0 = vld [vmem:[#allocation36_spill] sm:$0xff] }
  0x93   :  { %v950_v45 = vadd.f32 %v948_v14, %v942_v41  ;;  %v997_v26 = vmul.f32 %v2199_v25, %v2954_v38  ;;  %v1000_v49 = vadd.f32 %v998_v60, %v992_v8  ;;  %v1014_v47 = vmul.f32 %v1642_v34, %v2957_v43  ;;  %v2962_v14 = vld [vmem:[#allocation38_spill] sm:$0xff]  ;;  %v2964_v41 = vld [vmem:[#allocation40_spill] sm:$0xff]  ;;  %1294 = vst.msk [vmem:[%s2830_s3 + $0xb8] sm:$0x3] %vm61_vm1, %v2961_v0 }
  0x94   :  { %v1022_v32 = vmul.f32 %v1656_v39, %v2958_v2  ;;  %v1005_v5 = vmul.f32 %v2236_v7, %v2956_v18  ;;  %v967_v57 = vadd.f32 %v965_v56, %v959_v11  ;;  %v991_v15 = vadd.f32 %v989_v53, %v2955_v24  ;;  %1412 = vst.msk [vmem:[%s2830_s3 + $0x1a8] sm:$0x3] %vm61_vm1, %v2961_v0 }
  0x95   :  { %913 = vrot.lane.b32.xlu0 %v909_v55, %s1511_s5  ;;  %v958_v22 = vadd.f32 %v956_v19, %v950_v45  ;;  %v1047_v37 = vmul.f32 %v1450_v48, %v2959_v27  ;;  %v1008_v58 = vadd.f32 %v1006_v13, %v1000_v49  ;;  %v1013_v61 = vmul.f32 %v2308_v29, %v2957_v43  ;;  %v2966_v49 = vld [vmem:[#allocation42_spill] sm:$0xff] }
  0x96   :  { %v1021_v35 = vmul.f32 %v2346_v44, %v2958_v2  ;;  %v1055_v54 = vmul.f32 %v1635_v30, %v2960_v36  ;;  %972 = vrot.lane.b32.xlu1 %v967_v57, %s1511_s5  ;;  %v999_v20 = vadd.f32 %v997_v26, %v991_v15  ;;  %v1063_v12 = vmul.f32 %v1640_v33, %v2962_v14  ;;  %v1452_v26 = vld [vmem:[#allocation2 + $0x78] sm:$0xff]  ;;  %v2967_v57 = vld [vmem:[#allocation43_spill] sm:$0xff] }
  0x97   :  { %v966_v9 = vadd.f32 %v964_v10, %v958_v22  ;;  %v1049_v1 = vadd.f32 %v1047_v37, %v2961_v0  ;;  %v1016_v17 = vadd.f32 %v1014_v47, %v1008_v58  ;;  %v1071_v56 = vmul.f32 %v1642_v34, %v2963_v40  ;;  %v2965_v34 = vld [vmem:[#allocation41_spill] sm:$0xff]  ;;  %v1451_v10 = vld [vmem:[#allocation2 + $0x68] sm:$0xff] }
  0x98   :  { %v1046_v21 = vmul.f32 %v1688_v50, %v2959_v27  ;;  %v1054_v62 = vmul.f32 %v2199_v25, %v2960_v36  ;;  %v1007_v30 = vadd.f32 %v1005_v5, %v999_v20  ;;  %v1079_v19 = vmul.f32 %v1656_v39, %v2964_v41  ;;  %v1453_v5 = vld [vmem:[#allocation2 + $0x88] sm:$0xff] }
  0x99   :  { %970 = vrot.lane.b32.xlu0 %v966_v9, %s1511_s5  ;;  %v1057_v63 = vadd.f32 %v1055_v54, %v1049_v1  ;;  %v1062_v33 = vmul.f32 %v2236_v7, %v2962_v14  ;;  %v1024_v38 = vadd.f32 %v1022_v32, %v1016_v17  ;;  %v1104_v55 = vmul.f32 %v1450_v48, %v2965_v34  ;;  %v1454_v54 = vld [vmem:[#allocation2 + $0x98] sm:$0xff]  ;;  %v2969_v9 = vld [vmem:[#allocation45_spill] sm:$0xff] }
  0x9a   :  { %v1048_v60 = vadd.f32 %v1046_v21, %v2961_v0  ;;  %v1112_v8 = vmul.f32 %v1451_v10, %v2230_v59  ;;  %v1015_v18 = vadd.f32 %v1013_v61, %v1007_v30  ;;  %v1070_v11 = vmul.f32 %v2308_v29, %v2963_v40 }
  0x9b   :  { %v1065_v13 = vadd.f32 %v1063_v12, %v1057_v63  ;;  %v1078_v45 = vmul.f32 %v2346_v44, %v2964_v41  ;;  %1029 = vrot.lane.b32.xlu1 %v1024_v38, %s1511_s5  ;;  %v1106_v53 = vadd.f32 %v1104_v55, %v2225_v28  ;;  %v1120_v43 = vmul.f32 %v1452_v26, %v2966_v49 }
  0x9c   :  { %v1056_v39 = vadd.f32 %v1054_v62, %v1048_v60  ;;  %v1103_v47 = vmul.f32 %v1688_v50, %v2965_v34  ;;  %v1023_v2 = vadd.f32 %v1021_v35, %v1015_v18  ;;  %v1128_v22 = vmul.f32 %v1453_v5, %v2967_v57  ;;  %v2968_v50 = vld [vmem:[#allocation44_spill] sm:$0xff]  ;;  %v1455_v62 = vld [vmem:[#allocation2 + $0x50] sm:$0xff] }
  0x9d   :  { %v1073_v32 = vadd.f32 %v1071_v56, %v1065_v13  ;;  %v1111_v15 = vmul.f32 %v2199_v25, %v2230_v59  ;;  %v1114_v37 = vadd.f32 %v1112_v8, %v1106_v53  ;;  %v1119_v61 = vmul.f32 %v2236_v7, %v2966_v49 }
  0x9e   :  { %v1064_v27 = vadd.f32 %v1062_v33, %v1056_v39  ;;  %v1105_v58 = vadd.f32 %v1103_v47, %v2225_v28  ;;  %1027 = vrot.lane.b32.xlu0 %v1023_v2, %s1511_s5  ;;  %v1136_v35 = vmul.f32 %v1454_v54, %v2968_v50  ;;  %v1161_v20 = vmul.f32 %v1450_v48, %v2969_v9 }
  0x9f   :  { %v1081_v36 = vadd.f32 %v1079_v19, %v1073_v32  ;;  %v1169_v1 = vmul.f32 %v1451_v10, %v2304_v51  ;;  %v1122_v12 = vadd.f32 %v1120_v43, %v1114_v37  ;;  %v1127_v17 = vmul.f32 %v2308_v29, %v2967_v57 }
  0xa0   :  { %v1072_v14 = vadd.f32 %v1070_v11, %v1064_v27  ;;  %v1113_v59 = vadd.f32 %v1111_v15, %v1105_v58  ;;  %v1135_v40 = vmul.f32 %v2346_v44, %v2968_v50  ;;  %v1163_v56 = vadd.f32 %v1161_v20, %v2299_v42 }
  0xa1   :  { %1086 = vrot.lane.b32.xlu1 %v1081_v36, %s1511_s5  ;;  %v1177_v21 = vmul.f32 %v1452_v26, %v2312_v31  ;;  %v1160_v48 = vmul.f32 %v1455_v62, %v2969_v9  ;;  %v1130_v63 = vadd.f32 %v1128_v22, %v1122_v12  ;;  %v1168_v19 = vmul.f32 %v2199_v25, %v2304_v51  ;;  %v2970_v51 = vld [vmem:[#allocation11_spill] sm:$0xff] }
  0xa2   :  { %v1080_v30 = vadd.f32 %v1078_v45, %v1072_v14  ;;  %v1121_v41 = vadd.f32 %v1119_v61, %v1113_v59  ;;  %v1171_v33 = vadd.f32 %v1169_v1, %v1163_v56  ;;  %v1185_v38 = vmul.f32 %v1453_v5, %v2338_v3  ;;  %62 = vst.msk [vmem:[%s2830_s3 + $0x10] sm:$0x3] %vm61_vm1, %v2970_v51 }
  0xa3   :  { %v1162_v60 = vadd.f32 %v1160_v48, %v2299_v42  ;;  %v1176_v34 = vmul.f32 %v2236_v7, %v2312_v31  ;;  %v1138_v55 = vadd.f32 %v1136_v35, %v1130_v63  ;;  %v1193_v18 = vmul.f32 %v1454_v54, %v2342_v52  ;;  %1329 = vst.msk [vmem:[%s2830_s3 + $0x100] sm:$0x3] %vm61_vm1, %v2970_v51 }
  0xa4   :  { %1084 = vrot.lane.b32.xlu0 %v1080_v30, %s1511_s5  ;;  %v1129_v10 = vadd.f32 %v1127_v17, %v1121_v41  ;;  %v1179_v8 = vadd.f32 %v1177_v21, %v1171_v33  ;;  %v1184_v25 = vmul.f32 %v2308_v29, %v2338_v3  ;;  %v1192_v7 = vmul.f32 %v2346_v44, %v2342_v52 }
  0xa5   :  { %v1170_v13 = vadd.f32 %v1168_v19, %v1162_v60  ;;  %1143 = vrot.lane.b32.xlu1 %v1138_v55, %s1511_s5 }
  0xa6   :  { %v1137_v6 = vadd.f32 %v1135_v40, %v1129_v10  ;;  %v1187_v23 = vadd.f32 %v1185_v38, %v1179_v8 }
  0xa7   :  { %v1178_v29 = vadd.f32 %v1176_v34, %v1170_v13 }
  0xa8   :  { %1141 = vrot.lane.b32.xlu0 %v1137_v6, %s1511_s5  ;;  %v1195_v31 = vadd.f32 %v1193_v18, %v1187_v23 }
  0xa9   :  { %v1186_v3 = vadd.f32 %v1184_v25, %v1178_v29 }
  0xaa   :  { %1200 = vrot.lane.b32.xlu1 %v1195_v31, %s1511_s5 }
  0xab   :  { %v1194_v28 = vadd.f32 %v1192_v7, %v1186_v3 }
  0xad   :  { %1198 = vrot.lane.b32.xlu0 %v1194_v28, %s1511_s5 }
  0xaf   :  { %v168_v16 = vpop.permute.xlu1 %167 }
  0xb0   :  { %1228 = vst.msk [vmem:[%s2830_s3 + $0x19] sm:$0xff] %vm115_vm2, %v168_v16 }
  0xb4   :  { %v170_v42 = vpop.permute.xlu1 %169 }
  0xb5   :  { %1229 = vst.msk [vmem:[%s2830_s3 + $0x21] sm:$0xff] %vm115_vm2, %v170_v42 }
  0xb6   :  { %v110_v52 = vpop.permute.xlu0 %109 }
  0xb7   :  { %116 = vst.msk [vmem:[%s2830_s3 + $0x1] sm:$0xff] %vm115_vm2, %v110_v52 }
  0xba   :  { %v112_v44 = vpop.permute.xlu0 %111 }
  0xbb   :  { %117 = vst.msk [vmem:[%s2830_s3 + $0x9] sm:$0xff] %vm115_vm2, %v112_v44 }
  0xbd   :  { %v227_v4 = vpop.permute.xlu1 %226 }
  0xbe   :  { %1241 = vst.msk [vmem:[%s2830_s3 + $0x39] sm:$0xff] %vm115_vm2, %v227_v4 }
  0xc0   :  { %v225_v46 = vpop.permute.xlu0 %224 }
  0xc1   :  { %1240 = vst.msk [vmem:[%s2830_s3 + $0x31] sm:$0xff] %vm115_vm2, %v225_v46 }
  0xc5   :  { %v284_v24 = vpop.permute.xlu1 %283 }
  0xc6   :  { %1253 = vst.msk [vmem:[%s2830_s3 + $0x51] sm:$0xff] %vm115_vm2, %v284_v24 }
  0xc7   :  { %v282_v0 = vpop.permute.xlu0 %281 }
  0xc8   :  { %1252 = vst.msk [vmem:[%s2830_s3 + $0x49] sm:$0xff] %vm115_vm2, %v282_v0 }
  0xcc   :  { %v341_v11 = vpop.permute.xlu1 %340 }
  0xcd   :  { %1265 = vst.msk [vmem:[%s2830_s3 + $0x69] sm:$0xff] %vm115_vm2, %v341_v11 }
  0xcf   :  { %v339_v45 = vpop.permute.xlu0 %338 }
  0xd0   :  { %1264 = vst.msk [vmem:[%s2830_s3 + $0x61] sm:$0xff] %vm115_vm2, %v339_v45 }
  0xd4   :  { %v398_v39 = vpop.permute.xlu1 %397 }
  0xd5   :  { %1277 = vst.msk [vmem:[%s2830_s3 + $0x81] sm:$0xff] %vm115_vm2, %v398_v39 }
  0xd6   :  { %v396_v53 = vpop.permute.xlu0 %395 }
  0xd7   :  { %1276 = vst.msk [vmem:[%s2830_s3 + $0x79] sm:$0xff] %vm115_vm2, %v396_v53 }
  0xdb   :  { %v455_v26 = vpop.permute.xlu1 %454 }
  0xdc   :  { %1289 = vst.msk [vmem:[%s2830_s3 + $0x99] sm:$0xff] %vm115_vm2, %v455_v26 }
  0xdd   :  { %v453_v49 = vpop.permute.xlu0 %452 }
  0xde   :  { %1288 = vst.msk [vmem:[%s2830_s3 + $0x91] sm:$0xff] %vm115_vm2, %v453_v49 }
  0xe2   :  { %v512_v43 = vpop.permute.xlu1 %511 }
  0xe3   :  { %1301 = vst.msk [vmem:[%s2830_s3 + $0xb1] sm:$0xff] %vm115_vm2, %v512_v43 }
  0xe5   :  { %v510_v47 = vpop.permute.xlu0 %509 }
  0xe6   :  { %1300 = vst.msk [vmem:[%s2830_s3 + $0xa9] sm:$0xff] %vm115_vm2, %v510_v47 }
  0xe9   :  { %v569_v2 = vpop.permute.xlu1 %568 }
  0xea   :  { %1313 = vst.msk [vmem:[%s2830_s3 + $0xc9] sm:$0xff] %vm115_vm2, %v569_v2 }
  0xec   :  { %v567_v32 = vpop.permute.xlu0 %566 }
  0xed   :  { %1312 = vst.msk [vmem:[%s2830_s3 + $0xc1] sm:$0xff] %vm115_vm2, %v567_v32 }
  0xf0   :  { %v626_v5 = vpop.permute.xlu1 %625 }
  0xf1   :  { %1325 = vst.msk [vmem:[%s2830_s3 + $0xe1] sm:$0xff] %vm115_vm2, %v626_v5 }
  0xf3   :  { %v624_v57 = vpop.permute.xlu0 %623 }
  0xf4   :  { %1324 = vst.msk [vmem:[%s2830_s3 + $0xd9] sm:$0xff] %vm115_vm2, %v624_v57  ;;  %v688_v22 = vpop.permute.xlu1 %687 }
  0xf5   :  { %1335 = vst.msk [vmem:[%s2830_s3 + $0xf9] sm:$0xff] %vm115_vm2, %v688_v22 }
  0xf7   :  { %v686_v15 = vpop.permute.xlu0 %685 }
  0xf8   :  { %1334 = vst.msk [vmem:[%s2830_s3 + $0xf1] sm:$0xff] %vm115_vm2, %v686_v15  ;;  %v745_v27 = vpop.permute.xlu1 %744 }
  0xf9   :  { %1347 = vst.msk [vmem:[%s2830_s3 + $0x111] sm:$0xff] %vm115_vm2, %v745_v27 }
  0xfb   :  { %v743_v37 = vpop.permute.xlu0 %742 }
  0xfc   :  { %1346 = vst.msk [vmem:[%s2830_s3 + $0x109] sm:$0xff] %vm115_vm2, %v743_v37  ;;  %v802_v58 = vpop.permute.xlu1 %801 }
  0xfd   :  { %1359 = vst.msk [vmem:[%s2830_s3 + $0x129] sm:$0xff] %vm115_vm2, %v802_v58 }
  0xff   :  { %v800_v61 = vpop.permute.xlu0 %799 }
 0x100   :  { %1358 = vst.msk [vmem:[%s2830_s3 + $0x121] sm:$0xff] %vm115_vm2, %v800_v61  ;;  %v859_v36 = vpop.permute.xlu1 %858 }
 0x101   :  { %1371 = vst.msk [vmem:[%s2830_s3 + $0x141] sm:$0xff] %vm115_vm2, %v859_v36 }
 0x103   :  { %v857_v54 = vpop.permute.xlu0 %856 }
 0x104   :  { %1370 = vst.msk [vmem:[%s2830_s3 + $0x139] sm:$0xff] %vm115_vm2, %v857_v54  ;;  %v916_v50 = vpop.permute.xlu1 %915 }
 0x105   :  { %1383 = vst.msk [vmem:[%s2830_s3 + $0x159] sm:$0xff] %vm115_vm2, %v916_v50 }
 0x107   :  { %v914_v35 = vpop.permute.xlu0 %913 }
 0x108   :  { %1382 = vst.msk [vmem:[%s2830_s3 + $0x151] sm:$0xff] %vm115_vm2, %v914_v35  ;;  %v973_v9 = vpop.permute.xlu1 %972 }
 0x109   :  { %1395 = vst.msk [vmem:[%s2830_s3 + $0x171] sm:$0xff] %vm115_vm2, %v973_v9 }
 0x10b   :  { %v971_v20 = vpop.permute.xlu0 %970 }
 0x10c   :  { %1394 = vst.msk [vmem:[%s2830_s3 + $0x169] sm:$0xff] %vm115_vm2, %v971_v20 }
 0x10d   :  { %v1030_v1 = vpop.permute.xlu1 %1029 }
 0x10e   :  { %1407 = vst.msk [vmem:[%s2830_s3 + $0x189] sm:$0xff] %vm115_vm2, %v1030_v1 }
 0x110   :  { %v1028_v14 = vpop.permute.xlu0 %1027 }
 0x111   :  { %1406 = vst.msk [vmem:[%s2830_s3 + $0x181] sm:$0xff] %vm115_vm2, %v1028_v14 }
 0x113   :  { %v1087_v12 = vpop.permute.xlu1 %1086 }
 0x114   :  { %1419 = vst.msk [vmem:[%s2830_s3 + $0x1a1] sm:$0xff] %vm115_vm2, %v1087_v12 }
 0x116   :  { %v1085_v59 = vpop.permute.xlu0 %1084 }
 0x117   :  { %1418 = vst.msk [vmem:[%s2830_s3 + $0x199] sm:$0xff] %vm115_vm2, %v1085_v59  ;;  %v1144_v17 = vpop.permute.xlu1 %1143 }
 0x118   :  { %1431 = vst.msk [vmem:[%s2830_s3 + $0x1b9] sm:$0xff] %vm115_vm2, %v1144_v17 }
 0x11a   :  { %v1142_v40 = vpop.permute.xlu0 %1141 }
 0x11b   :  { %1430 = vst.msk [vmem:[%s2830_s3 + $0x1b1] sm:$0xff] %vm115_vm2, %v1142_v40 }
 0x11c   :  { %v1201_v56 = vpop.permute.xlu1 %1200 }
 0x11d   :  { %1443 = vst.msk [vmem:[%s2830_s3 + $0x1d1] sm:$0xff] %vm115_vm2, %v1201_v56 }
 0x11f   :  { %v1199_v21 = vpop.permute.xlu0 %1198 }
 0x120   :  { %1442 = vst.msk [vmem:[%s2830_s3 + $0x1c9] sm:$0xff] %vm115_vm2, %v1199_v21 }
 0x121   :  { %1210 = vsyncpa [#allocation3], 1 }
 0x122   :  { %1211 = vsyncpa [#allocation4], 1 }
 0x123   :  { %1212 = vsyncpa [#allocation7], 1 }

</bundles_post_ra>
